<compile_context>
chip_gen: v5e
topology: v5e:2x2
jax: 0.10.0
libtpu: 0.0.40
codegen_flags: <defaults>
</compile_context>

<pallas_src>
import functools

import jax
import jax.numpy as jnp
from jax.experimental import pallas as pl
from jax.experimental.pallas import tpu as pltpu

HIDDEN = 1000   # matches torch.nn.Linear(1, 1000) / (1000, 1000) / (1000, 1)
LANE = 128


def mlp_kernel(x_ref, w1_ref, b1_ref, w2_ref, b2_ref, w3_ref, b3_ref,
               o_ref, h1_ref, acc_ref):
    # Grid axis j walks w2's output columns in tn-wide slabs ("arbitrary").
    j = pl.program_id(0)

    @pl.when(j == 0)
    def _():
        # Layer 1: contraction dim K=1 -> broadcast multiply on the VPU
        # (outer product); computed once and kept in VMEM scratch.
        h1_ref[...] = jnp.tanh(x_ref[...] * w1_ref[...] + b1_ref[...])
        acc_ref[...] = jnp.zeros_like(acc_ref)

    # Layer 2 (this column slab): dense (HP x tn) matmul on the MXU with f32
    # accumulation. Precision pinned: the 1e-5 tolerance is a hard
    # requirement, so do the full-precision multi-pass rather than letting
    # the default silently truncate to a single bf16 pass.
    h2 = jnp.tanh(
        jnp.dot(h1_ref[...], w2_ref[...],
                preferred_element_type=jnp.float32,
                precision=jax.lax.Precision.HIGHEST)
        + b2_ref[...]
    )                                                         # (N, tn)

    # Layer 3 partial: output width 1 -> elementwise multiply (VPU) + lane
    # reduction (XLU), accumulated across column slabs.
    acc_ref[...] += jnp.sum(h2 * w3_ref[...], axis=-1, keepdims=True)

    @pl.when(j == pl.num_programs(0) - 1)
    def _():
        b3 = b3_ref[0, 0]                                     # SMEM scalar
        o_ref[...] = jax.nn.sigmoid(acc_ref[...] + b3)


def prepare_padded_params(w1, b1, w2, b2, w3, b3):
    """One-time (init-time) padding of the hidden dim to a multiple of 128 and
    transpose of w3 to a row vector. Zero padding keeps padded lanes exactly 0
    through tanh, and the zero w3 columns kill them in the final reduction."""
    h = w2.shape[0]
    hp = ((h + LANE - 1) // LANE) * LANE
    pad = hp - h
    w1p = jnp.pad(w1, ((0, 0), (0, pad)))
    b1p = jnp.pad(b1, ((0, 0), (0, pad)))
    w2p = jnp.pad(w2, ((0, pad), (0, pad)))
    b2p = jnp.pad(b2, ((0, 0), (0, pad)))
    w3row = jnp.pad(jnp.transpose(w3), ((0, 0), (0, pad)))    # (1, HP)
    return w1p, b1p, w2p, b2p, w3row, b3


@functools.partial(jax.jit, static_argnames=("tn",))
def mlp_forward(x, w1p, b1p, w2p, b2p, w3row, b3, *, tn=256):
    """x: (N, 1); padded params from prepare_padded_params. Returns (N, 1)."""
    n = x.shape[0]
    hp = w2p.shape[0]
    if hp % tn != 0:
        tn = hp  # fall back to a single un-gridded step
    grid = (hp // tn,)

    grid_spec = pltpu.PrefetchScalarGridSpec(
        num_scalar_prefetch=0,
        grid=grid,
        in_specs=[
            pl.BlockSpec((n, 1), lambda j: (0, 0)),            # x
            pl.BlockSpec((1, hp), lambda j: (0, 0)),           # w1
            pl.BlockSpec((1, hp), lambda j: (0, 0)),           # b1
            pl.BlockSpec((hp, tn), lambda j: (0, j)),          # w2 column slab
            pl.BlockSpec((1, tn), lambda j: (0, j)),           # b2 slab
            pl.BlockSpec((1, tn), lambda j: (0, j)),           # w3 row slab
            pl.BlockSpec(memory_space=pltpu.MemorySpace.SMEM),  # b3 scalar
        ],
        out_specs=pl.BlockSpec((n, 1), lambda j: (0, 0)),
        scratch_shapes=[
            pltpu.VMEM((n, hp), jnp.float32),   # h1 (computed once)
            pltpu.VMEM((n, 1), jnp.float32),    # logits accumulator
        ],
    )

    return pl.pallas_call(
        mlp_kernel,
        out_shape=jax.ShapeDtypeStruct((n, 1), jnp.float32),
        grid_spec=grid_spec,
        compiler_params=pltpu.CompilerParams(
            dimension_semantics=("arbitrary",)),
    )(x, w1p, b1p, w2p, b2p, w3row, b3)


def init_params(key):
    # Deterministic init mimicking torch.nn.Linear default:
    # U(-1/sqrt(fan_in), 1/sqrt(fan_in)) for both weight and bias.
    ks = jax.random.split(key, 6)

    def uniform(k, shape, fan_in):
        bound = 1.0 / jnp.sqrt(jnp.float32(fan_in))
        return jax.random.uniform(
            k, shape, dtype=jnp.float32, minval=-bound, maxval=bound
        )

    w1 = uniform(ks[0], (1, HIDDEN), 1)            # (in, out)
    b1 = uniform(ks[1], (1, HIDDEN), 1)
    w2 = uniform(ks[2], (HIDDEN, HIDDEN), HIDDEN)
    b2 = uniform(ks[3], (1, HIDDEN), HIDDEN)
    w3 = uniform(ks[4], (HIDDEN, 1), HIDDEN)
    b3 = uniform(ks[5], (1, 1), HIDDEN)
    return w1, b1, w2, b2, w3, b3


def reference_forward(x, w1, b1, w2, b2, w3, b3):
    hi = jax.lax.Precision.HIGHEST
    h1 = jnp.tanh(x @ w1 + b1)
    h2 = jnp.tanh(jnp.dot(h1, w2, precision=hi) + b2)
    return jax.nn.sigmoid(jnp.dot(h2, w3, precision=hi) + b3)


if __name__ == "__main__":
    key = jax.random.PRNGKey(0)
    k_x, k_p = jax.random.split(key)

    N = 8  # batch of scalar samples, reshaped to (-1, 1) as in the torch script
    x = jax.random.normal(k_x, (N, 1), dtype=jnp.float32)
    params = init_params(k_p)

    # One-time weight preparation (hoisted out of the per-call hot path).
    padded = prepare_padded_params(*params)
    padded = jax.block_until_ready(padded)

    out = mlp_forward(x, *padded)
    out = jax.block_until_ready(out)

    ref = reference_forward(x, *params)
    assert out.shape == (N, 1)
    assert jnp.allclose(out, ref, atol=1e-5, rtol=1e-5)

    print("KERNEL_OK")
</pallas_src>

<mosaic_0001>
module attributes {stable_mosaic.version = 11 : i64} {
  func.func @mlp_kernel(%arg0: i32, %arg1: memref<8x1xf32, #tpu.memory_space<vmem>>, %arg2: memref<1x1024xf32, #tpu.memory_space<vmem>>, %arg3: memref<1x1024xf32, #tpu.memory_space<vmem>>, %arg4: memref<1024x256xf32, #tpu.memory_space<vmem>>, %arg5: memref<1x256xf32, #tpu.memory_space<vmem>>, %arg6: memref<1x256xf32, #tpu.memory_space<vmem>>, %arg7: memref<1x1xf32, #tpu.memory_space<smem>>, %arg8: memref<8x1xf32, #tpu.memory_space<vmem>>, %arg9: memref<8x1024xf32, #tpu.memory_space<vmem>>, %arg10: memref<8x1xf32, #tpu.memory_space<vmem>>) attributes {dimension_semantics = [#tpu.dimension_semantics<arbitrary>], iteration_bounds = array<i64: 4>, scalar_prefetch = 0 : i64, scratch_operands = 2 : i64, tpu.core_type = #tpu.core_type<tc>, window_params = [{pipeline_mode = #tpu.pipeline_mode<synchronous>, transform_indices = @transform_0, window_bounds = array<i64: 8, 1>}, {pipeline_mode = #tpu.pipeline_mode<synchronous>, transform_indices = @transform_1, window_bounds = array<i64: 1, 1024>}, {pipeline_mode = #tpu.pipeline_mode<synchronous>, transform_indices = @transform_2, window_bounds = array<i64: 1, 1024>}, {transform_indices = @transform_3, window_bounds = array<i64: 1024, 256>}, {transform_indices = @transform_4, window_bounds = array<i64: 1, 256>}, {transform_indices = @transform_5, window_bounds = array<i64: 1, 256>}, {transform_indices = @transform_6, window_bounds = array<i64: 1, 1>}, {pipeline_mode = #tpu.pipeline_mode<synchronous>, transform_indices = @transform_7, window_bounds = array<i64: 8, 1>}]} {
    %c0_i32 = arith.constant 0 : i32
    %0 = arith.cmpi eq, %arg0, %c0_i32 : i32
    %1 = arith.extui %0 : i1 to i32
    %c0_i32_0 = arith.constant 0 : i32
    %2 = arith.cmpi ne, %1, %c0_i32_0 : i32
    scf.if %2 {
      %c0_14 = arith.constant 0 : index
      %c0_15 = arith.constant 0 : index
      %21 = vector.load %arg1[%c0_14, %c0_15] : memref<8x1xf32, #tpu.memory_space<vmem>>, vector<8x1xf32>
      %c0_16 = arith.constant 0 : index
      %c0_17 = arith.constant 0 : index
      %22 = vector.load %arg2[%c0_16, %c0_17] : memref<1x1024xf32, #tpu.memory_space<vmem>>, vector<1x1024xf32>
      %23 = vector.broadcast %21 : vector<8x1xf32> to vector<8x1024xf32>
      %24 = vector.broadcast %22 : vector<1x1024xf32> to vector<8x1024xf32>
      %25 = arith.mulf %23, %24 : vector<8x1024xf32>
      %c0_18 = arith.constant 0 : index
      %c0_19 = arith.constant 0 : index
      %26 = vector.load %arg3[%c0_18, %c0_19] : memref<1x1024xf32, #tpu.memory_space<vmem>>, vector<1x1024xf32>
      %27 = vector.broadcast %26 : vector<1x1024xf32> to vector<8x1024xf32>
      %28 = arith.addf %25, %27 : vector<8x1024xf32>
      %29 = math.tanh %28 : vector<8x1024xf32>
      %c0_20 = arith.constant 0 : index
      %c0_21 = arith.constant 0 : index
      %30 = vector.load %arg9[%c0_20, %c0_21] : memref<8x1024xf32, #tpu.memory_space<vmem>>, vector<8x1024xf32>
      tpu.vector_store %arg9[%c0_20, %c0_21], %29 {strides = array<i32>} : memref<8x1024xf32, #tpu.memory_space<vmem>>, vector<8x1024xf32>,
      %cst_22 = arith.constant 0.000000e+00 : f32
      %31 = vector.broadcast %cst_22 : f32 to vector<8x1xf32>
      %c0_23 = arith.constant 0 : index
      %c0_24 = arith.constant 0 : index
      %32 = vector.load %arg10[%c0_23, %c0_24] : memref<8x1xf32, #tpu.memory_space<vmem>>, vector<8x1xf32>
      tpu.vector_store %arg10[%c0_23, %c0_24], %31 {strides = array<i32>} : memref<8x1xf32, #tpu.memory_space<vmem>>, vector<8x1xf32>,
    } else {
    }
    %c0 = arith.constant 0 : index
    %c0_1 = arith.constant 0 : index
    %3 = vector.load %arg9[%c0, %c0_1] : memref<8x1024xf32, #tpu.memory_space<vmem>>, vector<8x1024xf32>
    %c0_2 = arith.constant 0 : index
    %c0_3 = arith.constant 0 : index
    %4 = vector.load %arg4[%c0_2, %c0_3] : memref<1024x256xf32, #tpu.memory_space<vmem>>, vector<1024x256xf32>
    %cst = arith.constant dense<0.000000e+00> : vector<8x256xf32>
    %5 = tpu.matmul %3, %4, %cst {dimension_numbers = #tpu.dot_dimension_numbers<[1], [0], [0], [1], [0, 0, 1, 1], [], []>, precision = #tpu.contract_precision<fp32>} : vector<8x1024xf32>, vector<1024x256xf32>, vector<8x256xf32> -> vector<8x256xf32>
    %c0_4 = arith.constant 0 : index
    %c0_5 = arith.constant 0 : index
    %6 = vector.load %arg5[%c0_4, %c0_5] : memref<1x256xf32, #tpu.memory_space<vmem>>, vector<1x256xf32>
    %7 = vector.broadcast %6 : vector<1x256xf32> to vector<8x256xf32>
    %8 = arith.addf %5, %7 : vector<8x256xf32>
    %9 = math.tanh %8 : vector<8x256xf32>
    %c0_6 = arith.constant 0 : index
    %c0_7 = arith.constant 0 : index
    %10 = vector.load %arg10[%c0_6, %c0_7] : memref<8x1xf32, #tpu.memory_space<vmem>>, vector<8x1xf32>
    %c0_8 = arith.constant 0 : index
    %c0_9 = arith.constant 0 : index
    %11 = vector.load %arg6[%c0_8, %c0_9] : memref<1x256xf32, #tpu.memory_space<vmem>>, vector<1x256xf32>
    %12 = vector.broadcast %11 : vector<1x256xf32> to vector<8x256xf32>
    %13 = arith.mulf %9, %12 : vector<8x256xf32>
    %cst_10 = arith.constant dense<0.000000e+00> : vector<8xf32>
    %14 = vector.multi_reduction <add>, %13, %cst_10 [1] : vector<8x256xf32> to vector<8xf32>
    %15 = vector.shape_cast %14 : vector<8xf32> to vector<8x1xf32>
    %16 = arith.addf %10, %15 : vector<8x1xf32>
    %c0_11 = arith.constant 0 : index
    %c0_12 = arith.constant 0 : index
    %17 = vector.load %arg10[%c0_11, %c0_12] : memref<8x1xf32, #tpu.memory_space<vmem>>, vector<8x1xf32>
    tpu.vector_store %arg10[%c0_11, %c0_12], %16 {strides = array<i32>} : memref<8x1xf32, #tpu.memory_space<vmem>>, vector<8x1xf32>,
    %c3_i32 = arith.constant 3 : i32
    %18 = arith.cmpi eq, %arg0, %c3_i32 : i32
    %19 = arith.extui %18 : i1 to i32
    %c0_i32_13 = arith.constant 0 : i32
    %20 = arith.cmpi ne, %19, %c0_i32_13 : i32
    scf.if %20 {
      %c0_14 = arith.constant 0 : index
      %c0_15 = arith.constant 0 : index
      %21 = memref.load %arg7[%c0_14, %c0_15] : memref<1x1xf32, #tpu.memory_space<smem>>
      %c0_16 = arith.constant 0 : index
      %c0_17 = arith.constant 0 : index
      %22 = vector.load %arg10[%c0_16, %c0_17] : memref<8x1xf32, #tpu.memory_space<vmem>>, vector<8x1xf32>
      %23 = vector.broadcast %21 : f32 to vector<8x1xf32>
      %24 = arith.addf %22, %23 : vector<8x1xf32>
      %25 = arith.negf %24 : vector<8x1xf32>
      %26 = math.exp %25 : vector<8x1xf32>
      %cst_18 = arith.constant 1.000000e+00 : f32
      %27 = vector.broadcast %cst_18 : f32 to vector<8x1xf32>
      %28 = arith.addf %27, %26 : vector<8x1xf32>
      %29 = arith.divf %27, %28 : vector<8x1xf32>
      %c0_19 = arith.constant 0 : index
      %c0_20 = arith.constant 0 : index
      %30 = vector.load %arg8[%c0_19, %c0_20] : memref<8x1xf32, #tpu.memory_space<vmem>>, vector<8x1xf32>
      tpu.vector_store %arg8[%c0_19, %c0_20], %29 {strides = array<i32>} : memref<8x1xf32, #tpu.memory_space<vmem>>, vector<8x1xf32>,
    } else {
    }
    return
  }
  func.func @transform_0(%arg0: i32) -> (i32, i32) {
    %c0_i32 = arith.constant 0 : i32
    %c0_i32_0 = arith.constant 0 : i32
    %c0_i32_1 = arith.constant 0 : i32
    return %c0_i32, %c0_i32_0 : i32, i32
  }
  func.func @transform_1(%arg0: i32) -> (i32, i32) {
    %c0_i32 = arith.constant 0 : i32
    %c0_i32_0 = arith.constant 0 : i32
    %c0_i32_1 = arith.constant 0 : i32
    return %c0_i32, %c0_i32_0 : i32, i32
  }
  func.func @transform_2(%arg0: i32) -> (i32, i32) {
    %c0_i32 = arith.constant 0 : i32
    %c0_i32_0 = arith.constant 0 : i32
    %c0_i32_1 = arith.constant 0 : i32
    return %c0_i32, %c0_i32_0 : i32, i32
  }
  func.func @transform_3(%arg0: i32) -> (i32, i32) {
    %c0_i32 = arith.constant 0 : i32
    %c0_i32_0 = arith.constant 0 : i32
    return %c0_i32, %arg0 : i32, i32
  }
  func.func @transform_4(%arg0: i32) -> (i32, i32) {
    %c0_i32 = arith.constant 0 : i32
    %c0_i32_0 = arith.constant 0 : i32
    return %c0_i32, %arg0 : i32, i32
  }
  func.func @transform_5(%arg0: i32) -> (i32, i32) {
    %c0_i32 = arith.constant 0 : i32
    %c0_i32_0 = arith.constant 0 : i32
    return %c0_i32, %arg0 : i32, i32
  }
  func.func @transform_6(%arg0: i32) -> (i32, i32) {
    %c0_i32 = arith.constant 0 : i32
    %c0_i32_0 = arith.constant 0 : i32
    %c0_i32_1 = arith.constant 0 : i32
    return %c0_i32, %c0_i32_0 : i32, i32
  }
  func.func @transform_7(%arg0: i32) -> (i32, i32) {
    %c0_i32 = arith.constant 0 : i32
    %c0_i32_0 = arith.constant 0 : i32
    %c0_i32_1 = arith.constant 0 : i32
    return %c0_i32, %c0_i32_0 : i32, i32
  }
}

</mosaic_0001>

<bundles_post_ra>
// kernel: mlp_forward.1
= control target key start
LH: loop header
LB: loop body
LE: loop exit
PB: predicated region body
PF: predicated region fallthrough
CT: control target
= control target key end

     0   :  { %s11205_s0 = inlined_call_operand.vmem [shape: f32[8,1], index: 0, kind: input, shape index: {}]   ;;  %s11206_s1 = inlined_call_operand.hbm [shape: f32[1,1024], index: 1, kind: input, shape index: {}]   ;;  %s11207_s2 = inlined_call_operand.hbm [shape: f32[1,1024], index: 2, kind: input, shape index: {}]   ;;  %s11208_s3 = inlined_call_operand.hbm [shape: f32[1024,1024], index: 3, kind: input, shape index: {}]   ;;  %s11209_s4 = inlined_call_operand.hbm [shape: f32[1,1024], index: 4, kind: input, shape index: {}]   ;;  %s11210_s5 = inlined_call_operand.hbm [shape: f32[1,1024], index: 5, kind: input, shape index: {}]   ;;  %s11211_s6 = inlined_call_operand.<no memory space> [shape: f32[1,1], index: 6, kind: input, shape index: {}]   ;;  %s11212_s7 = inlined_call_operand.vmem [shape: f32[8,1], index: 7, kind: output, shape index: {}]  }
   0x1   :  { %11406 = sst [smem:[#allocation51_spill]] %s11206_s1 }
   0x2   :  { %11407 = sst [smem:[#allocation52_spill]] %s11208_s3 }
   0x3   :  { %12 = sst [smem:[#allocation4]] %s11211_s6 }
   0x4   :  { %13 = vsyncpa [#allocation6], 0 }
   0x5   :  { %14 = vsyncpa [#allocation8], 0  ;;  %s6707_s26 = smov 0   ;;  %s6709_s27 = smov 0  }
   0x6   :  { %s6711_s28 = smov 0   ;;  %s6713_s29 = smov 0  }
   0x7 LB: > { %11408 = sst [smem:[#allocation15_spill]] %s6651_s28  ;;  %s6726_s6 = sadd.s32 4294967295, %s6655_s29   ;;  %s6655_s29 = sphi %s6713_s29, %s11725_s29   ;;  %s6651_s28 = sphi %s6711_s28, %s11727_s28   ;;  %s6647_s27 = sphi %s6709_s27, %s11729_s27   ;;  %s6643_s26 = sphi %s6707_s26, %s11728_s26  }
   0x8   : > { %s6729_s30 = sadd.s32 1, %s6655_s29   ;;  %s90_s9 = sadd.s32 1, %s6651_s28 }
   0x9   : > { %11409 = sst [smem:[#allocation16_spill]] %s6729_s30  ;;  %s87_s8 = ssub.s32 %s6655_s29, %s6729_s30 }
   0xa   : > { %p88_p0 = scmp.eq.s32.totalorder %s87_s8, 0  ;;  %p97_p1 = scmp.ne.s32.totalorder %s6651_s28, %s6647_s27 }
   0xb   : > { %p98_p2 = scmp.eq.s32.totalorder %s6655_s29, 0  ;;  %p103_p3 = scmp.ne.s32.totalorder %s6647_s27, %s6643_s26 }
   0xc   : > { %s6739_s10 = scalar_select %p88_p0, %s6651_s28, %s90_s9  }
   0xd   : > { %p6741_p4 = por %p98_p2, %p97_p1  ;;  %p104_p5 = scmp.eq.s32.totalorder %s6726_s6, 0 }
   0xe   : > { %11410 = sst [smem:[#allocation17_spill]] %s6739_s10  ;;  %p6339_p6 = scmp.ge.s32.totalorder %s6655_s29, 1 }
   0xf   : > { %p208_p7 = scmp.lt.s32.totalorder %s6655_s29, 5  ;;  %p6750_p8 = por %p104_p5, %p103_p3 }
  0x10   : > { %p6340_p9 = scmp.ne.s32.totalorder %s6726_s6, 0  ;;  %s11414_s1 = sld [smem:[#allocation51_spill]] }
  0x11   : > { %p6755_p10 = pnand %p6339_p6, %p208_p7  ;;  %s6657_s17 = smov [#allocation5]  }
  0x12   : > { %s225_s18 = sshll.u32 %s6657_s17, 4  ;;  %p6395_p13 = scmp.lt.s32.totalorder %s6655_s29, 4  ;;  %s226_s18 = int_to_ptr.vmem [resolvable:$true] %s225_s18 }
  0x13   : > { %p6376_p11 = pneg %p6755_p10  ;;  %s251_s20 = sand.u32 1, %s6655_s29  }
  0x14   : > { %s253_s21 = sand.u32 1, %s6651_s28   ;;  %p6775_p0 = pnand %p6395_p13, %p6741_p4 }
  0x15   : > { %p6766_p12 = pnand %p6376_p11, %p104_p5  ;;  %s6343_s23 = sshll.u32 %s253_s21, 11 }
  0x16   : > { %s223_s16 = sshll.u32 %s11414_s1, 4  ;;  %s6361_s24 = sshll.u32 %s6655_s29, 4  ;;  %s224_s16 = int_to_ptr.hbm [resolvable:$true] %s223_s16 }
  0x17   : > { %6379 = dma.hbm_to_vmem [thread:$0]  (!%p6766_p12), %s224_s16, 128, %s226_s18, [#allocation6]  }
  0x18   : > { %s11417_s3 = sld [smem:[#allocation52_spill]]  ;;  %s255_s14 = scalar_lea.vmem [#allocation9], %s6343_s23 }
  0x19   : > { %s263_s15 = sshll.u32 %s255_s14, 4  ;;  %s6785_s11 = sshll.u32 %s253_s21, 1  ;;  %s264_s15 = int_to_ptr.vmem [resolvable:$true] %s263_s15 }
  0x1a   : > { %s6787_s17 = scalar_lea.sflag [#allocation6], %s251_s20  ;;  %p6497_p2 = pneg %p6775_p0 }
  0x1e   : > { %s260_s8 = scalar_lea.hbm %s11417_s3, %s6361_s24  ;;  %s6500_s23 = scalar_lea.hbm %s11417_s3, 8192 }
  0x1f   : > { %s261_s9 = sshll.u32 %s260_s8, 4  ;;  %s262_s9 = int_to_ptr.hbm [resolvable:$true] %s261_s9 }
  0x20   : > { %s6493_s1 = sshra.s32 %s262_s9, 4  ;;  %s6494_s1 = int_to_ptr.hbm [resolvable:$true] %s6493_s1 }
  0x21   : > { %s6495_s10 = scalar_lea.hbm %s6494_s1, 2048  ;;  %p6501_p6 = scmp.lt.s32.totalorder %s6494_s1, %s11417_s3 }
  0x22   : > { %p6496_p1 = scmp.ne.s32.totalorder %s6494_s1, %s6495_s10  ;;  %p6502_p7 = scmp.lt.s32.totalorder %s6500_s23, %s6495_s10 }
  0x24   : > { %p6498_p3 = pnand %p6497_p2, %p6496_p1  ;;  %p6503_p11 = por %p6502_p7, %p6501_p6 }
  0x26   : > { %p6499_p4 = pneg %p6498_p3 }
  0x28   : > { %p6504_p13 = pnand %p6503_p11, %p6499_p4 }
  0x2a   : > { %6507 = shalt.err (!%p6504_p13)
}
  0x2b   : > { %s6658_s20 = smov 1024   ;;  %s6659_s21 = smov 256  }
  0x2c   : > { %s6660_s26 = smov 16   ;;  %s6347_s8 = sshll.u32 %s6655_s29, 1 }
  0x2d   : > { %6386 = dma.hbm_to_vmem [thread:$0]  (!%p6775_p0), %s262_s9, 32768, %s264_s15, %s6787_s17, %s6658_s20, %s6659_s21, %s6660_s26  }
  0x2e   : > { %s281_s18 = scalar_lea.hbm %s11209_s4, %s6347_s8  ;;  %s277_s1 = scalar_lea.vmem [#allocation10], %s6785_s11 }
  0x2f   : > { %s285_s10 = sshll.u32 %s277_s1, 4  ;;  %s283_s23 = sshll.u32 %s281_s18, 4  ;;  %s286_s10 = int_to_ptr.vmem [resolvable:$true] %s285_s10  ;;  %s284_s23 = int_to_ptr.hbm [resolvable:$true] %s283_s23 }
  0x30   : > { %s235_s3 = sshll.u32 %s11207_s2, 4  ;;  %s6523_s28 = sshra.s32 %s284_s23, 4  ;;  %s6524_s28 = int_to_ptr.hbm [resolvable:$true] %s6523_s28  ;;  %s236_s3 = int_to_ptr.hbm [resolvable:$true] %s235_s3 }
  0x31   : > { %s6525_s30 = scalar_lea.hbm %s6524_s28, 2  ;;  %s6530_s15 = scalar_lea.hbm %s11209_s4, 8 }
  0x32   : > { %p6526_p1 = scmp.ne.s32.totalorder %s6524_s28, %s6525_s30  ;;  %p6531_p6 = scmp.lt.s32.totalorder %s6524_s28, %s11209_s4 }
  0x33   : > { %p6532_p7 = scmp.lt.s32.totalorder %s6530_s15, %s6525_s30 }
  0x34   : > { %p6528_p3 = pnand %p6526_p1, %p6497_p2 }
  0x35   : > { %p6533_p11 = por %p6532_p7, %p6531_p6 }
  0x36   : > { %p6529_p4 = pneg %p6528_p3 }
  0x38   : > { %p6534_p13 = pnand %p6533_p11, %p6529_p4 }
  0x3a   : > { %6537 = shalt.err (!%p6534_p13)
}
  0x3b   : > { %6389 = dma.hbm_to_vmem [thread:$0]  (!%p6775_p0), %s284_s23, 32, %s286_s10, %s6787_s17  }
  0x3c   : > { %s6661_s26 = smov [#allocation7]   ;;  %s300_s1 = scalar_lea.hbm %s11210_s5, %s6347_s8 }
  0x3d   : > { %s237_s14 = sshll.u32 %s6661_s26, 4  ;;  %s302_s28 = sshll.u32 %s300_s1, 4  ;;  %s238_s14 = int_to_ptr.vmem [resolvable:$true] %s237_s14  ;;  %s303_s28 = int_to_ptr.hbm [resolvable:$true] %s302_s28 }
  0x3e   : > { %6382 = dma.hbm_to_vmem [thread:$0]  (!%p6766_p12), %s236_s3, 128, %s238_s14, [#allocation8]  }
  0x3f   : > { %s296_s30 = scalar_lea.vmem [#allocation11], %s6785_s11  ;;  %s6583_s25 = sshra.s32 %s303_s28, 4  ;;  %s6584_s25 = int_to_ptr.hbm [resolvable:$true] %s6583_s25 }
  0x40   : > { %s304_s24 = sshll.u32 %s296_s30, 4  ;;  %s6585_s29 = scalar_lea.hbm %s6584_s25, 2  ;;  %s305_s24 = int_to_ptr.vmem [resolvable:$true] %s304_s24 }
  0x41   : > { %p6586_p1 = scmp.ne.s32.totalorder %s6584_s25, %s6585_s29  ;;  %s6590_s9 = scalar_lea.hbm %s11210_s5, 8 }
  0x42   : > { %p6591_p12 = scmp.lt.s32.totalorder %s6584_s25, %s11210_s5  ;;  %p6592_p6 = scmp.lt.s32.totalorder %s6590_s9, %s6585_s29 }
  0x43   : > { %p6588_p3 = pnand %p6586_p1, %p6497_p2 }
  0x44   : > { %p6593_p7 = por %p6592_p6, %p6591_p12 }
  0x45   : > { %p6589_p4 = pneg %p6588_p3 }
  0x47   : > { %p6594_p11 = pnand %p6593_p7, %p6589_p4 }
  0x49   : > { %6597 = shalt.err (!%p6594_p11)
}
  0x4a   : > { %6392 = dma.hbm_to_vmem [thread:$0]  (!%p6775_p0), %s303_s28, 32, %s305_s24, %s6787_s17  }
  0x4b   : > { %313 = sbr.rel (%p6755_p10) target bundleno = 1351 (0x547), region = 48 }
  0x50   : > { %6630 = dma.done.wait (%p104_p5), [#allocation6], 128  }
  0x51   : > { %6632 = vsyncadd (%p104_p5), [#allocation6], 4294967168 }
  0x52   : > { %6634 = dma.done.wait (%p104_p5), [#allocation8], 128  }
  0x53   : > { %6636 = vsyncadd (%p104_p5), [#allocation8], 4294967168  ;;  %s325_s3 = sand.u32 1, %s6726_s6   ;;  %s327_s22 = sand.u32 1, %s6647_s27  }
  0x54   : > { %s6353_s11 = sshll.u32 %s327_s22, 11  ;;  %s326_s13 = scalar_lea.sflag [#allocation6], %s325_s3 }
  0x55   : > { %s6853_s17 = scalar_lea.vmem [#allocation9], %s6353_s11 }
  0x56   : > { %6638 = dma.done.wait (%p6750_p8), %s326_s13, 32832  }
  0x57   : > { %6640 = vsyncadd (%p6750_p8), %s326_s13, 4294934464  ;;  %s6859_s15 = sshll.u32 %s327_s22, 1  ;;  %392 = sbr.rel (%p6340_p9) target bundleno = 228 (0xe4), region = 72 }
  0x58   : > { %s339_s20 = scalar_lea.vmem [#allocation10], %s6859_s15  ;;  %s349_s21 = scalar_lea.vmem [#allocation11], %s6859_s15 }
  0x5c   : > { %v393_v0 = vld [vmem:[%s11205_s0] sm:$0xff]  ;;  %v6662_v1 = vmov 0   ;;  %vm467_vm0 = vcmask 7168   ;;  %v6663_v2 = vmov 0.0   ;;  %v394_v3 = vld [vmem:[#allocation5] sm:$0xff]  ;;  %v425_v4 = vld [vmem:[#allocation7] sm:$0xff] }
  0x5d   : > { %6437 = vset.pattern.permute.xlu0 %v6662_v1  ;;  %468 = vst.msk [vmem:[#allocation3] sm:$0xff] %vm467_vm0, %v6663_v2  ;;  %v401_v5 = vperm.slane %v394_v3, 0  ;;  %v402_v6 = vperm.slane %v394_v3, 1  ;;  %v403_v7 = vperm.slane %v394_v3, 2  ;;  %v404_v8 = vperm.slane %v394_v3, 3 }
  0x5e   : > { %397 = vperm.xlu0 %6437, %v393_v0   ;;  %v405_v9 = vperm.slane %v394_v3, 4  ;;  %v406_v10 = vperm.slane %v394_v3, 5  ;;  %v407_v11 = vperm.slane %v394_v3, 6  ;;  %v427_v12 = vperm.slane %v425_v4, 0 }
  0x5f   : > { %v428_v13 = vperm.slane %v425_v4, 1  ;;  %v429_v14 = vperm.slane %v425_v4, 2  ;;  %v408_v15 = vperm.slane %v394_v3, 7  ;;  %v430_v16 = vperm.slane %v425_v4, 3 }
  0x60   : > { %v431_v17 = vperm.slane %v425_v4, 4  ;;  %v432_v23 = vperm.slane %v425_v4, 5  ;;  %v433_v24 = vperm.slane %v425_v4, 6  ;;  %v434_v31 = vperm.slane %v425_v4, 7 }
  0xd0   : > { %v398_v18 = vpop.permute.xlu0 %397 }
  0xd1   : > { %v417_v19 = vmul.f32 %v401_v5, %v398_v18  ;;  %v418_v20 = vmul.f32 %v402_v6, %v398_v18  ;;  %v419_v21 = vmul.f32 %v403_v7, %v398_v18  ;;  %v420_v22 = vmul.f32 %v404_v8, %v398_v18 }
  0xd2   : > { %v421_v25 = vmul.f32 %v405_v9, %v398_v18  ;;  %v422_v26 = vmul.f32 %v406_v10, %v398_v18  ;;  %v423_v27 = vmul.f32 %v407_v11, %v398_v18  ;;  %v424_v32 = vmul.f32 %v408_v15, %v398_v18 }
  0xd3   : > { %v443_v28 = vadd.f32 %v427_v12, %v417_v19  ;;  %v444_v29 = vadd.f32 %v428_v13, %v418_v20  ;;  %v445_v30 = vadd.f32 %v429_v14, %v419_v21  ;;  %v446_v33 = vadd.f32 %v430_v16, %v420_v22 }
  0xd4   : > { %v447_v34 = vadd.f32 %v431_v17, %v421_v25  ;;  %v448_v35 = vadd.f32 %v432_v23, %v422_v26  ;;  %v449_v36 = vadd.f32 %v433_v24, %v423_v27  ;;  %v450_v37 = vadd.f32 %v434_v31, %v424_v32 }
  0xd5   : > { %6438 = vtanh.f32 %v443_v28 }
  0xd6   : > { %6440 = vtanh.f32 %v444_v29 }
  0xd7   : > { %6442 = vtanh.f32 %v445_v30 }
  0xd8   : > { %6444 = vtanh.f32 %v446_v33 }
  0xd9   : > { %6446 = vtanh.f32 %v447_v34 }
  0xda   : > { %6448 = vtanh.f32 %v448_v35 }
  0xdb   : > { %v6439_v38 = vpop.eup %6438  ;;  %6450 = vtanh.f32 %v449_v36 }
  0xdc   : > { %v6441_v39 = vpop.eup %6440  ;;  %6452 = vtanh.f32 %v450_v37  ;;  %459 = vst [vmem:[#allocation2 + $0x30] sm:$0xff] %v6439_v38 }
  0xdd   : > { %v6443_v40 = vpop.eup %6442  ;;  %460 = vst [vmem:[#allocation2] sm:$0xff] %v6441_v39 }
  0xde   : > { %v6445_v41 = vpop.eup %6444  ;;  %461 = vst [vmem:[#allocation2 + $0x18] sm:$0xff] %v6443_v40 }
  0xdf   : > { %v6447_v42 = vpop.eup %6446  ;;  %462 = vst [vmem:[#allocation2 + $0x10] sm:$0xff] %v6445_v41 }
  0xe0   : > { %v6449_v43 = vpop.eup %6448  ;;  %463 = vst [vmem:[#allocation2 + $0x8] sm:$0xff] %v6447_v42 }
  0xe1   : > { %v6451_v44 = vpop.eup %6450  ;;  %464 = vst [vmem:[#allocation2 + $0x20] sm:$0xff] %v6449_v43 }
  0xe2   : > { %v6453_v45 = vpop.eup %6452  ;;  %465 = vst [vmem:[#allocation2 + $0x28] sm:$0xff] %v6451_v44 }
  0xe3   : > { %466 = vst [vmem:[#allocation2 + $0x38] sm:$0xff] %v6453_v45 }
  0xe4 PF: > { %v507_v46 = vld [vmem:[%s6853_s17 + $0xf0] sm:$0xff]  ;;  %v505_v47 = vld [vmem:[%s6853_s17 + $0xe0] sm:$0xff]  ;;  %vm6210_vm1 = vcmask 7168   ;;  %p6357_p5 = scmp.ne.s32.totalorder %s6726_s6, 3 }
  0xe5   : > { %v503_v48 = vld [vmem:[%s6853_s17 + $0xd0] sm:$0xff]  ;;  %v6871_v49 = vand.u32 4294901760, %v507_v46  ;;  %v6873_v50 = vand.u32 4294901760, %v505_v47  ;;  %v501_v52 = vld [vmem:[%s6853_s17 + $0xc0] sm:$0xff]  ;;  %s6216_s12 = sld [smem:[#allocation4]] (!%p6357_p5) }
  0xe6   : > { %v6875_v51 = vand.u32 4294901760, %v503_v48  ;;  %v499_v53 = vld [vmem:[%s6853_s17 + $0xb0] sm:$0xff]  ;;  %v497_v54 = vld [vmem:[%s6853_s17 + $0xa0] sm:$0xff]  ;;  %v6880_v55 = vand.u32 4294901760, %v501_v52 }
  0xe7   : > { %v6882_v56 = vand.u32 4294901760, %v499_v53  ;;  %v6884_v57 = vand.u32 4294901760, %v497_v54  ;;  %v495_v58 = vld [vmem:[%s6853_s17 + $0x90] sm:$0xff]  ;;  %v493_v59 = vld [vmem:[%s6853_s17 + $0x80] sm:$0xff]  ;;  %740 = vmatpush.msra.mxu0 %v6871_v49  ;;  %v6890_v60 = vsub.f32 %v507_v46, %v6871_v49  ;;  %v6893_v61 = vsub.f32 %v505_v47, %v6873_v50  ;;  %936 = vmatpush.msra.mxu3 %v6871_v49 }
  0xe8   : > { %v6897_v62 = vsub.f32 %v503_v48, %v6875_v51  ;;  %v6899_v63 = vand.u32 4294901760, %v495_v58  ;;  %v6902_v0 = vsub.f32 %v501_v52, %v6880_v55  ;;  %v491_v3 = vld [vmem:[%s6853_s17 + $0x70] sm:$0xff]  ;;  %v6916_v7 = vand.u32 4294901760, %v493_v59  ;;  %v489_v8 = vld [vmem:[%s6853_s17 + $0x60] sm:$0xff] }
  0xe9   : > { %v6905_v1 = vsub.f32 %v499_v53, %v6882_v56  ;;  %v6908_v2 = vsub.f32 %v497_v54, %v6884_v57  ;;  %742 = vmatpush.msra.mxu0 %v6873_v50  ;;  %883 = vmatpush.msra.mxu2 %v6890_v60  ;;  %v782_v4 = vand.u32 4294901760, %v6890_v60  ;;  %v11231_v5 = vand.u32 4294901760, %v6893_v61  ;;  %v487_v18 = vld [vmem:[%s6853_s17 + $0x50] sm:$0xff]  ;;  %v485_v24 = vld [vmem:[%s6853_s17 + $0x40] sm:$0xff] }
  0xea   : > { %v11229_v6 = vand.u32 4294901760, %v6897_v62  ;;  %938 = vmatpush.msra.mxu3 %v6873_v50  ;;  %v11228_v9 = vand.u32 4294901760, %v6902_v0  ;;  %v6923_v11 = vsub.f32 %v495_v58, %v6899_v63  ;;  %v6936_v15 = vand.u32 4294901760, %v491_v3  ;;  %v483_v29 = vld [vmem:[%s6853_s17 + $0x30] sm:$0xff]  ;;  %v481_v36 = vld [vmem:[%s6853_s17 + $0x20] sm:$0xff] }
  0xeb   : > { %v11225_v10 = vand.u32 4294901760, %v6905_v1  ;;  %744 = vmatpush.msra.mxu0 %v6875_v51  ;;  %886 = vmatpush.msra.mxu2 %v6893_v61  ;;  %v783_v12 = vsub.f32 %v6890_v60, %v782_v4  ;;  %v789_v13 = vsub.f32 %v6893_v61, %v11231_v5  ;;  %v6939_v16 = vand.u32 4294901760, %v489_v8  ;;  %v539_v41 = vld [vmem:[%s6853_s17 + $0x1f0] sm:$0xff]  ;;  %v477_v48 = vld [vmem:[%s6853_s17] sm:$0xff] }
  0xec   : > { %v795_v14 = vsub.f32 %v6897_v62, %v11229_v6  ;;  %940 = vmatpush.msra.mxu3 %v6875_v51  ;;  %v11223_v17 = vand.u32 4294901760, %v6908_v2  ;;  %v801_v21 = vsub.f32 %v6902_v0, %v11228_v9  ;;  %v6949_v22 = vsub.f32 %v493_v59, %v6916_v7  ;;  %v479_v43 = vld [vmem:[%s6853_s17 + $0x10] sm:$0xff]  ;;  %v537_v52 = vld [vmem:[%s6853_s17 + $0x1e0] sm:$0xff] }
  0xed   : > { %746 = vmatpush.msra.mxu0 %v6880_v55  ;;  %v784_v19 = vand.u32 4294901760, %v783_v12  ;;  %889 = vmatpush.msra.mxu2 %v6897_v62  ;;  %v790_v20 = vand.u32 4294901760, %v789_v13  ;;  %v807_v23 = vsub.f32 %v6905_v1, %v11225_v10  ;;  %v6957_v26 = vand.u32 4294901760, %v487_v18 }
  0xee   : > { %942 = vmatpush.msra.mxu3 %v6880_v55  ;;  %v796_v25 = vand.u32 4294901760, %v795_v14  ;;  %v11222_v27 = vand.u32 4294901760, %v6923_v11  ;;  %v6961_v28 = vsub.f32 %v491_v3, %v6936_v15  ;;  %v813_v30 = vsub.f32 %v6908_v2, %v11223_v17  ;;  %v535_v14 = vld [vmem:[%s6853_s17 + $0x1d0] sm:$0xff] }
  0xef   : > { %748 = vmatpush.msra.mxu0 %v6882_v56  ;;  %785 = vmatpush.msra.mxu1 %v784_v19  ;;  %v802_v31 = vand.u32 4294901760, %v801_v21  ;;  %v6970_v32 = vand.u32 4294901760, %v485_v24  ;;  %v11221_v33 = vand.u32 4294901760, %v6949_v22  ;;  %v6974_v34 = vsub.f32 %v489_v8, %v6939_v16 }
  0xf0   : > { %892 = vmatpush.msra.mxu2 %v6902_v0  ;;  %944 = vmatpush.msra.mxu3 %v6882_v56  ;;  %v6978_v35 = vand.u32 4294901760, %v483_v29  ;;  %v808_v37 = vand.u32 4294901760, %v807_v23  ;;  %v819_v38 = vsub.f32 %v6923_v11, %v11222_v27  ;;  %v11220_v39 = vand.u32 4294901760, %v6961_v28  ;;  %v525_v27 = vld [vmem:[%s6853_s17 + $0x180] sm:$0xff] }
  0xf1   : > { %750 = vmatpush.msra.mxu0 %v6884_v57  ;;  %791 = vmatpush.msra.mxu1 %v790_v20  ;;  %v6987_v40 = vsub.f32 %v487_v18, %v6957_v26  ;;  %v814_v42 = vand.u32 4294901760, %v813_v30  ;;  %v825_v44 = vsub.f32 %v6949_v22, %v11221_v33  ;;  %v6997_v45 = vand.u32 4294901760, %v481_v36 }
  0xf2   : > { %895 = vmatpush.msra.mxu2 %v6905_v1  ;;  %946 = vmatpush.msra.mxu3 %v6884_v57  ;;  %v11219_v46 = vand.u32 4294901760, %v6974_v34  ;;  %v7001_v47 = vsub.f32 %v485_v24, %v6970_v32  ;;  %v7008_v53 = vsub.f32 %v483_v29, %v6978_v35  ;;  %v7010_v54 = vand.u32 4294901760, %v539_v41 }
  0xf3   : > { %752 = vmatpush.msra.mxu0 %v6899_v63  ;;  %797 = vmatpush.msra.mxu1 %v796_v25  ;;  %v820_v58 = vand.u32 4294901760, %v819_v38  ;;  %v831_v59 = vsub.f32 %v6961_v28, %v11220_v39  ;;  %v7016_v3 = vand.u32 4294901760, %v479_v43  ;;  %v11217_v8 = vand.u32 4294901760, %v6987_v40  ;;  %v533_v25 = vld [vmem:[%s6853_s17 + $0x1c0] sm:$0xff]  ;;  %v527_v39 = vld [vmem:[%s6853_s17 + $0x190] sm:$0xff] }
  0xf4   : > { %898 = vmatpush.msra.mxu2 %v6908_v2  ;;  %948 = vmatpush.msra.mxu3 %v6899_v63  ;;  %v7021_v12 = vand.u32 4294901760, %v477_v48  ;;  %v7023_v13 = vand.u32 4294901760, %v537_v52  ;;  %v826_v18 = vand.u32 4294901760, %v825_v44  ;;  %v837_v19 = vsub.f32 %v6974_v34, %v11219_v46 }
  0xf5   : > { %754 = vmatpush.msra.mxu0 %v6916_v7  ;;  %803 = vmatpush.msra.mxu1 %v802_v31  ;;  %v11216_v20 = vand.u32 4294901760, %v7001_v47  ;;  %v7032_v21 = vsub.f32 %v481_v36, %v6997_v45  ;;  %v11218_v23 = vand.u32 4294901760, %v7008_v53  ;;  %v7038_v24 = vsub.f32 %v539_v41, %v7010_v54  ;;  %v531_v41 = vld [vmem:[%s6853_s17 + $0x1b0] sm:$0xff] }
  0xf6   : > { %901 = vmatpush.msra.mxu2 %v6923_v11  ;;  %950 = vmatpush.msra.mxu3 %v6916_v7  ;;  %11418 = vst [vmem:[#allocation18_spill] sm:$0xff] %v7021_v12  ;;  %v832_v29 = vand.u32 4294901760, %v831_v59  ;;  %v843_v30 = vsub.f32 %v6987_v40, %v11217_v8  ;;  %v7046_v31 = vsub.f32 %v479_v43, %v7016_v3  ;;  %v7048_v36 = vand.u32 4294901760, %v535_v14  ;;  %v529_v59 = vld [vmem:[%s6853_s17 + $0x1a0] sm:$0xff] }
  0xf7   : > { %756 = vmatpush.msra.mxu0 %v6936_v15  ;;  %809 = vmatpush.msra.mxu1 %v808_v37  ;;  %v7053_v37 = vsub.f32 %v477_v48, %v7021_v12  ;;  %v7056_v38 = vsub.f32 %v537_v52, %v7023_v13  ;;  %v849_v43 = vsub.f32 %v7001_v47, %v11216_v20  ;;  %v11224_v44 = vand.u32 4294901760, %v7032_v21 }
  0xf8   : > { %904 = vmatpush.msra.mxu2 %v6949_v22  ;;  %952 = vmatpush.msra.mxu3 %v6936_v15  ;;  %v855_v48 = vsub.f32 %v7008_v53, %v11218_v23  ;;  %v11226_v52 = vand.u32 4294901760, %v7038_v24  ;;  %v7076_v20 = vsub.f32 %v535_v14, %v7048_v36  ;;  %v7078_v8 = vand.u32 4294901760, %v531_v41 }
  0xf9   : > { %758 = vmatpush.msra.mxu0 %v6939_v16  ;;  %815 = vmatpush.msra.mxu1 %v814_v42  ;;  %v838_v42 = vand.u32 4294901760, %v837_v19  ;;  %v11227_v19 = vand.u32 4294901760, %v7046_v31  ;;  %v11232_v23 = vand.u32 4294901760, %v7053_v37  ;;  %v11230_v46 = vand.u32 4294901760, %v7056_v38 }
  0xfa   : > { %907 = vmatpush.msra.mxu2 %v6961_v28  ;;  %954 = vmatpush.msra.mxu3 %v6939_v16  ;;  %v861_v14 = vsub.f32 %v7032_v21, %v11224_v44  ;;  %v7092_v33 = vand.u32 4294901760, %v529_v59  ;;  %v856_v17 = vand.u32 4294901760, %v855_v48  ;;  %v7106_v44 = vsub.f32 %v531_v41, %v7078_v8  ;;  %v523_v48 = vld [vmem:[%s6853_s17 + $0x170] sm:$0xff] }
  0xfb   : > { %760 = vmatpush.msra.mxu0 %v6957_v26  ;;  %821 = vmatpush.msra.mxu1 %v820_v58  ;;  %v7064_v58 = vand.u32 4294901760, %v533_v25  ;;  %v7108_v10 = vand.u32 4294901760, %v527_v39  ;;  %v873_v41 = vsub.f32 %v7053_v37, %v11232_v23  ;;  %v7129_v5 = vand.u32 4294901760, %v523_v48 }
  0xfc   : > { %910 = vmatpush.msra.mxu2 %v6974_v34  ;;  %956 = vmatpush.msra.mxu3 %v6957_v26  ;;  %v7124_v6 = vsub.f32 %v529_v59, %v7092_v33 }
  0xfd   : > { %762 = vmatpush.msra.mxu0 %v6970_v32  ;;  %827 = vmatpush.msra.mxu1 %v826_v18  ;;  %v844_v18 = vand.u32 4294901760, %v843_v30  ;;  %v7090_v30 = vsub.f32 %v533_v25, %v7064_v58  ;;  %v867_v25 = vsub.f32 %v7046_v31, %v11227_v19  ;;  %v862_v19 = vand.u32 4294901760, %v861_v14 }
  0xfe   : > { %913 = vmatpush.msra.mxu2 %v6987_v40  ;;  %958 = vmatpush.msra.mxu3 %v6970_v32  ;;  %v7138_v60 = vsub.f32 %v527_v39, %v7108_v10 }
  0xff   : > { %764 = vmatpush.msra.mxu0 %v6978_v35  ;;  %833 = vmatpush.msra.mxu1 %v832_v29  ;;  %v850_v29 = vand.u32 4294901760, %v849_v43  ;;  %v11233_v43 = vand.u32 4294901760, %v7076_v20  ;;  %v11234_v9 = vand.u32 4294901760, %v7090_v30  ;;  %v868_v14 = vand.u32 4294901760, %v867_v25  ;;  %v519_v25 = vld [vmem:[%s6853_s17 + $0x150] sm:$0xff] }
 0x100   : > { %916 = vmatpush.msra.mxu2 %v7001_v47  ;;  %960 = vmatpush.msra.mxu3 %v6978_v35 }
 0x101   : > { %766 = vmatpush.msra.mxu0 %v6997_v45  ;;  %839 = vmatpush.msra.mxu1 %v838_v42  ;;  %v1124_v42 = vsub.f32 %v7038_v24, %v11226_v52  ;;  %v7116_v52 = vand.u32 4294901760, %v525_v27  ;;  %v1136_v23 = vsub.f32 %v7076_v20, %v11233_v43  ;;  %v874_v43 = vand.u32 4294901760, %v873_v41 }
 0x102   : > { %919 = vmatpush.msra.mxu2 %v7008_v53  ;;  %962 = vmatpush.msra.mxu3 %v6997_v45  ;;  %v1142_v59 = vsub.f32 %v7090_v30, %v11234_v9  ;;  %v11421_v41 = vand.u32 4294901760, %v7106_v44 }
 0x103   : > { %768 = vmatpush.msra.mxu0 %v7016_v3  ;;  %845 = vmatpush.msra.mxu1 %v844_v18  ;;  %v1130_v18 = vsub.f32 %v7056_v38, %v11230_v46  ;;  %v1125_v46 = vand.u32 4294901760, %v1124_v42 }
 0x104   : > { %922 = vmatpush.msra.mxu2 %v7032_v21  ;;  %964 = vmatpush.msra.mxu3 %v7016_v3  ;;  %v1148_v9 = vsub.f32 %v7106_v44, %v11421_v41 }
 0x105   : > { %770 = vmatpush.msra.mxu0 %v7021_v12  ;;  %851 = vmatpush.msra.mxu1 %v850_v29  ;;  %v521_v29 = vld [vmem:[%s6853_s17 + $0x160] sm:$0xff]  ;;  %v1131_v42 = vand.u32 4294901760, %v1130_v18  ;;  %v1137_v18 = vand.u32 4294901760, %v1136_v23  ;;  %v11423_v23 = vand.u32 4294901760, %v7124_v6 }
 0x106   : > { %925 = vmatpush.msra.mxu2 %v7046_v31  ;;  %966 = vmatpush.msra.mxu3 %v7021_v12  ;;  %v7165_v12 = vand.u32 4294901760, %v519_v25 }
 0x107   : > { %977 = vmatpush.msrb.mxu0 %v782_v4  ;;  %857 = vmatpush.msra.mxu1 %v856_v17  ;;  %v11419_v4 = vand.u32 4294901760, %v6893_v61  ;;  %v7144_v17 = vsub.f32 %v525_v27, %v7116_v52  ;;  %v7152_v61 = vand.u32 4294901760, %v521_v29  ;;  %v7157_v27 = vsub.f32 %v523_v48, %v7129_v5  ;;  %v515_v48 = vld [vmem:[%s6853_s17 + $0x130] sm:$0xff] }
 0x108   : > { %928 = vmatpush.msra.mxu2 %v7053_v37  ;;  %1126 = vmatpush.msrb.mxu3 %v1125_v46  ;;  %v7191_v46 = vand.u32 4294901760, %v515_v48 }
 0x109   : > { %981 = vmatpush.msrb.mxu0 %v11419_v4  ;;  %863 = vmatpush.msra.mxu1 %v862_v19  ;;  %v11420_v4 = vand.u32 4294901760, %v6897_v62  ;;  %v517_v19 = vld [vmem:[%s6853_s17 + $0x140] sm:$0xff]  ;;  %v11422_v62 = vand.u32 4294901760, %v6902_v0  ;;  %v7176_v41 = vsub.f32 %v521_v29, %v7152_v61  ;;  %v11424_v0 = vand.u32 4294901760, %v6905_v1 }
 0x10a   : > { %1081 = vmatpush.msrb.mxu2 %v7010_v54  ;;  %1132 = vmatpush.msrb.mxu3 %v1131_v42  ;;  %v7178_v39 = vand.u32 4294901760, %v517_v19  ;;  %v469_v42 = vld [vmem:[#allocation2 + $0x30] sm:$0xff]  ;;  %v7189_v29 = vsub.f32 %v519_v25, %v7165_v12  ;;  %v11426_v1 = vand.u32 4294901760, %v6908_v2  ;;  %v11429_v2 = vand.u32 4294901760, %v6923_v11 }
 0x10b   : > { %985 = vmatpush.msrb.mxu0 %v11420_v4  ;;  %869 = vmatpush.msra.mxu1 %v868_v14  ;;  %v1143_v14 = vand.u32 4294901760, %v1142_v59  ;;  %v1154_v4 = vsub.f32 %v7124_v6, %v11423_v23  ;;  %v1149_v59 = vand.u32 4294901760, %v1148_v9  ;;  %v513_v9 = vld [vmem:[%s6853_s17 + $0x120] sm:$0xff]  ;;  %v11431_v11 = vand.u32 4294901760, %v6949_v22 }
 0x10c   : > { %1083 = vmatpush.msrb.mxu2 %v7023_v13  ;;  %1138 = vmatpush.msrb.mxu3 %v1137_v18  ;;  %v7203_v25 = vsub.f32 %v517_v19, %v7178_v39  ;;  %v7216_v19 = vand.u32 4294901760, %v513_v9  ;;  %v11434_v22 = vand.u32 4294901760, %v6961_v28  ;;  %v11436_v28 = vand.u32 4294901760, %v6974_v34 }
 0x10d   : > { %989 = vmatpush.msrb.mxu0 %v11422_v62  ;;  %875 = vmatpush.msra.mxu1 %v874_v43  ;;  %v11425_v62 = vand.u32 4294901760, %v7138_v60  ;;  %v7205_v43 = vand.u32 4294901760, %v469_v42 }
 0x10e   : > { %1085 = vmatpush.msrb.mxu2 %v7048_v36  ;;  %1144 = vmatpush.msrb.mxu3 %v1143_v14 }
 0x10f   : > { %993 = vmatpush.msrb.mxu0 %v11424_v0  ;;  %1044 = vmatpush.msrb.mxu1 %v6871_v49  ;;  %v1160_v23 = vsub.f32 %v7138_v60, %v11425_v62  ;;  %v11427_v49 = vand.u32 4294901760, %v7144_v17  ;;  %v1155_v0 = vand.u32 4294901760, %v1154_v4  ;;  %11428 = vst [vmem:[#allocation19_spill] sm:$0xff] %v7205_v43  ;;  %v7219_v62 = vsub.f32 %v515_v48, %v7191_v46 }
 0x110   : > { %1087 = vmatpush.msrb.mxu2 %v7064_v58  ;;  %1150 = vmatpush.msrb.mxu3 %v1149_v59  ;;  %v11432_v59 = vand.u32 4294901760, %v7176_v41  ;;  %v7231_v4 = vsub.f32 %v469_v42, %v7205_v43  ;;  %v7244_v42 = vsub.f32 %v513_v9, %v7216_v19 }
 0x111   : > { %997 = vmatpush.msrb.mxu0 %v11426_v1  ;;  %1046 = vmatpush.msrb.mxu1 %v6873_v50  ;;  %v1166_v18 = vsub.f32 %v7144_v17, %v11427_v49  ;;  %v11430_v50 = vand.u32 4294901760, %v7157_v27  ;;  %v511_v49 = vld [vmem:[%s6853_s17 + $0x110] sm:$0xff]  ;;  %v1161_v14 = vand.u32 4294901760, %v1160_v23 }
 0x112   : > { %1089 = vmatpush.msrb.mxu2 %v7078_v8  ;;  %1156 = vmatpush.msrb.mxu3 %v1155_v0  ;;  %v1178_v23 = vsub.f32 %v7176_v41, %v11432_v59  ;;  %11433 = vst [vmem:[#allocation20_spill] sm:$0xff] %v7231_v4  ;;  %v7233_v48 = vand.u32 4294901760, %v511_v49 }
 0x113   : > { %1001 = vmatpush.msrb.mxu0 %v11429_v2  ;;  %1048 = vmatpush.msrb.mxu1 %v6875_v51  ;;  %v1172_v1 = vsub.f32 %v7157_v27, %v11430_v50  ;;  %v1167_v51 = vand.u32 4294901760, %v1166_v18  ;;  %v509_v2 = vld [vmem:[%s6853_s17 + $0x100] sm:$0xff]  ;;  %v1189_v50 = vand.u32 4294901760, %v7203_v25  ;;  %v11435_v18 = vand.u32 4294901760, %v7189_v29 }
 0x114   : > { %1091 = vmatpush.msrb.mxu2 %v7092_v33  ;;  %1162 = vmatpush.msrb.mxu3 %v1161_v14  ;;  %v7246_v59 = vand.u32 4294901760, %v509_v2  ;;  %v7256_v14 = vand.u32 4294901760, %v7231_v4  ;;  %v7259_v9 = vsub.f32 %v511_v49, %v7233_v48  ;;  %v11439_v49 = vand.u32 4294901760, %v7001_v47 }
 0x115   : > { %1005 = vmatpush.msrb.mxu0 %v11431_v11  ;;  %1050 = vmatpush.msrb.mxu1 %v6880_v55  ;;  %v1173_v55 = vand.u32 4294901760, %v1172_v1  ;;  %v1184_v0 = vsub.f32 %v7189_v29, %v11435_v18  ;;  %v1195_v11 = vand.u32 4294901760, %v7219_v62  ;;  %v1190_v1 = vsub.f32 %v7203_v25, %v1189_v50 }
 0x116   : > { %1093 = vmatpush.msrb.mxu2 %v7108_v10  ;;  %1168 = vmatpush.msrb.mxu3 %v1167_v51  ;;  %11437 = vst [vmem:[#allocation21_spill] sm:$0xff] %v7256_v14  ;;  %v1201_v51 = vand.u32 4294901760, %v7244_v42  ;;  %v1207_v18 = vand.u32 4294901760, %v7259_v9 }
 0x117   : > { %1009 = vmatpush.msrb.mxu0 %v11434_v22  ;;  %1052 = vmatpush.msrb.mxu1 %v6882_v56  ;;  %v1179_v56 = vand.u32 4294901760, %v1178_v23  ;;  %v11438_v22 = vand.u32 4294901760, %v6987_v40  ;;  %v1196_v34 = vsub.f32 %v7219_v62, %v1195_v11  ;;  %v7270_v23 = vsub.f32 %v509_v2, %v7246_v59  ;;  %v470_v40 = vld [vmem:[#allocation2] sm:$0xff] }
 0x118   : > { %1095 = vmatpush.msrb.mxu2 %v7116_v52  ;;  %1174 = vmatpush.msrb.mxu3 %v1173_v55  ;;  %v774_v55 = vsub.f32 %v7231_v4, %v7256_v14 }
 0x119   : > { %1013 = vmatpush.msrb.mxu0 %v11436_v28  ;;  %1054 = vmatpush.msrb.mxu1 %v6884_v57  ;;  %v1185_v57 = vand.u32 4294901760, %v1184_v0  ;;  %v11440_v0 = vand.u32 4294901760, %v7008_v53  ;;  %v1197_v47 = vand.u32 4294901760, %v1196_v34  ;;  %v1213_v2 = vand.u32 4294901760, %v7270_v23 }
 0x11a   : > { %1097 = vmatpush.msrb.mxu2 %v7129_v5  ;;  %1180 = vmatpush.msrb.mxu3 %v1179_v56  ;;  %v7287_v28 = vand.u32 4294901760, %v470_v40  ;;  %v11442_v56 = vand.u32 4294901760, %v7032_v21  ;;  %v1208_v53 = vsub.f32 %v7259_v9, %v1207_v18 }
 0x11b   : > { %1017 = vmatpush.msrb.mxu0 %v11438_v22  ;;  %1056 = vmatpush.msrb.mxu1 %v6899_v63  ;;  %v1191_v63 = vand.u32 4294901760, %v1190_v1  ;;  %v11444_v1 = vand.u32 4294901760, %v7046_v31 }
 0x11c   : > { %1099 = vmatpush.msrb.mxu2 %v7152_v61  ;;  %1186 = vmatpush.msrb.mxu3 %v1185_v57  ;;  %11441 = vst [vmem:[#allocation22_spill] sm:$0xff] %v7287_v28  ;;  %v7306_v22 = vsub.f32 %v470_v40, %v7287_v28  ;;  %v11446_v57 = vand.u32 4294901760, %v7053_v37  ;;  %v11450_v37 = vld [vmem:[#allocation18_spill] sm:$0xff] }
 0x11d   : > { %1021 = vmatpush.msrb.mxu0 %v11439_v49  ;;  %1058 = vmatpush.msrb.mxu1 %v6916_v7  ;;  %v1202_v7 = vsub.f32 %v7244_v42, %v1201_v51 }
 0x11e   : > { %1101 = vmatpush.msrb.mxu2 %v7165_v12  ;;  %1192 = vmatpush.msrb.mxu3 %v1191_v63  ;;  %11445 = vst [vmem:[#allocation24_spill] sm:$0xff] %v7306_v22  ;;  %v7317_v34 = vand.u32 4294901760, %v7306_v22  ;;  %v555_v63 = vld [vmem:[%s6853_s17 + $0x270] sm:$0xff] }
 0x11f   : > { %1025 = vmatpush.msrb.mxu0 %v11440_v0  ;;  %1060 = vmatpush.msrb.mxu1 %v6936_v15  ;;  %v7293_v15 = vand.u32 4294901760, %v774_v55  ;;  %v1203_v21 = vand.u32 4294901760, %v1202_v7 }
 0x120   : > { %1103 = vmatpush.msrb.mxu2 %v7178_v39  ;;  %1198 = vmatpush.msrb.mxu3 %v1197_v47  ;;  %11447 = vst [vmem:[#allocation25_spill] sm:$0xff] %v7317_v34  ;;  %v553_v47 = vld [vmem:[%s6853_s17 + $0x260] sm:$0xff] }
 0x121   : > { %1029 = vmatpush.msrb.mxu0 %v11442_v56  ;;  %1062 = vmatpush.msrb.mxu1 %v6939_v16  ;;  %11443 = vst [vmem:[#allocation23_spill] sm:$0xff] %v7293_v15  ;;  %v1214_v16 = vsub.f32 %v7270_v23, %v1213_v2  ;;  %v7477_v56 = vand.u32 4294901760, %v555_v63 }
 0x122   : > { %1105 = vmatpush.msrb.mxu2 %v7191_v46  ;;  %776 = vmatmul.f32.vlgmr.msra.gmra.mxu0 %v7293_v15  ;;  %v579_v15 = vld [vmem:[%s6853_s17 + $0x330] sm:$0xff] }
 0x123   : > { %1033 = vmatpush.msrb.mxu0 %v11444_v1  ;;  %1064 = vmatpush.msrb.mxu1 %v6957_v26  ;;  %v1209_v26 = vand.u32 4294901760, %v1208_v53  ;;  %v1215_v31 = vand.u32 4294901760, %v1214_v16  ;;  %v551_v1 = vld [vmem:[%s6853_s17 + $0x250] sm:$0xff] }
 0x124   : > { %1107 = vmatpush.msrb.mxu2 %v7216_v19  ;;  %1204 = vmatpush.msrb.mxu3 %v1203_v21 }
 0x125   : > { %1037 = vmatpush.msrb.mxu0 %v11446_v57  ;;  %1066 = vmatpush.msrb.mxu1 %v6970_v32  ;;  %v11448_v32 = vand.u32 4294901760, %v7038_v24  ;;  %v7491_v57 = vand.u32 4294901760, %v553_v47 }
 0x126   : > { %1109 = vmatpush.msrb.mxu2 %v7233_v48  ;;  %1210 = vmatpush.msrb.mxu3 %v1209_v26 }
 0x127   : > { %1224 = vmatpush.msra.mxu0 %v7038_v24  ;;  %1068 = vmatpush.msrb.mxu1 %v6978_v35  ;;  %v1115_v35 = vsub.f32 %v7306_v22, %v7317_v34 }
 0x128   : > { %1111 = vmatpush.msrb.mxu2 %v7246_v59  ;;  %1216 = vmatpush.msrb.mxu3 %v1215_v31  ;;  %v549_v31 = vld [vmem:[%s6853_s17 + $0x240] sm:$0xff] }
 0x129   : > { %1227 = vmatpush.msra.mxu0 %v7056_v38  ;;  %1070 = vmatpush.msrb.mxu1 %v6997_v45  ;;  %v11449_v45 = vand.u32 4294901760, %v7056_v38  ;;  %v7338_v24 = vand.u32 4294901760, %v1115_v35  ;;  %v11453_v38 = vand.u32 4294901760, %v7090_v30  ;;  %v7503_v35 = vand.u32 4294901760, %v551_v1 }
 0x12a   : > { %931 = vmatmul.f32.vlgmr.msra.gmra.mxu2 %v7231_v4  ;;  %970 = vmatmul.f32.vlgmr.msra.gmra.mxu3 %v7256_v14 }
 0x12b   : > { %1230 = vmatpush.msra.mxu0 %v7076_v20  ;;  %1318 = vmatpush.msra.mxu2 %v11448_v32  ;;  %11452 = vst [vmem:[#allocation18_spill] sm:$0xff] %v7338_v24 }
 0x12c   : > { %1072 = vmatpush.msrb.mxu1 %v7016_v3  ;;  %1385 = vmatpush.msra.mxu3 %v7010_v54  ;;  %v11451_v3 = vand.u32 4294901760, %v7076_v20  ;;  %v11454_v20 = vand.u32 4294901760, %v7106_v44 }
 0x12d   : > { %1233 = vmatpush.msra.mxu0 %v7090_v30  ;;  %1322 = vmatpush.msra.mxu2 %v11449_v45  ;;  %v11460_v30 = vand.u32 4294901760, %v7189_v29 }
 0x12e   : > { %1074 = vmatpush.msrb.mxu1 %v11450_v37  ;;  %1387 = vmatpush.msra.mxu3 %v7023_v13  ;;  %v7507_v37 = vsub.f32 %v555_v63, %v7477_v56 }
 0x12f   : > { %1236 = vmatpush.msra.mxu0 %v7106_v44  ;;  %877 = vmatmul.f32.vlgmr.msra.gmra.mxu1 %v7205_v43  ;;  %v11459_v44 = vand.u32 4294901760, %v7176_v41 }
 0x130   : > { %1326 = vmatpush.msra.mxu2 %v11451_v3  ;;  %1277 = vmatpush.msra.mxu1 %v7010_v54  ;;  %v11455_v54 = vand.u32 4294901760, %v7124_v6  ;;  %v471_v3 = vld [vmem:[#allocation2 + $0x18] sm:$0xff] }
 0x131   : > { %1239 = vmatpush.msra.mxu0 %v7124_v6  ;;  %1389 = vmatpush.msra.mxu3 %v7048_v36  ;;  %v11457_v6 = vand.u32 4294901760, %v7144_v17 }
 0x132   : > { %1330 = vmatpush.msra.mxu2 %v11453_v38  ;;  %1279 = vmatpush.msra.mxu1 %v7023_v13  ;;  %v11456_v13 = vand.u32 4294901760, %v7138_v60 }
 0x133   : > { %1117 = vmatmul.f32.vlgmr.msrb.gmra.mxu2 %v7338_v24  ;;  %1242 = vmatpush.msra.mxu0 %v7138_v60  ;;  %v565_v60 = vld [vmem:[%s6853_s17 + $0x2c0] sm:$0xff] }
 0x134   : > { %1281 = vmatpush.msra.mxu1 %v7048_v36  ;;  %1334 = vmatpush.msra.mxu2 %v11454_v20  ;;  %v11458_v36 = vand.u32 4294901760, %v7157_v27  ;;  %v547_v20 = vld [vmem:[%s6853_s17 + $0x230] sm:$0xff] }
 0x135   : > { %1391 = vmatpush.msra.mxu3 %v7064_v58  ;;  %1039 = vmatmul.f32.vlgmr.msrb.gmra.mxu0 %v7205_v43 }
 0x136   : > { %1218 = vmatmul.f32.vlgmr.msrb.gmra.mxu3 %v7287_v28  ;;  %1245 = vmatpush.msra.mxu0 %v7144_v17 }
 0x137   : > { %1283 = vmatpush.msra.mxu1 %v7064_v58  ;;  %1338 = vmatpush.msra.mxu2 %v11455_v54 }
 0x138   : > { %1393 = vmatpush.msra.mxu3 %v7078_v8  ;;  %1076 = vmatmul.f32.vlgmr.msrb.gmra.mxu1 %v7205_v43  ;;  %v587_v43 = vld [vmem:[%s6853_s17 + $0x370] sm:$0xff] }
 0x139   : > { %1248 = vmatpush.msra.mxu0 %v7157_v27  ;;  %1285 = vmatpush.msra.mxu1 %v7078_v8  ;;  %v571_v8 = vld [vmem:[%s6853_s17 + $0x2f0] sm:$0xff]  ;;  %v7705_v4 = vand.u32 4294901760, %v587_v43 }
 0x13a   : > { %1342 = vmatpush.msra.mxu2 %v11456_v13  ;;  %1395 = vmatpush.msra.mxu3 %v7092_v33  ;;  %v7383_v58 = vand.u32 4294901760, %v571_v8  ;;  %v563_v27 = vld [vmem:[%s6853_s17 + $0x2b0] sm:$0xff]  ;;  %v7516_v13 = vand.u32 4294901760, %v549_v31 }
 0x13b   : > { %1251 = vmatpush.msra.mxu0 %v7176_v41  ;;  %1287 = vmatpush.msra.mxu1 %v7092_v33  ;;  %v569_v33 = vld [vmem:[%s6853_s17 + $0x2e0] sm:$0xff] }
 0x13c   : > { %1346 = vmatpush.msra.mxu2 %v11457_v6  ;;  %1397 = vmatpush.msra.mxu3 %v7108_v10  ;;  %v7402_v17 = vsub.f32 %v571_v8, %v7383_v58  ;;  %v7520_v8 = vsub.f32 %v553_v47, %v7491_v57  ;;  %v7547_v63 = vsub.f32 %v549_v31, %v7516_v13  ;;  %v541_v31 = vld [vmem:[%s6853_s17 + $0x200] sm:$0xff] }
 0x13d   : > { %1254 = vmatpush.msra.mxu0 %v7189_v29  ;;  %1289 = vmatpush.msra.mxu1 %v7108_v10  ;;  %v567_v10 = vld [vmem:[%s6853_s17 + $0x2d0] sm:$0xff]  ;;  %v561_v29 = vld [vmem:[%s6853_s17 + $0x2a0] sm:$0xff] }
 0x13e   : > { %1350 = vmatpush.msra.mxu2 %v11458_v36  ;;  %1399 = vmatpush.msra.mxu3 %v7116_v52 }
 0x13f   : > { %1257 = vmatpush.msra.mxu0 %v7203_v25  ;;  %1291 = vmatpush.msra.mxu1 %v7116_v52  ;;  %v7391_v52 = vand.u32 4294901760, %v569_v33  ;;  %v7418_v25 = vand.u32 4294901760, %v563_v27 }
 0x140   : > { %1354 = vmatpush.msra.mxu2 %v11459_v44  ;;  %1401 = vmatpush.msra.mxu3 %v7129_v5  ;;  %v7525_v44 = vand.u32 4294901760, %v471_v3 }
 0x141   : > { %1260 = vmatpush.msra.mxu0 %v7219_v62  ;;  %1293 = vmatpush.msra.mxu1 %v7129_v5  ;;  %v7399_v5 = vand.u32 4294901760, %v567_v10  ;;  %v7413_v41 = vsub.f32 %v569_v33, %v7391_v52  ;;  %v545_v33 = vld [vmem:[%s6853_s17 + $0x220] sm:$0xff] }
 0x142   : > { %1358 = vmatpush.msra.mxu2 %v11460_v30  ;;  %1403 = vmatpush.msra.mxu3 %v7152_v61  ;;  %11461 = vst [vmem:[#allocation26_spill] sm:$0xff] %v7525_v44  ;;  %v7531_v30 = vand.u32 4294901760, %v547_v20  ;;  %v7553_v47 = vsub.f32 %v471_v3, %v7525_v44 }
 0x143   : > { %1263 = vmatpush.msra.mxu0 %v7244_v42  ;;  %1295 = vmatpush.msra.mxu1 %v7152_v61  ;;  %v7410_v61 = vand.u32 4294901760, %v565_v60  ;;  %v7425_v62 = vsub.f32 %v567_v10, %v7399_v5 }
 0x144   : > { %1362 = vmatpush.msra.mxu2 %v1189_v50  ;;  %1405 = vmatpush.msra.mxu3 %v7165_v12  ;;  %v7429_v50 = vand.u32 4294901760, %v561_v29  ;;  %11462 = vst [vmem:[#allocation27_spill] sm:$0xff] %v7553_v47 }
 0x145   : > { %1266 = vmatpush.msra.mxu0 %v7259_v9  ;;  %1297 = vmatpush.msra.mxu1 %v7165_v12  ;;  %v11248_v12 = vand.u32 4294901760, %v7402_v17  ;;  %v7437_v42 = vsub.f32 %v565_v60, %v7410_v61  ;;  %v11245_v40 = vand.u32 4294901760, %v7425_v62  ;;  %v11237_v60 = vand.u32 4294901760, %v7507_v37 }
 0x146   : > { %1366 = vmatpush.msra.mxu2 %v1195_v11  ;;  %1407 = vmatpush.msra.mxu3 %v7178_v39  ;;  %v11247_v11 = vand.u32 4294901760, %v7413_v41 }
 0x147   : > { %1269 = vmatpush.msra.mxu0 %v7270_v23  ;;  %1299 = vmatpush.msra.mxu1 %v7178_v39  ;;  %v559_v39 = vld [vmem:[%s6853_s17 + $0x290] sm:$0xff]  ;;  %v1465_v9 = vsub.f32 %v7402_v17, %v11248_v12 }
 0x148   : > { %1370 = vmatpush.msra.mxu2 %v1201_v51  ;;  %1409 = vmatpush.msra.mxu3 %v7191_v46  ;;  %v557_v51 = vld [vmem:[%s6853_s17 + $0x280] sm:$0xff]  ;;  %v7451_v49 = vand.u32 4294901760, %v559_v39  ;;  %v1471_v23 = vsub.f32 %v7413_v41, %v11247_v11 }
 0x149   : > { %1272 = vmatmul.f32.vlgmr.msra.gmra.mxu0 %v7306_v22  ;;  %1301 = vmatpush.msra.mxu1 %v7191_v46  ;;  %v7442_v46 = vsub.f32 %v563_v27, %v7418_v25  ;;  %v7465_v55 = vand.u32 4294901760, %v557_v51  ;;  %v1466_v7 = vand.u32 4294901760, %v1465_v9  ;;  %v7535_v27 = vsub.f32 %v551_v1, %v7503_v35 }
 0x14a   : > { %1422 = vmatpush.msrb.mxu0 %v7383_v58  ;;  %1374 = vmatpush.msra.mxu2 %v1207_v18  ;;  %v11244_v18 = vand.u32 4294901760, %v7437_v42  ;;  %v7480_v53 = vsub.f32 %v559_v39, %v7451_v49  ;;  %v1472_v21 = vand.u32 4294901760, %v1471_v23  ;;  %v11236_v9 = vand.u32 4294901760, %v7520_v8  ;;  %v543_v23 = vld [vmem:[%s6853_s17 + $0x210] sm:$0xff] }
 0x14b   : > { %1411 = vmatpush.msra.mxu3 %v7216_v19  ;;  %1303 = vmatpush.msra.mxu1 %v7216_v19  ;;  %v7457_v19 = vsub.f32 %v561_v29, %v7429_v50  ;;  %v11243_v0 = vand.u32 4294901760, %v7442_v46  ;;  %v7494_v26 = vsub.f32 %v557_v51, %v7465_v55  ;;  %v7543_v51 = vand.u32 4294901760, %v545_v33 }
 0x14c   : > { %1424 = vmatpush.msrb.mxu0 %v7391_v52  ;;  %1378 = vmatpush.msra.mxu2 %v1213_v2  ;;  %v1477_v2 = vsub.f32 %v7425_v62, %v11245_v40  ;;  %v1483_v16 = vsub.f32 %v7437_v42, %v11244_v18  ;;  %v11240_v45 = vand.u32 4294901760, %v7480_v53  ;;  %v11238_v1 = vand.u32 4294901760, %v7535_v27  ;;  %v595_v40 = vld [vmem:[%s6853_s17 + $0x3b0] sm:$0xff] }
 0x14d   : > { %1413 = vmatpush.msra.mxu3 %v7233_v48  ;;  %1380 = vmatmul.f32.vlgmr.msra.gmra.mxu2 %v7287_v28  ;;  %v11239_v6 = vand.u32 4294901760, %v7494_v26  ;;  %v1519_v3 = vsub.f32 %v7520_v8, %v11236_v9 }
 0x14e   : > { %1426 = vmatpush.msrb.mxu0 %v7399_v5  ;;  %1565 = vmatpush.msrb.mxu2 %v7402_v17  ;;  %v1478_v32 = vand.u32 4294901760, %v1477_v2  ;;  %v1484_v54 = vand.u32 4294901760, %v1483_v16  ;;  %v1501_v10 = vsub.f32 %v7480_v53, %v11240_v45  ;;  %v1513_v2 = vsub.f32 %v7507_v37, %v11237_v60  ;;  %v603_v16 = vld [vmem:[%s6853_s17 + $0x3f0] sm:$0xff] }
 0x14f   : > { %1305 = vmatpush.msra.mxu1 %v7233_v48  ;;  %1415 = vmatpush.msra.mxu3 %v7246_v59  ;;  %v11241_v48 = vand.u32 4294901760, %v7457_v19  ;;  %v1507_v39 = vsub.f32 %v7494_v26, %v11239_v6 }
 0x150   : > { %1417 = vmatmul.f32.vlgmr.msra.gmra.mxu3 %v7287_v28  ;;  %1428 = vmatpush.msrb.mxu0 %v7410_v61  ;;  %v11467_v28 = vand.u32 4294901760, %v7402_v17 }
 0x151   : > { %1568 = vmatpush.msrb.mxu2 %v7413_v41  ;;  %1618 = vmatpush.msrb.mxu3 %v7383_v58  ;;  %v1495_v38 = vsub.f32 %v7457_v19, %v11241_v48  ;;  %v597_v48 = vld [vmem:[%s6853_s17 + $0x3c0] sm:$0xff] }
 0x152   : > { %1307 = vmatpush.msra.mxu1 %v7246_v59  ;;  %1430 = vmatpush.msrb.mxu0 %v7418_v25  ;;  %v1489_v59 = vsub.f32 %v7442_v46, %v11243_v0 }
 0x153   : > { %1311 = vmatmul.f32.vlgmr.msra.gmra.mxu1 %v7317_v34  ;;  %1571 = vmatpush.msrb.mxu2 %v7425_v62  ;;  %v1496_v29 = vand.u32 4294901760, %v1495_v38  ;;  %v11242_v38 = vand.u32 4294901760, %v7547_v63 }
 0x154   : > { %1467 = vmatpush.msrb.mxu1 %v1466_v7  ;;  %1620 = vmatpush.msrb.mxu3 %v7391_v52  ;;  %v1490_v36 = vand.u32 4294901760, %v1489_v59  ;;  %v1502_v7 = vand.u32 4294901760, %v1501_v10  ;;  %v7566_v59 = vand.u32 4294901760, %v543_v23  ;;  %v601_v10 = vld [vmem:[%s6853_s17 + $0x3e0] sm:$0xff] }
 0x155   : > { %1432 = vmatpush.msrb.mxu0 %v7429_v50  ;;  %1574 = vmatpush.msrb.mxu2 %v7437_v42  ;;  %v7603_v45 = vand.u32 4294901760, %v601_v10 }
 0x156   : > { %1473 = vmatpush.msrb.mxu1 %v1472_v21  ;;  %1622 = vmatpush.msrb.mxu3 %v7399_v5  ;;  %v7561_v21 = vsub.f32 %v547_v20, %v7531_v30  ;;  %v7575_v20 = vsub.f32 %v545_v33, %v7543_v51  ;;  %v1525_v33 = vsub.f32 %v7535_v27, %v11238_v1 }
 0x157   : > { %1434 = vmatpush.msrb.mxu0 %v7451_v49  ;;  %1577 = vmatpush.msrb.mxu2 %v7442_v46  ;;  %v7595_v60 = vsub.f32 %v543_v23, %v7566_v59  ;;  %v1531_v1 = vsub.f32 %v7547_v63, %v11242_v38 }
 0x158   : > { %1479 = vmatpush.msrb.mxu1 %v1478_v32  ;;  %1624 = vmatpush.msrb.mxu3 %v7410_v61  ;;  %v1508_v32 = vand.u32 4294901760, %v1507_v39  ;;  %v7589_v39 = vand.u32 4294901760, %v541_v31  ;;  %v11246_v9 = vand.u32 4294901760, %v7561_v21  ;;  %v11249_v6 = vand.u32 4294901760, %v7575_v20 }
 0x159   : > { %1436 = vmatpush.msrb.mxu0 %v7465_v55  ;;  %1580 = vmatpush.msrb.mxu2 %v7457_v19 }
 0x15a   : > { %1485 = vmatpush.msrb.mxu1 %v1484_v54  ;;  %1626 = vmatpush.msrb.mxu3 %v7418_v25  ;;  %v7580_v54 = vand.u32 4294901760, %v7553_v47  ;;  %v1537_v38 = vsub.f32 %v7561_v21, %v11246_v9  ;;  %v7618_v0 = vsub.f32 %v541_v31, %v7589_v39  ;;  %v1543_v31 = vsub.f32 %v7575_v20, %v11249_v6 }
 0x15b   : > { %1438 = vmatpush.msrb.mxu0 %v7477_v56  ;;  %1583 = vmatpush.msrb.mxu2 %v7480_v53  ;;  %v7633_v9 = vsub.f32 %v601_v10, %v7603_v45 }
 0x15c   : > { %1491 = vmatpush.msrb.mxu1 %v1490_v36  ;;  %1628 = vmatpush.msrb.mxu3 %v7429_v50  ;;  %11463 = vst [vmem:[#allocation28_spill] sm:$0xff] %v7580_v54  ;;  %v7582_v36 = vand.u32 4294901760, %v603_v16  ;;  %v1456_v23 = vsub.f32 %v7553_v47, %v7580_v54 }
 0x15d   : > { %1440 = vmatpush.msrb.mxu0 %v7491_v57  ;;  %1586 = vmatpush.msrb.mxu2 %v7494_v26  ;;  %v11470_v17 = vand.u32 4294901760, %v7633_v9 }
 0x15e   : > { %1497 = vmatpush.msrb.mxu1 %v1496_v29  ;;  %1630 = vmatpush.msrb.mxu3 %v7451_v49  ;;  %v1514_v29 = vand.u32 4294901760, %v1513_v2  ;;  %v1520_v2 = vand.u32 4294901760, %v1519_v3  ;;  %v1526_v3 = vand.u32 4294901760, %v1525_v33  ;;  %v1532_v33 = vand.u32 4294901760, %v1531_v1 }
 0x15f   : > { %1442 = vmatpush.msrb.mxu0 %v7503_v35  ;;  %1589 = vmatpush.msrb.mxu2 %v7507_v37  ;;  %v7637_v11 = vand.u32 4294901760, %v1456_v23  ;;  %v1538_v1 = vand.u32 4294901760, %v1537_v38  ;;  %v11465_v23 = vand.u32 4294901760, %v7595_v60  ;;  %v1544_v38 = vand.u32 4294901760, %v1543_v31 }
 0x160   : > { %1503 = vmatpush.msrb.mxu1 %v1502_v7  ;;  %1632 = vmatpush.msrb.mxu3 %v7465_v55  ;;  %v599_v7 = vld [vmem:[%s6853_s17 + $0x3d0] sm:$0xff]  ;;  %v11468_v31 = vand.u32 4294901760, %v7618_v0 }
 0x161   : > { %1444 = vmatpush.msrb.mxu0 %v7516_v13  ;;  %1592 = vmatpush.msrb.mxu2 %v7520_v8  ;;  %v7620_v18 = vand.u32 4294901760, %v599_v7  ;;  %11464 = vst [vmem:[#allocation29_spill] sm:$0xff] %v7637_v11  ;;  %v1549_v12 = vsub.f32 %v7595_v60, %v11465_v23 }
 0x162   : > { %1509 = vmatpush.msrb.mxu1 %v1508_v32  ;;  %1634 = vmatpush.msrb.mxu3 %v7477_v56  ;;  %v7611_v32 = vsub.f32 %v603_v16, %v7582_v36  ;;  %v593_v16 = vld [vmem:[%s6853_s17 + $0x3a0] sm:$0xff]  ;;  %v1555_v6 = vsub.f32 %v7618_v0, %v11468_v31 }
 0x163   : > { %1446 = vmatpush.msrb.mxu0 %v7531_v30  ;;  %1595 = vmatpush.msrb.mxu2 %v7535_v27  ;;  %v7646_v10 = vsub.f32 %v599_v7, %v7620_v18  ;;  %v7659_v7 = vand.u32 4294901760, %v593_v16 }
 0x164   : > { %1515 = vmatpush.msrb.mxu1 %v1514_v29  ;;  %1636 = vmatpush.msrb.mxu3 %v7491_v57  ;;  %v7626_v29 = vand.u32 4294901760, %v597_v48  ;;  %v11466_v22 = vand.u32 4294901760, %v7611_v32 }
 0x165   : > { %1448 = vmatpush.msrb.mxu0 %v7543_v51  ;;  %1598 = vmatpush.msrb.mxu2 %v7547_v63  ;;  %v7688_v31 = vsub.f32 %v593_v16, %v7659_v7  ;;  %v11472_v16 = vand.u32 4294901760, %v7646_v10 }
 0x166   : > { %1521 = vmatpush.msrb.mxu1 %v1520_v2  ;;  %1638 = vmatpush.msrb.mxu3 %v7503_v35  ;;  %v7640_v2 = vand.u32 4294901760, %v595_v40  ;;  %v7654_v34 = vsub.f32 %v597_v48, %v7626_v29  ;;  %v1806_v23 = vsub.f32 %v7611_v32, %v11466_v22  ;;  %v1550_v22 = vand.u32 4294901760, %v1549_v12 }
 0x167   : > { %1450 = vmatpush.msrb.mxu0 %v7566_v59  ;;  %1601 = vmatpush.msrb.mxu2 %v7561_v21 }
 0x168   : > { %1527 = vmatpush.msrb.mxu1 %v1526_v3  ;;  %1640 = vmatpush.msrb.mxu3 %v7516_v13  ;;  %v591_v3 = vld [vmem:[%s6853_s17 + $0x390] sm:$0xff]  ;;  %v7667_v48 = vsub.f32 %v595_v40, %v7640_v2  ;;  %v1807_v12 = vand.u32 4294901760, %v1806_v23  ;;  %v11473_v23 = vand.u32 4294901760, %v7654_v34 }
 0x169   : > { %1452 = vmatpush.msrb.mxu0 %v7589_v39  ;;  %1604 = vmatpush.msrb.mxu2 %v7575_v20  ;;  %v7676_v24 = vand.u32 4294901760, %v591_v3 }
 0x16a   : > { %1533 = vmatpush.msrb.mxu1 %v1532_v33  ;;  %1642 = vmatpush.msrb.mxu3 %v7531_v30  ;;  %v589_v33 = vld [vmem:[%s6853_s17 + $0x380] sm:$0xff] }
 0x16b   : > { %1458 = vmatmul.f32.vlgmr.msrb.gmra.mxu0 %v7637_v11  ;;  %1607 = vmatpush.msrb.mxu2 %v7595_v60  ;;  %v7690_v11 = vand.u32 4294901760, %v589_v33  ;;  %v7703_v14 = vsub.f32 %v591_v3, %v7676_v24 }
 0x16c   : > { %1659 = vmatpush.msra.mxu0 %v11467_v28  ;;  %1539 = vmatpush.msrb.mxu1 %v1538_v1  ;;  %v11469_v28 = vand.u32 4294901760, %v7413_v41  ;;  %v1812_v1 = vsub.f32 %v7633_v9, %v11470_v17  ;;  %v585_v41 = vld [vmem:[%s6853_s17 + $0x360] sm:$0xff]  ;;  %v1818_v17 = vsub.f32 %v7646_v10, %v11472_v16 }
 0x16d   : > { %1644 = vmatpush.msrb.mxu3 %v7543_v51  ;;  %1610 = vmatpush.msrb.mxu2 %v7618_v0  ;;  %v7717_v3 = vsub.f32 %v589_v33, %v7690_v11  ;;  %v7730_v33 = vsub.f32 %v587_v43, %v7705_v4 }
 0x16e   : > { %1663 = vmatpush.msra.mxu0 %v11469_v28  ;;  %1545 = vmatpush.msrb.mxu1 %v1544_v38  ;;  %v11471_v38 = vand.u32 4294901760, %v7425_v62  ;;  %v1556_v28 = vand.u32 4294901760, %v1555_v6  ;;  %v1824_v62 = vsub.f32 %v7654_v34, %v11473_v23  ;;  %v11474_v6 = vand.u32 4294901760, %v7437_v42 }
 0x16f   : > { %1646 = vmatpush.msrb.mxu3 %v7566_v59  ;;  %1613 = vmatmul.f32.vlgmr.msrb.gmra.mxu2 %v7553_v47  ;;  %v1813_v16 = vand.u32 4294901760, %v1812_v1  ;;  %v11475_v23 = vand.u32 4294901760, %v7667_v48  ;;  %v11476_v42 = vand.u32 4294901760, %v7442_v46  ;;  %v1819_v1 = vand.u32 4294901760, %v1818_v17 }
 0x170   : > { %1667 = vmatpush.msra.mxu0 %v11471_v38  ;;  %1763 = vmatpush.msra.mxu2 %v7582_v36  ;;  %v583_v38 = vld [vmem:[%s6853_s17 + $0x350] sm:$0xff]  ;;  %v11477_v46 = vand.u32 4294901760, %v7688_v31  ;;  %v11264_v17 = vand.u32 4294901760, %v7717_v3 }
 0x171   : > { %1551 = vmatpush.msrb.mxu1 %v1550_v22  ;;  %1648 = vmatpush.msrb.mxu3 %v7589_v39  ;;  %v7719_v22 = vand.u32 4294901760, %v585_v41  ;;  %v1830_v47 = vsub.f32 %v7667_v48, %v11475_v23  ;;  %v7732_v40 = vand.u32 4294901760, %v583_v38 }
 0x172   : > { %1652 = vmatmul.f32.vlgmr.msrb.gmra.mxu3 %v7580_v54  ;;  %1671 = vmatpush.msra.mxu0 %v11474_v6  ;;  %v581_v54 = vld [vmem:[%s6853_s17 + $0x340] sm:$0xff]  ;;  %v11263_v6 = vand.u32 4294901760, %v7703_v14 }
 0x173   : > { %1765 = vmatpush.msra.mxu2 %v7603_v45  ;;  %1808 = vmatpush.msra.mxu3 %v1807_v12  ;;  %v1825_v12 = vand.u32 4294901760, %v1824_v62  ;;  %v7743_v43 = vsub.f32 %v585_v41, %v7719_v22  ;;  %v7745_v23 = vand.u32 4294901760, %v581_v54  ;;  %v1831_v62 = vand.u32 4294901760, %v1830_v47 }
 0x174   : > { %1557 = vmatpush.msrb.mxu1 %v1556_v28  ;;  %1675 = vmatpush.msra.mxu0 %v11476_v42  ;;  %v1836_v28 = vsub.f32 %v7688_v31, %v11477_v46  ;;  %v11478_v42 = vand.u32 4294901760, %v7457_v19  ;;  %v7756_v41 = vsub.f32 %v583_v38, %v7732_v40  ;;  %v7758_v46 = vand.u32 4294901760, %v579_v15  ;;  %v577_v19 = vld [vmem:[%s6853_s17 + $0x320] sm:$0xff] }
 0x175   : > { %1559 = vmatmul.f32.vlgmr.msrb.gmra.mxu1 %v7525_v44  ;;  %1767 = vmatpush.msra.mxu2 %v7620_v18  ;;  %v1848_v47 = vsub.f32 %v7717_v3, %v11264_v17  ;;  %v573_v38 = vld [vmem:[%s6853_s17 + $0x300] sm:$0xff] }
 0x176   : > { %1726 = vmatpush.msra.mxu1 %v7383_v58  ;;  %1814 = vmatpush.msra.mxu3 %v1813_v16  ;;  %v1842_v58 = vsub.f32 %v7703_v14, %v11263_v6  ;;  %v575_v6 = vld [vmem:[%s6853_s17 + $0x310] sm:$0xff]  ;;  %v472_v16 = vld [vmem:[#allocation2 + $0x10] sm:$0xff]  ;;  %v7784_v17 = vsub.f32 %v579_v15, %v7758_v46 }
 0x177   : > { %1679 = vmatpush.msra.mxu0 %v11478_v42  ;;  %1769 = vmatpush.msra.mxu2 %v7626_v29  ;;  %v11479_v42 = vand.u32 4294901760, %v7480_v53  ;;  %v11480_v53 = vand.u32 4294901760, %v7494_v26  ;;  %v11482_v26 = vand.u32 4294901760, %v7507_v37 }
 0x178   : > { %1728 = vmatpush.msra.mxu1 %v7391_v52  ;;  %1820 = vmatpush.msra.mxu3 %v1819_v1  ;;  %v1837_v52 = vand.u32 4294901760, %v1836_v28  ;;  %v7770_v1 = vsub.f32 %v581_v54, %v7745_v23  ;;  %v11481_v28 = vand.u32 4294901760, %v7730_v33  ;;  %v11485_v54 = vand.u32 4294901760, %v7520_v8 }
 0x179   : > { %1683 = vmatpush.msra.mxu0 %v11479_v42  ;;  %1771 = vmatpush.msra.mxu2 %v7640_v2  ;;  %v11487_v8 = vand.u32 4294901760, %v7535_v27 }
 0x17a   : > { %1730 = vmatpush.msra.mxu1 %v7399_v5  ;;  %1826 = vmatpush.msra.mxu3 %v1825_v12  ;;  %v7776_v5 = vand.u32 4294901760, %v577_v19  ;;  %v1843_v12 = vand.u32 4294901760, %v1842_v58  ;;  %v1854_v42 = vsub.f32 %v7730_v33, %v11481_v28  ;;  %v11484_v58 = vand.u32 4294901760, %v7743_v43 }
 0x17b   : > { %1687 = vmatpush.msra.mxu0 %v11480_v53  ;;  %1773 = vmatpush.msra.mxu2 %v7659_v7  ;;  %v7790_v53 = vand.u32 4294901760, %v575_v6  ;;  %v1871_v15 = vand.u32 4294901760, %v7770_v1 }
 0x17c   : > { %1732 = vmatpush.msra.mxu1 %v7410_v61  ;;  %1832 = vmatpush.msra.mxu3 %v1831_v62  ;;  %v7792_v61 = vand.u32 4294901760, %v472_v16  ;;  %v1849_v62 = vand.u32 4294901760, %v1848_v47  ;;  %v1860_v28 = vsub.f32 %v7743_v43, %v11484_v58  ;;  %v7803_v37 = vsub.f32 %v577_v19, %v7776_v5 }
 0x17d   : > { %1691 = vmatpush.msra.mxu0 %v11482_v26  ;;  %1775 = vmatpush.msra.mxu2 %v7676_v24  ;;  %v7805_v26 = vand.u32 4294901760, %v573_v38  ;;  %v1877_v58 = vand.u32 4294901760, %v7784_v17  ;;  %v7816_v19 = vsub.f32 %v575_v6, %v7790_v53 }
 0x17e   : > { %11483 = vst [vmem:[#allocation30_spill] sm:$0xff] %v7792_v61  ;;  %1734 = vmatpush.msra.mxu1 %v7418_v25  ;;  %1838 = vmatpush.msra.mxu3 %v1837_v52  ;;  %v1855_v25 = vand.u32 4294901760, %v1854_v42  ;;  %v11486_v52 = vand.u32 4294901760, %v7756_v41  ;;  %v11489_v42 = vand.u32 4294901760, %v7547_v63  ;;  %v1883_v27 = vand.u32 4294901760, %v7803_v37 }
 0x17f   : > { %1695 = vmatpush.msra.mxu0 %v11485_v54  ;;  %1777 = vmatpush.msra.mxu2 %v7690_v11  ;;  %v7819_v54 = vsub.f32 %v472_v16, %v7792_v61  ;;  %v7830_v6 = vsub.f32 %v573_v38, %v7805_v26  ;;  %v1878_v16 = vsub.f32 %v7784_v17, %v1877_v58  ;;  %v1889_v63 = vand.u32 4294901760, %v7816_v19 }
 0x180   : > { %1736 = vmatpush.msra.mxu1 %v7429_v50  ;;  %1844 = vmatpush.msra.mxu3 %v1843_v12  ;;  %v1866_v47 = vsub.f32 %v7756_v41, %v11486_v52  ;;  %v1861_v50 = vand.u32 4294901760, %v1860_v28  ;;  %v1872_v12 = vsub.f32 %v7770_v1, %v1871_v15  ;;  %v11492_v38 = vand.u32 4294901760, %v7575_v20 }
 0x181   : > { %1699 = vmatpush.msra.mxu0 %v11487_v8  ;;  %1779 = vmatpush.msra.mxu2 %v7705_v4  ;;  %11488 = vst [vmem:[#allocation31_spill] sm:$0xff] %v7819_v54  ;;  %v7841_v28 = vand.u32 4294901760, %v7819_v54  ;;  %v1879_v52 = vand.u32 4294901760, %v1878_v16  ;;  %v11494_v8 = vand.u32 4294901760, %v7618_v0  ;;  %v623_v16 = vld [vmem:[%s6853_s17 + $0x490] sm:$0xff] }
 0x182   : > { %1738 = vmatpush.msra.mxu1 %v7451_v49  ;;  %1850 = vmatpush.msra.mxu3 %v1849_v62  ;;  %v1867_v49 = vand.u32 4294901760, %v1866_v47  ;;  %v11490_v62 = vand.u32 4294901760, %v7561_v21  ;;  %v1884_v21 = vsub.f32 %v7803_v37, %v1883_v27  ;;  %v11493_v47 = vand.u32 4294901760, %v7595_v60 }
 0x183   : > { %1703 = vmatpush.msra.mxu0 %v11489_v42  ;;  %1781 = vmatpush.msra.mxu2 %v7719_v22  ;;  %11491 = vst [vmem:[#allocation32_spill] sm:$0xff] %v7841_v28  ;;  %v1797_v20 = vsub.f32 %v7819_v54, %v7841_v28 }
 0x184   : > { %1740 = vmatpush.msra.mxu1 %v7465_v55  ;;  %1856 = vmatpush.msra.mxu3 %v1855_v25  ;;  %v1873_v55 = vand.u32 4294901760, %v1872_v12  ;;  %v1895_v25 = vand.u32 4294901760, %v7830_v6 }
 0x185   : > { %1707 = vmatpush.msra.mxu0 %v11490_v62  ;;  %1783 = vmatpush.msra.mxu2 %v7732_v40 }
 0x186   : > { %1742 = vmatpush.msra.mxu1 %v7477_v56  ;;  %1862 = vmatpush.msra.mxu3 %v1861_v50  ;;  %v1890_v56 = vsub.f32 %v7816_v19, %v1889_v63  ;;  %v1896_v60 = vsub.f32 %v7830_v6, %v1895_v25 }
 0x187   : > { %1711 = vmatpush.msra.mxu0 %v11492_v38  ;;  %1785 = vmatpush.msra.mxu2 %v7745_v23  ;;  %v621_v38 = vld [vmem:[%s6853_s17 + $0x480] sm:$0xff] }
 0x188   : > { %1744 = vmatpush.msra.mxu1 %v7491_v57  ;;  %1868 = vmatpush.msra.mxu3 %v1867_v49  ;;  %v1885_v57 = vand.u32 4294901760, %v1884_v21  ;;  %v1891_v50 = vand.u32 4294901760, %v1890_v56  ;;  %v1897_v0 = vand.u32 4294901760, %v1896_v60  ;;  %v8002_v21 = vand.u32 4294901760, %v623_v16 }
 0x189   : > { %1715 = vmatpush.msra.mxu0 %v11493_v47  ;;  %1787 = vmatpush.msra.mxu2 %v7758_v46  ;;  %v619_v47 = vld [vmem:[%s6853_s17 + $0x470] sm:$0xff]  ;;  %v8015_v56 = vand.u32 4294901760, %v621_v38 }
 0x18a   : > { %1746 = vmatpush.msra.mxu1 %v7503_v35  ;;  %1874 = vmatpush.msra.mxu3 %v1873_v55  ;;  %v7870_v35 = vand.u32 4294901760, %v1797_v20 }
 0x18b   : > { %1719 = vmatpush.msra.mxu0 %v11494_v8  ;;  %1789 = vmatpush.msra.mxu2 %v7776_v5 }
 0x18c   : > { %1748 = vmatpush.msra.mxu1 %v7516_v13  ;;  %1880 = vmatpush.msra.mxu3 %v1879_v52  ;;  %11495 = vst [vmem:[#allocation33_spill] sm:$0xff] %v7870_v35  ;;  %v11496_v13 = vand.u32 4294901760, %v7611_v32 }
 0x18d   : > { %1721 = vmatmul.f32.vlgmr.msra.gmra.mxu0 %v7525_v44  ;;  %1791 = vmatpush.msra.mxu2 %v7790_v53 }
 0x18e   : > { %1906 = vmatpush.msrb.mxu0 %v7611_v32  ;;  %1750 = vmatpush.msra.mxu1 %v7531_v30  ;;  %v11497_v30 = vand.u32 4294901760, %v7633_v9  ;;  %v633_v32 = vld [vmem:[%s6853_s17 + $0x4e0] sm:$0xff] }
 0x18f   : > { %1886 = vmatpush.msra.mxu3 %v1885_v57  ;;  %1793 = vmatpush.msra.mxu2 %v7805_v26 }
 0x190   : > { %1909 = vmatpush.msrb.mxu0 %v7633_v9  ;;  %1752 = vmatpush.msra.mxu1 %v7543_v51  ;;  %v11498_v51 = vand.u32 4294901760, %v7646_v10  ;;  %v11499_v9 = vand.u32 4294901760, %v7654_v34 }
 0x191   : > { %1892 = vmatpush.msra.mxu3 %v1891_v50  ;;  %1799 = vmatmul.f32.vlgmr.msra.gmra.mxu2 %v7870_v35  ;;  %v617_v50 = vld [vmem:[%s6853_s17 + $0x460] sm:$0xff] }
 0x192   : > { %1912 = vmatpush.msrb.mxu0 %v7646_v10  ;;  %2000 = vmatpush.msrb.mxu2 %v11496_v13  ;;  %v8027_v13 = vand.u32 4294901760, %v619_v47 }
 0x193   : > { %1754 = vmatpush.msra.mxu1 %v7566_v59  ;;  %1898 = vmatpush.msra.mxu3 %v1897_v0  ;;  %v11500_v59 = vand.u32 4294901760, %v7667_v48 }
 0x194   : > { %1900 = vmatmul.f32.vlgmr.msra.gmra.mxu3 %v7792_v61  ;;  %1915 = vmatpush.msrb.mxu0 %v7654_v34  ;;  %v11501_v34 = vand.u32 4294901760, %v7688_v31 }
 0x195   : > { %2004 = vmatpush.msrb.mxu2 %v11497_v30  ;;  %2067 = vmatpush.msrb.mxu3 %v7582_v36 }
 0x196   : > { %1756 = vmatpush.msra.mxu1 %v7589_v39  ;;  %1918 = vmatpush.msrb.mxu0 %v7667_v48  ;;  %v635_v39 = vld [vmem:[%s6853_s17 + $0x4f0] sm:$0xff] }
 0x197   : > { %1758 = vmatmul.f32.vlgmr.msra.gmra.mxu1 %v7525_v44  ;;  %2008 = vmatpush.msrb.mxu2 %v11498_v51  ;;  %v7933_v10 = vand.u32 4294901760, %v635_v39 }
 0x198   : > { %1959 = vmatpush.msrb.mxu1 %v7582_v36  ;;  %2069 = vmatpush.msrb.mxu3 %v7603_v45  ;;  %v733_v36 = vld [vmem:[%s339_s20] sm:$0x3] }
 0x199   : > { %1921 = vmatpush.msrb.mxu0 %v7688_v31  ;;  %2012 = vmatpush.msrb.mxu2 %v11499_v9  ;;  %v7939_v31 = vand.u32 4294901760, %v633_v32 }
 0x19a   : > { %1961 = vmatpush.msrb.mxu1 %v7603_v45  ;;  %2071 = vmatpush.msrb.mxu3 %v7620_v18  ;;  %v11502_v45 = vand.u32 4294901760, %v7703_v14 }
 0x19b   : > { %1924 = vmatpush.msrb.mxu0 %v7703_v14  ;;  %2016 = vmatpush.msrb.mxu2 %v11500_v59  ;;  %v11504_v14 = vand.u32 4294901760, %v7730_v33 }
 0x19c   : > { %1963 = vmatpush.msrb.mxu1 %v7620_v18  ;;  %2073 = vmatpush.msrb.mxu3 %v7626_v29  ;;  %v11503_v18 = vand.u32 4294901760, %v7717_v3 }
 0x19d   : > { %1927 = vmatpush.msrb.mxu0 %v7717_v3  ;;  %2020 = vmatpush.msrb.mxu2 %v11501_v34  ;;  %v629_v3 = vld [vmem:[%s6853_s17 + $0x4c0] sm:$0xff]  ;;  %v615_v34 = vld [vmem:[%s6853_s17 + $0x450] sm:$0xff] }
 0x19e   : > { %1965 = vmatpush.msrb.mxu1 %v7626_v29  ;;  %2075 = vmatpush.msrb.mxu3 %v7640_v2  ;;  %v11505_v29 = vand.u32 4294901760, %v7743_v43 }
 0x19f   : > { %1930 = vmatpush.msrb.mxu0 %v7730_v33  ;;  %2024 = vmatpush.msrb.mxu2 %v11502_v45  ;;  %v777_v48 = vpop.f32.mrf.mxu0 }
 0x1a0   : > { %1967 = vmatpush.msrb.mxu1 %v7640_v2  ;;  %2077 = vmatpush.msrb.mxu3 %v7659_v7  ;;  %v735_v2 = vperm.slane %v733_v36, 0  ;;  %v8044_v36 = vsub.f32 %v621_v38, %v8015_v56 }
 0x1a1   : > { %1933 = vmatpush.msrb.mxu0 %v7743_v43  ;;  %2028 = vmatpush.msrb.mxu2 %v11503_v18  ;;  %v7952_v43 = vsub.f32 %v635_v39, %v7933_v10  ;;  %v8041_v18 = vand.u32 4294901760, %v617_v50 }
 0x1a2   : > { %1969 = vmatpush.msrb.mxu1 %v7659_v7  ;;  %2079 = vmatpush.msrb.mxu3 %v7676_v24  ;;  %v631_v7 = vld [vmem:[%s6853_s17 + $0x4d0] sm:$0xff]  ;;  %v778_v33 = vadd.f32 %v777_v48, %v735_v2  ;;  %v8053_v2 = vand.u32 4294901760, %v615_v34  ;;  %v8057_v48 = vsub.f32 %v619_v47, %v8027_v13 }
 0x1a3   : > { %1936 = vmatpush.msrb.mxu0 %v7756_v41  ;;  %2032 = vmatpush.msrb.mxu2 %v11504_v14 }
 0x1a4   : > { %1971 = vmatpush.msrb.mxu1 %v7676_v24  ;;  %2081 = vmatpush.msrb.mxu3 %v7690_v11  ;;  %v11506_v24 = vand.u32 4294901760, %v7756_v41  ;;  %v7959_v41 = vsub.f32 %v633_v32, %v7939_v31 }
 0x1a5   : > { %1939 = vmatpush.msrb.mxu0 %v7770_v1  ;;  %2036 = vmatpush.msrb.mxu2 %v11505_v29  ;;  %v7963_v1 = vand.u32 4294901760, %v629_v3  ;;  %v613_v29 = vld [vmem:[%s6853_s17 + $0x440] sm:$0xff] }
 0x1a6   : > { %1973 = vmatpush.msrb.mxu1 %v7690_v11  ;;  %2083 = vmatpush.msrb.mxu3 %v7705_v4  ;;  %v7946_v11 = vand.u32 4294901760, %v631_v7 }
 0x1a7   : > { %1942 = vmatpush.msrb.mxu0 %v7784_v17  ;;  %2040 = vmatpush.msrb.mxu2 %v11506_v24 }
 0x1a8   : > { %1975 = vmatpush.msrb.mxu1 %v7705_v4  ;;  %2085 = vmatpush.msrb.mxu3 %v7719_v22  ;;  %v627_v4 = vld [vmem:[%s6853_s17 + $0x4b0] sm:$0xff] }
 0x1a9   : > { %1945 = vmatpush.msrb.mxu0 %v7803_v37  ;;  %2044 = vmatpush.msrb.mxu2 %v1871_v15  ;;  %v625_v15 = vld [vmem:[%s6853_s17 + $0x4a0] sm:$0xff]  ;;  %v7969_v17 = vand.u32 4294901760, %v627_v4 }
 0x1aa   : > { %1977 = vmatpush.msrb.mxu1 %v7719_v22  ;;  %2087 = vmatpush.msrb.mxu3 %v7732_v40  ;;  %v7980_v37 = vand.u32 4294901760, %v625_v15 }
 0x1ab   : > { %1948 = vmatpush.msrb.mxu0 %v7816_v19  ;;  %2048 = vmatpush.msrb.mxu2 %v1877_v58  ;;  %v7972_v58 = vsub.f32 %v631_v7, %v7946_v11 }
 0x1ac   : > { %1979 = vmatpush.msrb.mxu1 %v7732_v40  ;;  %2089 = vmatpush.msrb.mxu3 %v7745_v23  ;;  %v878_v22 = vpop.f32.mrf.mxu1  ;;  %v11278_v40 = vand.u32 4294901760, %v7952_v43  ;;  %v8010_v52 = vsub.f32 %v625_v15, %v7980_v37  ;;  %v8068_v15 = vand.u32 4294901760, %v613_v29 }
 0x1ad   : > { %v932_v12 = vpop.f32.mrf.mxu2  ;;  %1951 = vmatpush.msrb.mxu0 %v7830_v6  ;;  %2052 = vmatpush.msrb.mxu2 %v1883_v27  ;;  %v879_v42 = vadd.f32 %v878_v22, %v778_v33  ;;  %v11276_v27 = vand.u32 4294901760, %v7959_v41  ;;  %v971_v62 = vpop.f32.mrf.mxu3  ;;  %v11275_v19 = vand.u32 4294901760, %v7972_v58 }
 0x1ae   : > { %1981 = vmatpush.msrb.mxu1 %v7745_v23  ;;  %2091 = vmatpush.msrb.mxu3 %v7758_v46  ;;  %v7987_v23 = vsub.f32 %v629_v3, %v7963_v1  ;;  %v11270_v59 = vand.u32 4294901760, %v8010_v52  ;;  %v473_v3 = vld [vmem:[#allocation2 + $0x8] sm:$0xff] }
 0x1af   : > { %1954 = vmatmul.f32.vlgmr.msrb.gmra.mxu0 %v7819_v54  ;;  %2056 = vmatpush.msrb.mxu2 %v1889_v63  ;;  %v933_v49 = vadd.f32 %v932_v12, %v879_v42  ;;  %v7994_v63 = vsub.f32 %v627_v4, %v7969_v17  ;;  %v2159_v8 = vsub.f32 %v7972_v58, %v11275_v19  ;;  %v611_v4 = vld [vmem:[%s6853_s17 + $0x430] sm:$0xff]  ;;  %v11268_v12 = vand.u32 4294901760, %v8044_v36 }
 0x1b0   : > { %2104 = vmatpush.msra.mxu0 %v7933_v10  ;;  %1983 = vmatpush.msrb.mxu1 %v7758_v46  ;;  %v2147_v46 = vsub.f32 %v7952_v43, %v11278_v40  ;;  %v11274_v20 = vand.u32 4294901760, %v7987_v23  ;;  %v2177_v33 = vsub.f32 %v8010_v52, %v11270_v59  ;;  %v8072_v42 = vsub.f32 %v617_v50, %v8041_v18  ;;  %v607_v50 = vld [vmem:[%s6853_s17 + $0x410] sm:$0xff]  ;;  %v661_v59 = vld [vmem:[%s6853_s17 + $0x5c0] sm:$0xff] }
 0x1b1   : > { %2093 = vmatpush.msrb.mxu3 %v7776_v5  ;;  %2060 = vmatpush.msrb.mxu2 %v1895_v25  ;;  %v972_v55 = vadd.f32 %v971_v62, %v933_v49  ;;  %v2153_v25 = vsub.f32 %v7959_v41, %v11276_v27  ;;  %v11272_v57 = vand.u32 4294901760, %v7994_v63  ;;  %v2160_v39 = vand.u32 4294901760, %v2159_v8  ;;  %v657_v27 = vld [vmem:[%s6853_s17 + $0x5a0] sm:$0xff] }
 0x1b2   : > { %2106 = vmatpush.msra.mxu0 %v7939_v31  ;;  %1985 = vmatpush.msrb.mxu1 %v7776_v5  ;;  %v1040_v6 = vpop.f32.mrf.mxu0  ;;  %v2148_v0 = vand.u32 4294901760, %v2147_v46  ;;  %v2165_v45 = vsub.f32 %v7987_v23, %v11274_v20  ;;  %v8077_v62 = vand.u32 4294901760, %v473_v3  ;;  %v8083_v38 = vand.u32 4294901760, %v611_v4 }
 0x1b3   : > { %2095 = vmatpush.msrb.mxu3 %v7790_v53  ;;  %2062 = vmatmul.f32.vlgmr.msrb.gmra.mxu2 %v7792_v61  ;;  %v1041_v5 = vadd.f32 %v1040_v6, %v972_v55  ;;  %v2154_v9 = vand.u32 4294901760, %v2153_v25  ;;  %v11267_v46 = vand.u32 4294901760, %v8057_v48  ;;  %v8087_v6 = vsub.f32 %v615_v34, %v8053_v2 }
 0x1b4   : > { %2108 = vmatpush.msra.mxu0 %v7946_v11  ;;  %2247 = vmatpush.msra.mxu2 %v7952_v43  ;;  %v2166_v22 = vand.u32 4294901760, %v2165_v45  ;;  %11507 = vst [vmem:[#allocation34_spill] sm:$0xff] %v8077_v62  ;;  %v2178_v25 = vand.u32 4294901760, %v2177_v33  ;;  %v11265_v8 = vand.u32 4294901760, %v8072_v42  ;;  %v8113_v34 = vsub.f32 %v611_v4, %v8083_v38  ;;  %v667_v45 = vld [vmem:[%s6853_s17 + $0x5f0] sm:$0xff] }
 0x1b5   : > { %1987 = vmatpush.msrb.mxu1 %v7790_v53  ;;  %2097 = vmatpush.msrb.mxu3 %v7805_v26  ;;  %v1077_v60 = vpop.f32.mrf.mxu1  ;;  %v8030_v53 = vsub.f32 %v623_v16, %v8002_v21  ;;  %v609_v16 = vld [vmem:[%s6853_s17 + $0x420] sm:$0xff]  ;;  %v8134_v4 = vand.u32 4294901760, %v667_v45 }
 0x1b6   : > { %2099 = vmatmul.f32.vlgmr.msrb.gmra.mxu3 %v7792_v61  ;;  %2110 = vmatpush.msra.mxu0 %v7963_v1  ;;  %v1078_v30 = vadd.f32 %v1077_v60, %v1041_v5  ;;  %v1118_v51 = vpop.f32.mrf.mxu2  ;;  %v2189_v5 = vsub.f32 %v8044_v36, %v11268_v12  ;;  %v8095_v47 = vand.u32 4294901760, %v609_v16  ;;  %v8099_v60 = vsub.f32 %v613_v29, %v8068_v15 }
 0x1b7   : > { %2250 = vmatpush.msra.mxu2 %v7959_v41  ;;  %2300 = vmatpush.msra.mxu3 %v7933_v10  ;;  %v11269_v7 = vand.u32 4294901760, %v8030_v53 }
 0x1b8   : > { %1989 = vmatpush.msrb.mxu1 %v7805_v26  ;;  %2112 = vmatpush.msra.mxu0 %v7969_v17  ;;  %v1119_v14 = vadd.f32 %v1118_v51, %v1078_v30  ;;  %v2171_v26 = vsub.f32 %v7994_v63, %v11272_v57  ;;  %11508 = vst [vmem:[#allocation35_spill] sm:$0xff] %v8095_v47  ;;  %v11271_v29 = vand.u32 4294901760, %v8099_v60  ;;  %v659_v57 = vld [vmem:[%s6853_s17 + $0x5b0] sm:$0xff] }
 0x1b9   : > { %1993 = vmatmul.f32.vlgmr.msrb.gmra.mxu1 %v7841_v28  ;;  %2253 = vmatpush.msra.mxu2 %v7972_v58  ;;  %v1219_v32 = vpop.f32.mrf.mxu3  ;;  %v2183_v55 = vsub.f32 %v8030_v53, %v11269_v7  ;;  %v2195_v51 = vsub.f32 %v8057_v48, %v11267_v46  ;;  %v8212_v28 = vand.u32 4294901760, %v657_v27 }
 0x1ba   : > { %2149 = vmatpush.msra.mxu1 %v2148_v0  ;;  %2302 = vmatpush.msra.mxu3 %v7939_v31  ;;  %v8059_v24 = vadd.f32 %v1219_v32, %v1119_v14  ;;  %v2172_v49 = vand.u32 4294901760, %v2171_v26  ;;  %v8105_v0 = vsub.f32 %v473_v3, %v8077_v62  ;;  %v8118_v14 = vand.u32 4294901760, %v607_v50 }
 0x1bb   : > { %2114 = vmatpush.msra.mxu0 %v7980_v37  ;;  %2256 = vmatpush.msra.mxu2 %v7987_v23  ;;  %v2184_v30 = vand.u32 4294901760, %v2183_v55  ;;  %v2190_v26 = vand.u32 4294901760, %v2189_v5  ;;  %v2201_v32 = vsub.f32 %v8072_v42, %v11265_v8  ;;  %v8127_v3 = vsub.f32 %v609_v16, %v8095_v47 }
 0x1bc   : > { %2155 = vmatpush.msra.mxu1 %v2154_v9  ;;  %2304 = vmatpush.msra.mxu3 %v7946_v11  ;;  %11509 = vst [vmem:[#allocation36_spill] sm:$0xff] %v8105_v0  ;;  %v11266_v9 = vand.u32 4294901760, %v8087_v6  ;;  %v8132_v33 = vand.u32 4294901760, %v8105_v0  ;;  %v11273_v5 = vand.u32 4294901760, %v8113_v34  ;;  %v2213_v46 = vsub.f32 %v8099_v60, %v11271_v29 }
 0x1bd   : > { %2116 = vmatpush.msra.mxu0 %v8002_v21  ;;  %2259 = vmatpush.msra.mxu2 %v7994_v63  ;;  %v11277_v12 = vand.u32 4294901760, %v8127_v3  ;;  %v8241_v35 = vsub.f32 %v657_v27, %v8212_v28 }
 0x1be   : > { %2161 = vmatpush.msra.mxu1 %v2160_v39  ;;  %2306 = vmatpush.msra.mxu3 %v7963_v1  ;;  %v605_v39 = vld [vmem:[%s6853_s17 + $0x400] sm:$0xff]  ;;  %11510 = vst [vmem:[#allocation37_spill] sm:$0xff] %v8132_v33  ;;  %v2207_v16 = vsub.f32 %v8087_v6, %v11266_v9  ;;  %v2202_v9 = vand.u32 4294901760, %v2201_v32  ;;  %v2219_v32 = vsub.f32 %v8113_v34, %v11273_v5 }
 0x1bf   : > { %2118 = vmatpush.msra.mxu0 %v8015_v56  ;;  %2262 = vmatpush.msra.mxu2 %v8010_v52  ;;  %v8141_v55 = vand.u32 4294901760, %v605_v39 }
 0x1c0   : > { %2167 = vmatpush.msra.mxu1 %v2166_v22  ;;  %2308 = vmatpush.msra.mxu3 %v7969_v17  ;;  %v665_v22 = vld [vmem:[%s6853_s17 + $0x5e0] sm:$0xff] }
 0x1c1   : > { %2120 = vmatpush.msra.mxu0 %v8027_v13  ;;  %2265 = vmatpush.msra.mxu2 %v8030_v53  ;;  %v8156_v7 = vand.u32 4294901760, %v665_v22 }
 0x1c2   : > { %2173 = vmatpush.msra.mxu1 %v2172_v49  ;;  %2310 = vmatpush.msra.mxu3 %v7980_v37  ;;  %v2196_v49 = vand.u32 4294901760, %v2195_v51  ;;  %v663_v51 = vld [vmem:[%s6853_s17 + $0x5d0] sm:$0xff] }
 0x1c3   : > { %2122 = vmatpush.msra.mxu0 %v8041_v18  ;;  %2268 = vmatpush.msra.mxu2 %v8044_v36  ;;  %v8173_v29 = vand.u32 4294901760, %v663_v51  ;;  %v8186_v5 = vsub.f32 %v665_v22, %v8156_v7 }
 0x1c4   : > { %2179 = vmatpush.msra.mxu1 %v2178_v25  ;;  %2312 = vmatpush.msra.mxu3 %v8002_v21 }
 0x1c5   : > { %2124 = vmatpush.msra.mxu0 %v8053_v2  ;;  %2271 = vmatpush.msra.mxu2 %v8057_v48  ;;  %v8199_v22 = vsub.f32 %v663_v51, %v8173_v29  ;;  %v11513_v51 = vand.u32 4294901760, %v7952_v43 }
 0x1c6   : > { %2185 = vmatpush.msra.mxu1 %v2184_v30  ;;  %2314 = vmatpush.msra.mxu3 %v8015_v56  ;;  %v1273_v25 = vpop.f32.mrf.mxu0  ;;  %v8148_v30 = vsub.f32 %v607_v50, %v8118_v14  ;;  %v8164_v50 = vsub.f32 %v667_v45, %v8134_v4 }
 0x1c7   : > { %2126 = vmatpush.msra.mxu0 %v8068_v15  ;;  %2274 = vmatpush.msra.mxu2 %v8072_v42  ;;  %v1274_v8 = vadd.f32 %v1273_v25, %v8059_v24  ;;  %v2138_v24 = vsub.f32 %v8105_v0, %v8132_v33  ;;  %v8171_v25 = vsub.f32 %v605_v39, %v8141_v55 }
 0x1c8   : > { %2191 = vmatpush.msra.mxu1 %v2190_v26  ;;  %2316 = vmatpush.msra.mxu3 %v8027_v13  ;;  %v2208_v26 = vand.u32 4294901760, %v2207_v16  ;;  %v11280_v45 = vand.u32 4294901760, %v8148_v30  ;;  %v2214_v16 = vand.u32 4294901760, %v2213_v46  ;;  %v2225_v39 = vsub.f32 %v8127_v3, %v11277_v12 }
 0x1c9   : > { %2128 = vmatpush.msra.mxu0 %v8083_v38  ;;  %2277 = vmatpush.msra.mxu2 %v8087_v6  ;;  %v8190_v20 = vand.u32 4294901760, %v2138_v24  ;;  %v2220_v46 = vand.u32 4294901760, %v2219_v32  ;;  %v11514_v61 = vand.u32 4294901760, %v8171_v25 }
 0x1ca   : > { %2197 = vmatpush.msra.mxu1 %v2196_v49  ;;  %2318 = vmatpush.msra.mxu3 %v8041_v18  ;;  %v8179_v49 = vand.u32 4294901760, %v661_v59  ;;  %v2231_v24 = vsub.f32 %v8148_v30, %v11280_v45  ;;  %v2226_v32 = vand.u32 4294901760, %v2225_v39  ;;  %v11512_v45 = vand.u32 4294901760, %v8164_v50  ;;  %v653_v39 = vld [vmem:[%s6853_s17 + $0x580] sm:$0xff] }
 0x1cb   : > { %2130 = vmatpush.msra.mxu0 %v8095_v47  ;;  %2280 = vmatpush.msra.mxu2 %v8099_v60  ;;  %11511 = vst [vmem:[#allocation38_spill] sm:$0xff] %v8190_v20 }
 0x1cc   : > { %2203 = vmatpush.msra.mxu1 %v2202_v9  ;;  %2320 = vmatpush.msra.mxu3 %v8053_v2  ;;  %v8193_v9 = vand.u32 4294901760, %v659_v57  ;;  %v8207_v40 = vsub.f32 %v661_v59, %v8179_v49  ;;  %v2488_v59 = vsub.f32 %v8164_v50, %v11512_v45  ;;  %v651_v45 = vld [vmem:[%s6853_s17 + $0x570] sm:$0xff] }
 0x1cd   : > { %2132 = vmatpush.msra.mxu0 %v8118_v14  ;;  %2283 = vmatpush.msra.mxu2 %v8113_v34 }
 0x1ce   : > { %2209 = vmatpush.msra.mxu1 %v2208_v26  ;;  %2322 = vmatpush.msra.mxu3 %v8068_v15  ;;  %v655_v26 = vld [vmem:[%s6853_s17 + $0x590] sm:$0xff] }
 0x1cf   : > { %2134 = vmatpush.msra.mxu0 %v8141_v55  ;;  %2286 = vmatpush.msra.mxu2 %v8127_v3  ;;  %v8229_v44 = vand.u32 4294901760, %v655_v26 }
 0x1d0   : > { %2215 = vmatpush.msra.mxu1 %v2214_v16  ;;  %2324 = vmatpush.msra.mxu3 %v8083_v38  ;;  %v1312_v12 = vpop.f32.mrf.mxu1  ;;  %v1381_v19 = vpop.f32.mrf.mxu2  ;;  %v8220_v16 = vsub.f32 %v659_v57, %v8193_v9  ;;  %v2232_v57 = vand.u32 4294901760, %v2231_v24  ;;  %v649_v24 = vld [vmem:[%s6853_s17 + $0x560] sm:$0xff] }
 0x1d1   : > { %2140 = vmatmul.f32.vlgmr.msra.gmra.mxu0 %v8190_v20  ;;  %2289 = vmatpush.msra.mxu2 %v8148_v30  ;;  %v1313_v54 = vadd.f32 %v1312_v12, %v1274_v8  ;;  %v2237_v20 = vsub.f32 %v8171_v25, %v11514_v61  ;;  %v11516_v61 = vand.u32 4294901760, %v8186_v5  ;;  %v8258_v8 = vsub.f32 %v655_v26, %v8229_v44 }
 0x1d2   : > { %2341 = vmatpush.msrb.mxu0 %v11513_v51  ;;  %2221 = vmatpush.msra.mxu1 %v2220_v46  ;;  %v11515_v46 = vand.u32 4294901760, %v7959_v41  ;;  %v11291_v41 = vand.u32 4294901760, %v8220_v16 }
 0x1d3   : > { %2326 = vmatpush.msra.mxu3 %v8095_v47  ;;  %2292 = vmatpush.msra.mxu2 %v8171_v25  ;;  %v1382_v12 = vadd.f32 %v1381_v19, %v1313_v54  ;;  %v1418_v43 = vpop.f32.mrf.mxu3  ;;  %v2494_v51 = vsub.f32 %v8186_v5, %v11516_v61  ;;  %v8243_v47 = vand.u32 4294901760, %v653_v39  ;;  %v2489_v54 = vand.u32 4294901760, %v2488_v59 }
 0x1d4   : > { %2345 = vmatpush.msrb.mxu0 %v11515_v46  ;;  %2227 = vmatpush.msra.mxu1 %v2226_v32  ;;  %v11517_v32 = vand.u32 4294901760, %v7972_v58  ;;  %v2238_v27 = vand.u32 4294901760, %v2237_v20  ;;  %v11518_v46 = vand.u32 4294901760, %v8199_v22  ;;  %v8260_v59 = vand.u32 4294901760, %v651_v45 }
 0x1d5   : > { %2328 = vmatpush.msra.mxu3 %v8118_v14  ;;  %2295 = vmatmul.f32.vlgmr.msra.gmra.mxu2 %v8105_v0  ;;  %v8247_v19 = vadd.f32 %v1418_v43, %v1382_v12  ;;  %v11519_v12 = vand.u32 4294901760, %v8207_v40  ;;  %v647_v43 = vld [vmem:[%s6853_s17 + $0x550] sm:$0xff]  ;;  %v11520_v20 = vand.u32 4294901760, %v7987_v23  ;;  %v8272_v26 = vsub.f32 %v653_v39, %v8243_v47 }
 0x1d6   : > { %2349 = vmatpush.msrb.mxu0 %v11517_v32  ;;  %2445 = vmatpush.msrb.mxu2 %v8134_v4  ;;  %v2500_v61 = vsub.f32 %v8199_v22, %v11518_v46  ;;  %v2495_v32 = vand.u32 4294901760, %v2494_v51  ;;  %v11521_v23 = vand.u32 4294901760, %v7994_v63  ;;  %v8285_v39 = vsub.f32 %v651_v45, %v8260_v59  ;;  %v643_v0 = vld [vmem:[%s6853_s17 + $0x530] sm:$0xff] }
 0x1d7   : > { %2233 = vmatpush.msra.mxu1 %v2232_v57  ;;  %2330 = vmatpush.msra.mxu3 %v8141_v55  ;;  %v2506_v58 = vsub.f32 %v8207_v40, %v11519_v12  ;;  %v8274_v57 = vand.u32 4294901760, %v649_v24  ;;  %v2512_v12 = vsub.f32 %v8220_v16, %v11291_v41  ;;  %v8287_v46 = vand.u32 4294901760, %v647_v43 }
 0x1d8   : > { %2334 = vmatmul.f32.vlgmr.msra.gmra.mxu3 %v8132_v33  ;;  %2353 = vmatpush.msrb.mxu0 %v11520_v20  ;;  %v645_v33 = vld [vmem:[%s6853_s17 + $0x540] sm:$0xff]  ;;  %v2501_v51 = vand.u32 4294901760, %v2500_v61  ;;  %v11292_v20 = vand.u32 4294901760, %v8258_v8  ;;  %v11522_v63 = vand.u32 4294901760, %v8241_v35  ;;  %v11293_v61 = vand.u32 4294901760, %v8272_v26 }
 0x1d9   : > { %2447 = vmatpush.msrb.mxu2 %v8156_v7  ;;  %2490 = vmatpush.msrb.mxu3 %v2489_v54  ;;  %v2507_v54 = vand.u32 4294901760, %v2506_v58  ;;  %v8298_v45 = vsub.f32 %v649_v24, %v8274_v57  ;;  %v11523_v41 = vand.u32 4294901760, %v8010_v52  ;;  %v2513_v58 = vand.u32 4294901760, %v2512_v12  ;;  %v641_v52 = vld [vmem:[%s6853_s17 + $0x520] sm:$0xff] }
 0x1da   : > { %2239 = vmatpush.msra.mxu1 %v2238_v27  ;;  %2357 = vmatpush.msrb.mxu0 %v11521_v23  ;;  %v2518_v27 = vsub.f32 %v8241_v35, %v11522_v63  ;;  %v8300_v23 = vand.u32 4294901760, %v645_v33  ;;  %v8311_v24 = vsub.f32 %v647_v43, %v8287_v46  ;;  %v8313_v63 = vand.u32 4294901760, %v643_v0  ;;  %v637_v43 = vld [vmem:[%s6853_s17 + $0x500] sm:$0xff] }
 0x1db   : > { %2241 = vmatmul.f32.vlgmr.msra.gmra.mxu1 %v8077_v62  ;;  %2449 = vmatpush.msrb.mxu2 %v8173_v29  ;;  %v2530_v12 = vsub.f32 %v8272_v26, %v11293_v61 }
 0x1dc   : > { %2408 = vmatpush.msrb.mxu1 %v7933_v10  ;;  %2496 = vmatpush.msrb.mxu3 %v2495_v32  ;;  %v2524_v10 = vsub.f32 %v8258_v8, %v11292_v20  ;;  %v639_v20 = vld [vmem:[%s6853_s17 + $0x510] sm:$0xff]  ;;  %v474_v32 = vld [vmem:[#allocation2 + $0x20] sm:$0xff]  ;;  %v8339_v61 = vsub.f32 %v643_v0, %v8313_v63 }
 0x1dd   : > { %2361 = vmatpush.msrb.mxu0 %v11523_v41  ;;  %2451 = vmatpush.msrb.mxu2 %v8179_v49  ;;  %v11524_v41 = vand.u32 4294901760, %v8030_v53  ;;  %v11525_v53 = vand.u32 4294901760, %v8044_v36  ;;  %v11527_v36 = vand.u32 4294901760, %v8057_v48 }
 0x1de   : > { %2410 = vmatpush.msrb.mxu1 %v7939_v31  ;;  %2502 = vmatpush.msrb.mxu3 %v2501_v51  ;;  %v2519_v31 = vand.u32 4294901760, %v2518_v27  ;;  %v8325_v51 = vsub.f32 %v645_v33, %v8300_v23  ;;  %v11526_v27 = vand.u32 4294901760, %v8285_v39  ;;  %v11530_v33 = vand.u32 4294901760, %v8072_v42 }
 0x1df   : > { %2365 = vmatpush.msrb.mxu0 %v11524_v41  ;;  %2453 = vmatpush.msrb.mxu2 %v8193_v9  ;;  %v11532_v42 = vand.u32 4294901760, %v8087_v6  ;;  %v11534_v6 = vand.u32 4294901760, %v8099_v60  ;;  %v11535_v60 = vand.u32 4294901760, %v8113_v34 }
 0x1e0   : > { %2412 = vmatpush.msrb.mxu1 %v7946_v11  ;;  %2508 = vmatpush.msrb.mxu3 %v2507_v54  ;;  %v8331_v11 = vand.u32 4294901760, %v641_v52  ;;  %v2525_v54 = vand.u32 4294901760, %v2524_v10  ;;  %v2536_v41 = vsub.f32 %v8285_v39, %v11526_v27  ;;  %v11529_v10 = vand.u32 4294901760, %v8298_v45 }
 0x1e1   : > { %2369 = vmatpush.msrb.mxu0 %v11525_v53  ;;  %2455 = vmatpush.msrb.mxu2 %v8212_v28  ;;  %v8345_v53 = vand.u32 4294901760, %v639_v20  ;;  %v2553_v0 = vand.u32 4294901760, %v8325_v51 }
 0x1e2   : > { %2414 = vmatpush.msrb.mxu1 %v7963_v1  ;;  %2514 = vmatpush.msrb.mxu3 %v2513_v58  ;;  %v8347_v1 = vand.u32 4294901760, %v474_v32  ;;  %v2531_v58 = vand.u32 4294901760, %v2530_v12  ;;  %v2542_v27 = vsub.f32 %v8298_v45, %v11529_v10  ;;  %v8358_v48 = vsub.f32 %v641_v52, %v8331_v11 }
 0x1e3   : > { %2373 = vmatpush.msrb.mxu0 %v11527_v36  ;;  %2457 = vmatpush.msrb.mxu2 %v8229_v44  ;;  %v8360_v36 = vand.u32 4294901760, %v637_v43  ;;  %v2559_v10 = vand.u32 4294901760, %v8339_v61  ;;  %v8371_v52 = vsub.f32 %v639_v20, %v8345_v53 }
 0x1e4   : > { %11528 = vst [vmem:[#allocation39_spill] sm:$0xff] %v8347_v1  ;;  %2416 = vmatpush.msrb.mxu1 %v7969_v17  ;;  %2520 = vmatpush.msrb.mxu3 %v2519_v31  ;;  %v2537_v17 = vand.u32 4294901760, %v2536_v41  ;;  %v11531_v31 = vand.u32 4294901760, %v8311_v24 }
 0x1e5   : > { %2377 = vmatpush.msrb.mxu0 %v11530_v33  ;;  %2459 = vmatpush.msrb.mxu2 %v8243_v47  ;;  %v8374_v33 = vsub.f32 %v474_v32, %v8347_v1  ;;  %v8386_v32 = vsub.f32 %v637_v43, %v8360_v36  ;;  %v11537_v43 = vand.u32 4294901760, %v8127_v3 }
 0x1e6   : > { %2418 = vmatpush.msrb.mxu1 %v7980_v37  ;;  %2526 = vmatpush.msrb.mxu3 %v2525_v54  ;;  %v2548_v12 = vsub.f32 %v8311_v24, %v11531_v31  ;;  %v2543_v37 = vand.u32 4294901760, %v2542_v27  ;;  %v2554_v54 = vsub.f32 %v8325_v51, %v2553_v0  ;;  %v2565_v31 = vand.u32 4294901760, %v8358_v48 }
 0x1e7   : > { %2381 = vmatpush.msrb.mxu0 %v11532_v42  ;;  %2461 = vmatpush.msrb.mxu2 %v8260_v59  ;;  %11533 = vst [vmem:[#allocation40_spill] sm:$0xff] %v8374_v33  ;;  %v8397_v27 = vand.u32 4294901760, %v8374_v33  ;;  %v11538_v42 = vand.u32 4294901760, %v8148_v30 }
 0x1e8   : > { %2420 = vmatpush.msrb.mxu1 %v8002_v21  ;;  %2532 = vmatpush.msrb.mxu3 %v2531_v58  ;;  %v1459_v41 = vpop.f32.mrf.mxu0  ;;  %v2549_v21 = vand.u32 4294901760, %v2548_v12  ;;  %v2560_v58 = vsub.f32 %v8339_v61, %v2559_v10  ;;  %v2566_v34 = vsub.f32 %v8358_v48, %v2565_v31 }
 0x1e9   : > { %2385 = vmatpush.msrb.mxu0 %v11534_v6  ;;  %2463 = vmatpush.msrb.mxu2 %v8274_v57  ;;  %v1460_v20 = vadd.f32 %v1459_v41, %v8247_v19  ;;  %v2571_v19 = vand.u32 4294901760, %v8371_v52  ;;  %11536 = vst [vmem:[#allocation41_spill] sm:$0xff] %v8397_v27  ;;  %v2479_v3 = vsub.f32 %v8374_v33, %v8397_v27 }
 0x1ea   : > { %2422 = vmatpush.msrb.mxu1 %v8015_v56  ;;  %2538 = vmatpush.msrb.mxu3 %v2537_v17  ;;  %v2555_v56 = vand.u32 4294901760, %v2554_v54  ;;  %v2577_v17 = vand.u32 4294901760, %v8386_v32  ;;  %v2561_v12 = vand.u32 4294901760, %v2560_v58 }
 0x1eb   : > { %2389 = vmatpush.msrb.mxu0 %v11535_v60  ;;  %2465 = vmatpush.msrb.mxu2 %v8287_v46  ;;  %v8426_v6 = vand.u32 4294901760, %v2479_v3  ;;  %v11541_v60 = vld [vmem:[#allocation35_spill] sm:$0xff] }
 0x1ec   : > { %2424 = vmatpush.msrb.mxu1 %v8027_v13  ;;  %2544 = vmatpush.msrb.mxu3 %v2543_v37  ;;  %v2572_v13 = vsub.f32 %v8371_v52, %v2571_v19  ;;  %v11539_v37 = vand.u32 4294901760, %v8171_v25  ;;  %v2578_v30 = vsub.f32 %v8386_v32, %v2577_v17 }
 0x1ed   : > { %2393 = vmatpush.msrb.mxu0 %v11537_v43  ;;  %2467 = vmatpush.msrb.mxu2 %v8300_v23  ;;  %11540 = vst [vmem:[#allocation42_spill] sm:$0xff] %v8426_v6  ;;  %v687_v43 = vld [vmem:[%s6853_s17 + $0x690] sm:$0xff] }
 0x1ee   : > { %2426 = vmatpush.msrb.mxu1 %v8041_v18  ;;  %2550 = vmatpush.msrb.mxu3 %v2549_v21  ;;  %v2567_v18 = vand.u32 4294901760, %v2566_v34  ;;  %v2579_v21 = vand.u32 4294901760, %v2578_v30 }
 0x1ef   : > { %2397 = vmatpush.msrb.mxu0 %v11538_v42  ;;  %2469 = vmatpush.msrb.mxu2 %v8313_v63  ;;  %v685_v42 = vld [vmem:[%s6853_s17 + $0x680] sm:$0xff] }
 0x1f0   : > { %2428 = vmatpush.msrb.mxu1 %v8053_v2  ;;  %2556 = vmatpush.msrb.mxu3 %v2555_v56  ;;  %v2573_v2 = vand.u32 4294901760, %v2572_v13  ;;  %v8555_v13 = vand.u32 4294901760, %v687_v43 }
 0x1f1   : > { %2401 = vmatpush.msrb.mxu0 %v11539_v37  ;;  %2471 = vmatpush.msrb.mxu2 %v8331_v11  ;;  %v683_v37 = vld [vmem:[%s6853_s17 + $0x670] sm:$0xff] }
 0x1f2   : > { %2430 = vmatpush.msrb.mxu1 %v8068_v15  ;;  %2562 = vmatpush.msrb.mxu3 %v2561_v12  ;;  %v1560_v54 = vpop.f32.mrf.mxu1  ;;  %v1614_v41 = vpop.f32.mrf.mxu2 }
 0x1f3   : > { %2403 = vmatmul.f32.vlgmr.msrb.gmra.mxu0 %v8077_v62  ;;  %2473 = vmatpush.msrb.mxu2 %v8345_v53  ;;  %v1561_v25 = vadd.f32 %v1560_v54, %v1460_v20  ;;  %v11542_v20 = vand.u32 4294901760, %v8164_v50 }
 0x1f4   : > { %2588 = vmatpush.msra.mxu0 %v8164_v50  ;;  %2432 = vmatpush.msrb.mxu1 %v8083_v38  ;;  %v11543_v38 = vand.u32 4294901760, %v8186_v5  ;;  %v11544_v50 = vand.u32 4294901760, %v8199_v22 }
 0x1f5   : > { %2568 = vmatpush.msrb.mxu3 %v2567_v18  ;;  %2475 = vmatpush.msrb.mxu2 %v8360_v36  ;;  %v1615_v15 = vadd.f32 %v1614_v41, %v1561_v25  ;;  %v1653_v58 = vpop.f32.mrf.mxu3  ;;  %v8571_v18 = vand.u32 4294901760, %v685_v42  ;;  %v681_v41 = vld [vmem:[%s6853_s17 + $0x660] sm:$0xff] }
 0x1f6   : > { %2591 = vmatpush.msra.mxu0 %v8186_v5  ;;  %2434 = vmatpush.msrb.mxu1 %v11541_v60 }
 0x1f7   : > { %2574 = vmatpush.msrb.mxu3 %v2573_v2  ;;  %2481 = vmatmul.f32.vlgmr.msrb.gmra.mxu2 %v8426_v6  ;;  %v1654_v56 = vadd.f32 %v1653_v58, %v1615_v15  ;;  %v8586_v15 = vsub.f32 %v687_v43, %v8555_v13  ;;  %v679_v58 = vld [vmem:[%s6853_s17 + $0x650] sm:$0xff] }
 0x1f8   : > { %2594 = vmatpush.msra.mxu0 %v8199_v22  ;;  %2682 = vmatpush.msra.mxu2 %v11542_v20  ;;  %v8597_v20 = vand.u32 4294901760, %v681_v41 }
 0x1f9   : > { %2436 = vmatpush.msrb.mxu1 %v8118_v14  ;;  %2580 = vmatpush.msrb.mxu3 %v2579_v21  ;;  %v11545_v14 = vand.u32 4294901760, %v8207_v40  ;;  %v8583_v21 = vand.u32 4294901760, %v683_v37 }
 0x1fa   : > { %2582 = vmatmul.f32.vlgmr.msrb.gmra.mxu3 %v8347_v1  ;;  %2597 = vmatpush.msra.mxu0 %v8207_v40  ;;  %v11548_v40 = vand.u32 4294901760, %v8258_v8 }
 0x1fb   : > { %2686 = vmatpush.msra.mxu2 %v11543_v38  ;;  %2749 = vmatpush.msra.mxu3 %v8134_v4  ;;  %v8600_v38 = vsub.f32 %v685_v42, %v8571_v18 }
 0x1fc   : > { %2438 = vmatpush.msrb.mxu1 %v8141_v55  ;;  %2600 = vmatpush.msra.mxu0 %v8220_v16  ;;  %v11546_v55 = vand.u32 4294901760, %v8220_v16  ;;  %v695_v16 = vld [vmem:[%s6853_s17 + $0x6d0] sm:$0xff] }
 0x1fd   : > { %2440 = vmatmul.f32.vlgmr.msrb.gmra.mxu1 %v8077_v62  ;;  %2690 = vmatpush.msra.mxu2 %v11544_v50  ;;  %v677_v50 = vld [vmem:[%s6853_s17 + $0x640] sm:$0xff] }
 0x1fe   : > { %2641 = vmatpush.msra.mxu1 %v8134_v4  ;;  %2751 = vmatpush.msra.mxu3 %v8156_v7  ;;  %v11547_v4 = vand.u32 4294901760, %v8241_v35 }
 0x1ff   : > { %2603 = vmatpush.msra.mxu0 %v8241_v35  ;;  %2694 = vmatpush.msra.mxu2 %v11545_v14  ;;  %v11550_v35 = vand.u32 4294901760, %v8285_v39 }
 0x200   : > { %2643 = vmatpush.msra.mxu1 %v8156_v7  ;;  %2753 = vmatpush.msra.mxu3 %v8173_v29  ;;  %v11549_v7 = vand.u32 4294901760, %v8272_v26 }
 0x201   : > { %2606 = vmatpush.msra.mxu0 %v8258_v8  ;;  %2698 = vmatpush.msra.mxu2 %v11546_v55  ;;  %v8609_v55 = vand.u32 4294901760, %v679_v58 }
 0x202   : > { %2645 = vmatpush.msra.mxu1 %v8173_v29  ;;  %2755 = vmatpush.msra.mxu3 %v8179_v49  ;;  %v699_v29 = vld [vmem:[%s6853_s17 + $0x6f0] sm:$0xff] }
 0x203   : > { %2609 = vmatpush.msra.mxu0 %v8272_v26  ;;  %2702 = vmatpush.msra.mxu2 %v11547_v4  ;;  %v8487_v22 = vand.u32 4294901760, %v699_v29  ;;  %v8503_v26 = vand.u32 4294901760, %v695_v16  ;;  %v11298_v4 = vand.u32 4294901760, %v8586_v15 }
 0x204   : > { %2647 = vmatpush.msra.mxu1 %v8179_v49  ;;  %2757 = vmatpush.msra.mxu3 %v8193_v9  ;;  %v11551_v49 = vand.u32 4294901760, %v8298_v45 }
 0x205   : > { %2612 = vmatpush.msra.mxu0 %v8285_v39  ;;  %2706 = vmatpush.msra.mxu2 %v11548_v40  ;;  %v8506_v39 = vsub.f32 %v699_v29, %v8487_v22  ;;  %v8613_v40 = vsub.f32 %v683_v37, %v8583_v21  ;;  %v675_v29 = vld [vmem:[%s6853_s17 + $0x630] sm:$0xff] }
 0x206   : > { %2649 = vmatpush.msra.mxu1 %v8193_v9  ;;  %2759 = vmatpush.msra.mxu3 %v8212_v28  ;;  %v697_v9 = vld [vmem:[%s6853_s17 + $0x6e0] sm:$0xff] }
 0x207   : > { %2615 = vmatpush.msra.mxu0 %v8298_v45  ;;  %2710 = vmatpush.msra.mxu2 %v11549_v7  ;;  %v8495_v8 = vand.u32 4294901760, %v697_v9  ;;  %v475_v7 = vld [vmem:[#allocation2 + $0x28] sm:$0xff] }
 0x208   : > { %2651 = vmatpush.msra.mxu1 %v8212_v28  ;;  %2761 = vmatpush.msra.mxu3 %v8229_v44 }
 0x209   : > { %2618 = vmatpush.msra.mxu0 %v8311_v24  ;;  %2714 = vmatpush.msra.mxu2 %v11550_v35 }
 0x20a   : > { %2653 = vmatpush.msra.mxu1 %v8229_v44  ;;  %2763 = vmatpush.msra.mxu3 %v8243_v47  ;;  %v1722_v5 = vpop.f32.mrf.mxu0  ;;  %v11552_v44 = vand.u32 4294901760, %v8311_v24  ;;  %v689_v24 = vld [vmem:[%s6853_s17 + $0x6a0] sm:$0xff] }
 0x20b   : > { %2621 = vmatpush.msra.mxu0 %v8325_v51  ;;  %2718 = vmatpush.msra.mxu2 %v11551_v49  ;;  %v1723_v28 = vadd.f32 %v1722_v5, %v1654_v56  ;;  %v8622_v49 = vand.u32 4294901760, %v677_v50 }
 0x20c   : > { %2655 = vmatpush.msra.mxu1 %v8243_v47  ;;  %2765 = vmatpush.msra.mxu3 %v8260_v59  ;;  %v693_v47 = vld [vmem:[%s6853_s17 + $0x6c0] sm:$0xff] }
 0x20d   : > { %2624 = vmatpush.msra.mxu0 %v8339_v61  ;;  %2722 = vmatpush.msra.mxu2 %v11552_v44  ;;  %v8514_v45 = vand.u32 4294901760, %v693_v47  ;;  %v8529_v61 = vsub.f32 %v695_v16, %v8503_v26  ;;  %v673_v16 = vld [vmem:[%s6853_s17 + $0x620] sm:$0xff]  ;;  %v8653_v42 = vsub.f32 %v677_v50, %v8622_v49 }
 0x20e   : > { %2657 = vmatpush.msra.mxu1 %v8260_v59  ;;  %2767 = vmatpush.msra.mxu3 %v8274_v57  ;;  %v691_v59 = vld [vmem:[%s6853_s17 + $0x6b0] sm:$0xff] }
 0x20f   : > { %2627 = vmatpush.msra.mxu0 %v8358_v48  ;;  %2726 = vmatpush.msra.mxu2 %v2553_v0  ;;  %v8523_v51 = vand.u32 4294901760, %v691_v59  ;;  %v8541_v34 = vsub.f32 %v693_v47, %v8514_v45  ;;  %v8631_v47 = vand.u32 4294901760, %v475_v7 }
 0x210   : > { %2659 = vmatpush.msra.mxu1 %v8274_v57  ;;  %2769 = vmatpush.msra.mxu3 %v8287_v46  ;;  %v8517_v57 = vsub.f32 %v697_v9, %v8495_v8  ;;  %v8626_v9 = vsub.f32 %v681_v41, %v8597_v20 }
 0x211   : > { %2630 = vmatpush.msra.mxu0 %v8371_v52  ;;  %2730 = vmatpush.msra.mxu2 %v2559_v10  ;;  %v11303_v30 = vand.u32 4294901760, %v8541_v34  ;;  %11553 = vst [vmem:[#allocation35_spill] sm:$0xff] %v8631_v47  ;;  %v8659_v37 = vsub.f32 %v475_v7, %v8631_v47 }
 0x212   : > { %2661 = vmatpush.msra.mxu1 %v8287_v46  ;;  %2771 = vmatpush.msra.mxu3 %v8300_v23  ;;  %v11307_v46 = vand.u32 4294901760, %v8506_v39 }
 0x213   : > { %2633 = vmatpush.msra.mxu0 %v8386_v32  ;;  %2734 = vmatpush.msra.mxu2 %v2565_v31  ;;  %v8534_v31 = vand.u32 4294901760, %v689_v24  ;;  %v11304_v32 = vand.u32 4294901760, %v8529_v61  ;;  %v2847_v56 = vsub.f32 %v8541_v34, %v11303_v30  ;;  %11555 = vst [vmem:[#allocation44_spill] sm:$0xff] %v8659_v37 }
 0x214   : > { %2663 = vmatpush.msra.mxu1 %v8300_v23  ;;  %2773 = vmatpush.msra.mxu3 %v8313_v63  ;;  %v1759_v0 = vpop.f32.mrf.mxu1  ;;  %v1800_v10 = vpop.f32.mrf.mxu2  ;;  %v11305_v23 = vand.u32 4294901760, %v8517_v57 }
 0x215   : > { %2636 = vmatmul.f32.vlgmr.msra.gmra.mxu0 %v8374_v33  ;;  %2738 = vmatpush.msra.mxu2 %v2571_v19  ;;  %v1760_v48 = vadd.f32 %v1759_v0, %v1723_v28  ;;  %v8547_v19 = vsub.f32 %v691_v59, %v8523_v51  ;;  %v8563_v3 = vsub.f32 %v689_v24, %v8534_v31  ;;  %v2848_v5 = vand.u32 4294901760, %v2847_v56  ;;  %v669_v56 = vld [vmem:[%s6853_s17 + $0x600] sm:$0xff] }
 0x216   : > { %2786 = vmatpush.msrb.mxu0 %v8487_v22  ;;  %2665 = vmatpush.msra.mxu1 %v8313_v63  ;;  %v2829_v63 = vsub.f32 %v8506_v39, %v11307_v46  ;;  %v2841_v25 = vsub.f32 %v8529_v61, %v11304_v32  ;;  %v11297_v28 = vand.u32 4294901760, %v8600_v38  ;;  %v2865_v59 = vsub.f32 %v8586_v15, %v11298_v4 }
 0x217   : > { %2775 = vmatpush.msra.mxu3 %v8331_v11  ;;  %2742 = vmatpush.msra.mxu2 %v2577_v17  ;;  %v1801_v52 = vadd.f32 %v1800_v10, %v1760_v48  ;;  %v1901_v12 = vpop.f32.mrf.mxu3  ;;  %v11301_v54 = vand.u32 4294901760, %v8547_v19  ;;  %v8637_v24 = vand.u32 4294901760, %v675_v29  ;;  %v11296_v0 = vand.u32 4294901760, %v8613_v40 }
 0x218   : > { %2788 = vmatpush.msrb.mxu0 %v8495_v8  ;;  %2667 = vmatpush.msra.mxu1 %v8331_v11  ;;  %v2835_v11 = vsub.f32 %v8517_v57, %v11305_v23  ;;  %v2830_v2 = vand.u32 4294901760, %v2829_v63  ;;  %v2842_v14 = vand.u32 4294901760, %v2841_v25  ;;  %v8641_v10 = vsub.f32 %v679_v58, %v8609_v55  ;;  %v671_v63 = vld [vmem:[%s6853_s17 + $0x610] sm:$0xff]  ;;  %v721_v23 = vld [vmem:[%s6853_s17 + $0x7a0] sm:$0xff] }
 0x219   : > { %2777 = vmatpush.msra.mxu3 %v8345_v53  ;;  %2744 = vmatmul.f32.vlgmr.msra.gmra.mxu2 %v8347_v1  ;;  %v8560_v17 = vadd.f32 %v1901_v12, %v1801_v52  ;;  %v2871_v43 = vsub.f32 %v8600_v38, %v11297_v28  ;;  %v8649_v52 = vand.u32 4294901760, %v673_v16  ;;  %v11294_v12 = vand.u32 4294901760, %v8626_v9  ;;  %v731_v58 = vld [vmem:[%s6853_s17 + $0x7f0] sm:$0xff] }
 0x21a   : > { %2790 = vmatpush.msrb.mxu0 %v8503_v26  ;;  %2929 = vmatpush.msrb.mxu2 %v8506_v39  ;;  %v2836_v60 = vand.u32 4294901760, %v2835_v11  ;;  %v2866_v11 = vand.u32 4294901760, %v2865_v59  ;;  %v2877_v41 = vsub.f32 %v8613_v40, %v11296_v0  ;;  %v8667_v25 = vsub.f32 %v675_v29, %v8637_v24 }
 0x21b   : > { %2669 = vmatpush.msra.mxu1 %v8345_v53  ;;  %2779 = vmatpush.msra.mxu3 %v8360_v36  ;;  %v11299_v53 = vand.u32 4294901760, %v8563_v3  ;;  %11554 = vst [vmem:[#allocation43_spill] sm:$0xff] %v8649_v52  ;;  %v2883_v50 = vsub.f32 %v8626_v9, %v11294_v12  ;;  %v8681_v7 = vsub.f32 %v673_v16, %v8649_v52  ;;  %v8688_v29 = vand.u32 4294901760, %v731_v58 }
 0x21c   : > { %2781 = vmatmul.f32.vlgmr.msra.gmra.mxu3 %v8347_v1  ;;  %2792 = vmatpush.msrb.mxu0 %v8514_v45  ;;  %v8695_v59 = vand.u32 4294901760, %v669_v56 }
 0x21d   : > { %2932 = vmatpush.msrb.mxu2 %v8517_v57  ;;  %2982 = vmatpush.msrb.mxu3 %v8487_v22  ;;  %v2859_v35 = vsub.f32 %v8563_v3, %v11299_v53  ;;  %v11306_v28 = vand.u32 4294901760, %v8681_v7  ;;  %v725_v53 = vld [vmem:[%s6853_s17 + $0x7c0] sm:$0xff] }
 0x21e   : > { %2671 = vmatpush.msra.mxu1 %v8360_v36  ;;  %2794 = vmatpush.msrb.mxu0 %v8523_v51  ;;  %v2853_v36 = vsub.f32 %v8547_v19, %v11301_v54  ;;  %v723_v54 = vld [vmem:[%s6853_s17 + $0x7b0] sm:$0xff] }
 0x21f   : > { %2675 = vmatmul.f32.vlgmr.msra.gmra.mxu1 %v8397_v27  ;;  %2935 = vmatpush.msrb.mxu2 %v8529_v61  ;;  %v2860_v48 = vand.u32 4294901760, %v2859_v35  ;;  %v8686_v35 = vand.u32 4294901760, %v8659_v37  ;;  %v8766_v27 = vand.u32 4294901760, %v721_v23 }
 0x220   : > { %2831 = vmatpush.msrb.mxu1 %v2830_v2  ;;  %2984 = vmatpush.msrb.mxu3 %v8495_v8  ;;  %v2854_v44 = vand.u32 4294901760, %v2853_v36  ;;  %v11295_v2 = vand.u32 4294901760, %v8641_v10  ;;  %v2872_v36 = vand.u32 4294901760, %v2871_v43  ;;  %v11302_v43 = vand.u32 4294901760, %v8667_v25 }
 0x221   : > { %2796 = vmatpush.msrb.mxu0 %v8534_v31  ;;  %2938 = vmatpush.msrb.mxu2 %v8541_v34  ;;  %11556 = vst [vmem:[#allocation45_spill] sm:$0xff] %v8686_v35  ;;  %v8795_v6 = vsub.f32 %v721_v23, %v8766_v27 }
 0x222   : > { %2837 = vmatpush.msrb.mxu1 %v2836_v60  ;;  %2986 = vmatpush.msrb.mxu3 %v8503_v26  ;;  %v8672_v60 = vand.u32 4294901760, %v671_v63  ;;  %v2889_v16 = vsub.f32 %v8641_v10, %v11295_v2  ;;  %v2884_v2 = vand.u32 4294901760, %v2883_v50  ;;  %v2901_v50 = vsub.f32 %v8667_v25, %v11302_v43 }
 0x223   : > { %2798 = vmatpush.msrb.mxu0 %v8555_v13  ;;  %2941 = vmatpush.msrb.mxu2 %v8547_v19 }
 0x224   : > { %2843 = vmatpush.msrb.mxu1 %v2842_v14  ;;  %2988 = vmatpush.msrb.mxu3 %v8514_v45  ;;  %v11300_v14 = vand.u32 4294901760, %v8653_v42 }
 0x225   : > { %2800 = vmatpush.msrb.mxu0 %v8571_v18  ;;  %2944 = vmatpush.msrb.mxu2 %v8563_v3 }
 0x226   : > { %2849 = vmatpush.msrb.mxu1 %v2848_v5  ;;  %2990 = vmatpush.msrb.mxu3 %v8523_v51  ;;  %v729_v5 = vld [vmem:[%s6853_s17 + $0x7e0] sm:$0xff]  ;;  %v2895_v0 = vsub.f32 %v8653_v42, %v11300_v14 }
 0x227   : > { %2802 = vmatpush.msrb.mxu0 %v8583_v21  ;;  %2947 = vmatpush.msrb.mxu2 %v8586_v15  ;;  %v8710_v4 = vand.u32 4294901760, %v729_v5 }
 0x228   : > { %2855 = vmatpush.msrb.mxu1 %v2854_v44  ;;  %2992 = vmatpush.msrb.mxu3 %v8534_v31  ;;  %v2878_v44 = vand.u32 4294901760, %v2877_v41  ;;  %v727_v41 = vld [vmem:[%s6853_s17 + $0x7d0] sm:$0xff] }
 0x229   : > { %2804 = vmatpush.msrb.mxu0 %v8597_v20  ;;  %2950 = vmatpush.msrb.mxu2 %v8600_v38  ;;  %v8727_v14 = vand.u32 4294901760, %v727_v41  ;;  %v8740_v43 = vsub.f32 %v729_v5, %v8710_v4 }
 0x22a   : > { %2861 = vmatpush.msrb.mxu1 %v2860_v48  ;;  %2994 = vmatpush.msrb.mxu3 %v8555_v13 }
 0x22b   : > { %2806 = vmatpush.msrb.mxu0 %v8609_v55  ;;  %2953 = vmatpush.msrb.mxu2 %v8613_v40  ;;  %v8753_v5 = vsub.f32 %v727_v41, %v8727_v14  ;;  %v11559_v41 = vand.u32 4294901760, %v8506_v39 }
 0x22c   : > { %2867 = vmatpush.msrb.mxu1 %v2866_v11  ;;  %2996 = vmatpush.msrb.mxu3 %v8571_v18  ;;  %v1955_v48 = vpop.f32.mrf.mxu0  ;;  %v8702_v11 = vsub.f32 %v671_v63, %v8672_v60  ;;  %v8718_v63 = vsub.f32 %v731_v58, %v8688_v29 }
 0x22d   : > { %2808 = vmatpush.msrb.mxu0 %v8622_v49  ;;  %2956 = vmatpush.msrb.mxu2 %v8626_v9  ;;  %v1956_v12 = vadd.f32 %v1955_v48, %v8560_v17  ;;  %v2820_v17 = vsub.f32 %v8659_v37, %v8686_v35  ;;  %v8725_v48 = vsub.f32 %v669_v56, %v8695_v59 }
 0x22e   : > { %2873 = vmatpush.msrb.mxu1 %v2872_v36  ;;  %2998 = vmatpush.msrb.mxu3 %v8583_v21  ;;  %v2890_v36 = vand.u32 4294901760, %v2889_v16  ;;  %v11309_v58 = vand.u32 4294901760, %v8702_v11  ;;  %v2896_v16 = vand.u32 4294901760, %v2895_v0  ;;  %v2907_v56 = vsub.f32 %v8681_v7, %v11306_v28 }
 0x22f   : > { %2810 = vmatpush.msrb.mxu0 %v8637_v24  ;;  %2959 = vmatpush.msrb.mxu2 %v8641_v10  ;;  %v8744_v30 = vand.u32 4294901760, %v2820_v17  ;;  %v2902_v0 = vand.u32 4294901760, %v2901_v50  ;;  %v11560_v1 = vand.u32 4294901760, %v8725_v48 }
 0x230   : > { %2879 = vmatpush.msrb.mxu1 %v2878_v44  ;;  %3000 = vmatpush.msrb.mxu3 %v8597_v20  ;;  %v8733_v44 = vand.u32 4294901760, %v725_v53  ;;  %v2913_v17 = vsub.f32 %v8702_v11, %v11309_v58  ;;  %v2908_v50 = vand.u32 4294901760, %v2907_v56  ;;  %v11558_v58 = vand.u32 4294901760, %v8718_v63  ;;  %v717_v56 = vld [vmem:[%s6853_s17 + $0x780] sm:$0xff] }
 0x231   : > { %2812 = vmatpush.msrb.mxu0 %v8649_v52  ;;  %2962 = vmatpush.msrb.mxu2 %v8653_v42  ;;  %11557 = vst [vmem:[#allocation46_spill] sm:$0xff] %v8744_v30 }
 0x232   : > { %2885 = vmatpush.msrb.mxu1 %v2884_v2  ;;  %3002 = vmatpush.msrb.mxu3 %v8609_v55  ;;  %v8747_v2 = vand.u32 4294901760, %v723_v54  ;;  %v8761_v46 = vsub.f32 %v725_v53, %v8733_v44  ;;  %v3170_v53 = vsub.f32 %v8718_v63, %v11558_v58  ;;  %v715_v58 = vld [vmem:[%s6853_s17 + $0x770] sm:$0xff] }
 0x233   : > { %2814 = vmatpush.msrb.mxu0 %v8672_v60  ;;  %2965 = vmatpush.msrb.mxu2 %v8667_v25 }
 0x234   : > { %2891 = vmatpush.msrb.mxu1 %v2890_v36  ;;  %3004 = vmatpush.msrb.mxu3 %v8622_v49  ;;  %v719_v36 = vld [vmem:[%s6853_s17 + $0x790] sm:$0xff] }
 0x235   : > { %2816 = vmatpush.msrb.mxu0 %v8695_v59  ;;  %2968 = vmatpush.msrb.mxu2 %v8681_v7  ;;  %v8783_v62 = vand.u32 4294901760, %v719_v36 }
 0x236   : > { %2897 = vmatpush.msrb.mxu1 %v2896_v16  ;;  %3006 = vmatpush.msrb.mxu3 %v8637_v24  ;;  %v1994_v28 = vpop.f32.mrf.mxu1  ;;  %v2063_v32 = vpop.f32.mrf.mxu2  ;;  %v8774_v16 = vsub.f32 %v723_v54, %v8747_v2  ;;  %v2914_v54 = vand.u32 4294901760, %v2913_v17  ;;  %v713_v17 = vld [vmem:[%s6853_s17 + $0x760] sm:$0xff] }
 0x237   : > { %2822 = vmatmul.f32.vlgmr.msrb.gmra.mxu0 %v8744_v30  ;;  %2971 = vmatpush.msrb.mxu2 %v8702_v11  ;;  %v1995_v33 = vadd.f32 %v1994_v28, %v1956_v12  ;;  %v2919_v30 = vsub.f32 %v8725_v48, %v11560_v1  ;;  %v11562_v1 = vand.u32 4294901760, %v8740_v43  ;;  %v8812_v12 = vsub.f32 %v719_v36, %v8783_v62 }
 0x238   : > { %3023 = vmatpush.msra.mxu0 %v11559_v41  ;;  %2903 = vmatpush.msrb.mxu1 %v2902_v0  ;;  %v11561_v0 = vand.u32 4294901760, %v8517_v57  ;;  %v11320_v57 = vand.u32 4294901760, %v8774_v16 }
 0x239   : > { %3008 = vmatpush.msrb.mxu3 %v8649_v52  ;;  %2974 = vmatpush.msrb.mxu2 %v8725_v48  ;;  %v2064_v28 = vadd.f32 %v2063_v32, %v1995_v33  ;;  %v2100_v39 = vpop.f32.mrf.mxu3  ;;  %v3176_v41 = vsub.f32 %v8740_v43, %v11562_v1  ;;  %v8797_v52 = vand.u32 4294901760, %v717_v56  ;;  %v3171_v33 = vand.u32 4294901760, %v3170_v53 }
 0x23a   : > { %3027 = vmatpush.msra.mxu0 %v11561_v0  ;;  %2909 = vmatpush.msrb.mxu1 %v2908_v50  ;;  %v11563_v50 = vand.u32 4294901760, %v8529_v61  ;;  %v2920_v23 = vand.u32 4294901760, %v2919_v30  ;;  %v11564_v0 = vand.u32 4294901760, %v8753_v5  ;;  %v8814_v53 = vand.u32 4294901760, %v715_v58 }
 0x23b   : > { %3010 = vmatpush.msrb.mxu3 %v8672_v60  ;;  %2977 = vmatmul.f32.vlgmr.msrb.gmra.mxu2 %v8659_v37  ;;  %v8801_v32 = vadd.f32 %v2100_v39, %v2064_v28  ;;  %v11565_v28 = vand.u32 4294901760, %v8761_v46  ;;  %v711_v39 = vld [vmem:[%s6853_s17 + $0x750] sm:$0xff]  ;;  %v11566_v30 = vand.u32 4294901760, %v8541_v34  ;;  %v8826_v36 = vsub.f32 %v717_v56, %v8797_v52 }
 0x23c   : > { %3031 = vmatpush.msra.mxu0 %v11563_v50  ;;  %3127 = vmatpush.msra.mxu2 %v8688_v29  ;;  %v3182_v1 = vsub.f32 %v8753_v5, %v11564_v0  ;;  %v3177_v50 = vand.u32 4294901760, %v3176_v41  ;;  %v11567_v34 = vand.u32 4294901760, %v8547_v19  ;;  %v8839_v56 = vsub.f32 %v715_v58, %v8814_v53  ;;  %v707_v37 = vld [vmem:[%s6853_s17 + $0x730] sm:$0xff] }
 0x23d   : > { %2915 = vmatpush.msrb.mxu1 %v2914_v54  ;;  %3012 = vmatpush.msrb.mxu3 %v8695_v59  ;;  %v3188_v61 = vsub.f32 %v8761_v46, %v11565_v28  ;;  %v8828_v54 = vand.u32 4294901760, %v713_v17  ;;  %v3194_v28 = vsub.f32 %v8774_v16, %v11320_v57  ;;  %v8841_v0 = vand.u32 4294901760, %v711_v39 }
 0x23e   : > { %3016 = vmatmul.f32.vlgmr.msrb.gmra.mxu3 %v8686_v35  ;;  %3035 = vmatpush.msra.mxu0 %v11566_v30  ;;  %v709_v35 = vld [vmem:[%s6853_s17 + $0x740] sm:$0xff]  ;;  %v3183_v41 = vand.u32 4294901760, %v3182_v1  ;;  %v11321_v30 = vand.u32 4294901760, %v8812_v12  ;;  %v11568_v19 = vand.u32 4294901760, %v8795_v6  ;;  %v11322_v1 = vand.u32 4294901760, %v8826_v36 }
 0x23f   : > { %3129 = vmatpush.msra.mxu2 %v8710_v4  ;;  %3172 = vmatpush.msra.mxu3 %v3171_v33  ;;  %v3189_v33 = vand.u32 4294901760, %v3188_v61  ;;  %v8852_v58 = vsub.f32 %v713_v17, %v8828_v54  ;;  %v11569_v57 = vand.u32 4294901760, %v8563_v3  ;;  %v3195_v61 = vand.u32 4294901760, %v3194_v28  ;;  %v705_v3 = vld [vmem:[%s6853_s17 + $0x720] sm:$0xff] }
 0x240   : > { %2921 = vmatpush.msrb.mxu1 %v2920_v23  ;;  %3039 = vmatpush.msra.mxu0 %v11567_v34  ;;  %v3200_v23 = vsub.f32 %v8795_v6, %v11568_v19  ;;  %v8854_v34 = vand.u32 4294901760, %v709_v35  ;;  %v8865_v17 = vsub.f32 %v711_v39, %v8841_v0  ;;  %v8867_v19 = vand.u32 4294901760, %v707_v37  ;;  %v701_v39 = vld [vmem:[%s6853_s17 + $0x700] sm:$0xff] }
 0x241   : > { %2923 = vmatmul.f32.vlgmr.msrb.gmra.mxu1 %v8631_v47  ;;  %3131 = vmatpush.msra.mxu2 %v8727_v14  ;;  %v3212_v28 = vsub.f32 %v8826_v36, %v11322_v1 }
 0x242   : > { %3090 = vmatpush.msra.mxu1 %v8487_v22  ;;  %3178 = vmatpush.msra.mxu3 %v3177_v50  ;;  %v3206_v22 = vsub.f32 %v8812_v12, %v11321_v30  ;;  %v703_v30 = vld [vmem:[%s6853_s17 + $0x710] sm:$0xff]  ;;  %v476_v50 = vld [vmem:[#allocation2 + $0x38] sm:$0xff]  ;;  %v8893_v1 = vsub.f32 %v707_v37, %v8867_v19 }
 0x243   : > { %3043 = vmatpush.msra.mxu0 %v11569_v57  ;;  %3133 = vmatpush.msra.mxu2 %v8733_v44  ;;  %v11570_v57 = vand.u32 4294901760, %v8586_v15  ;;  %v11571_v15 = vand.u32 4294901760, %v8600_v38  ;;  %v11573_v38 = vand.u32 4294901760, %v8613_v40 }
 0x244   : > { %3092 = vmatpush.msra.mxu1 %v8495_v8  ;;  %3184 = vmatpush.msra.mxu3 %v3183_v41  ;;  %v3201_v8 = vand.u32 4294901760, %v3200_v23  ;;  %v8879_v41 = vsub.f32 %v709_v35, %v8854_v34  ;;  %v11572_v23 = vand.u32 4294901760, %v8839_v56  ;;  %v11576_v35 = vand.u32 4294901760, %v8626_v9 }
 0x245   : > { %3047 = vmatpush.msra.mxu0 %v11570_v57  ;;  %3135 = vmatpush.msra.mxu2 %v8747_v2  ;;  %v11578_v9 = vand.u32 4294901760, %v8641_v10  ;;  %v11580_v10 = vand.u32 4294901760, %v8653_v42  ;;  %v11581_v42 = vand.u32 4294901760, %v8667_v25 }
 0x246   : > { %3094 = vmatpush.msra.mxu1 %v8503_v26  ;;  %3190 = vmatpush.msra.mxu3 %v3189_v33  ;;  %v8885_v26 = vand.u32 4294901760, %v705_v3  ;;  %v3207_v33 = vand.u32 4294901760, %v3206_v22  ;;  %v3218_v57 = vsub.f32 %v8839_v56, %v11572_v23  ;;  %v11575_v22 = vand.u32 4294901760, %v8852_v58 }
 0x247   : > { %3051 = vmatpush.msra.mxu0 %v11571_v15  ;;  %3137 = vmatpush.msra.mxu2 %v8766_v27  ;;  %v8899_v15 = vand.u32 4294901760, %v703_v30  ;;  %v3235_v37 = vand.u32 4294901760, %v8879_v41 }
 0x248   : > { %3096 = vmatpush.msra.mxu1 %v8514_v45  ;;  %3196 = vmatpush.msra.mxu3 %v3195_v61  ;;  %v8901_v45 = vand.u32 4294901760, %v476_v50  ;;  %v3213_v61 = vand.u32 4294901760, %v3212_v28  ;;  %v3224_v23 = vsub.f32 %v8852_v58, %v11575_v22  ;;  %v8912_v40 = vsub.f32 %v705_v3, %v8885_v26 }
 0x249   : > { %3055 = vmatpush.msra.mxu0 %v11573_v38  ;;  %3139 = vmatpush.msra.mxu2 %v8783_v62  ;;  %v8914_v38 = vand.u32 4294901760, %v701_v39  ;;  %v3241_v22 = vand.u32 4294901760, %v8893_v1  ;;  %v8925_v3 = vsub.f32 %v703_v30, %v8899_v15 }
 0x24a   : > { %11574 = vst [vmem:[#allocation47_spill] sm:$0xff] %v8901_v45  ;;  %3098 = vmatpush.msra.mxu1 %v8523_v51  ;;  %3202 = vmatpush.msra.mxu3 %v3201_v8  ;;  %v3219_v51 = vand.u32 4294901760, %v3218_v57  ;;  %v11577_v8 = vand.u32 4294901760, %v8865_v17 }
 0x24b   : > { %3059 = vmatpush.msra.mxu0 %v11576_v35  ;;  %3141 = vmatpush.msra.mxu2 %v8797_v52  ;;  %v8928_v35 = vsub.f32 %v476_v50, %v8901_v45  ;;  %v8940_v50 = vsub.f32 %v701_v39, %v8914_v38  ;;  %v11583_v39 = vand.u32 4294901760, %v8681_v7 }
 0x24c   : > { %3100 = vmatpush.msra.mxu1 %v8534_v31  ;;  %3208 = vmatpush.msra.mxu3 %v3207_v33  ;;  %v3230_v28 = vsub.f32 %v8865_v17, %v11577_v8  ;;  %v3225_v31 = vand.u32 4294901760, %v3224_v23  ;;  %v3236_v33 = vsub.f32 %v8879_v41, %v3235_v37  ;;  %v3247_v8 = vand.u32 4294901760, %v8912_v40 }
 0x24d   : > { %3063 = vmatpush.msra.mxu0 %v11578_v9  ;;  %3143 = vmatpush.msra.mxu2 %v8814_v53  ;;  %11579 = vst [vmem:[#allocation48_spill] sm:$0xff] %v8928_v35  ;;  %v8951_v23 = vand.u32 4294901760, %v8928_v35  ;;  %v11584_v9 = vand.u32 4294901760, %v8702_v11 }
 0x24e   : > { %3102 = vmatpush.msra.mxu1 %v8555_v13  ;;  %3214 = vmatpush.msra.mxu3 %v3213_v61  ;;  %v2141_v57 = vpop.f32.mrf.mxu0  ;;  %v3231_v13 = vand.u32 4294901760, %v3230_v28  ;;  %v3242_v61 = vsub.f32 %v8893_v1, %v3241_v22  ;;  %v3248_v25 = vsub.f32 %v8912_v40, %v3247_v8 }
 0x24f   : > { %3067 = vmatpush.msra.mxu0 %v11580_v10  ;;  %3145 = vmatpush.msra.mxu2 %v8828_v54  ;;  %v2142_v30 = vadd.f32 %v2141_v57, %v8801_v32  ;;  %v3253_v32 = vand.u32 4294901760, %v8925_v3  ;;  %11582 = vst [vmem:[#allocation49_spill] sm:$0xff] %v8951_v23  ;;  %v3161_v7 = vsub.f32 %v8928_v35, %v8951_v23 }
 0x250   : > { %3104 = vmatpush.msra.mxu1 %v8571_v18  ;;  %3220 = vmatpush.msra.mxu3 %v3219_v51  ;;  %v3237_v18 = vand.u32 4294901760, %v3236_v33  ;;  %v3259_v51 = vand.u32 4294901760, %v8940_v50  ;;  %v3243_v28 = vand.u32 4294901760, %v3242_v61 }
 0x251   : > { %3071 = vmatpush.msra.mxu0 %v11581_v42  ;;  %3147 = vmatpush.msra.mxu2 %v8841_v0  ;;  %v8980_v10 = vand.u32 4294901760, %v3161_v7  ;;  %v11587_v42 = vld [vmem:[#allocation43_spill] sm:$0xff] }
 0x252   : > { %3106 = vmatpush.msra.mxu1 %v8583_v21  ;;  %3226 = vmatpush.msra.mxu3 %v3225_v31  ;;  %v3254_v21 = vsub.f32 %v8925_v3, %v3253_v32  ;;  %v11585_v31 = vand.u32 4294901760, %v8725_v48  ;;  %v3260_v11 = vsub.f32 %v8940_v50, %v3259_v51 }
 0x253   : > { %3075 = vmatpush.msra.mxu0 %v11583_v39  ;;  %3149 = vmatpush.msra.mxu2 %v8854_v34  ;;  %11586 = vst [vmem:[#allocation50_spill] sm:$0xff] %v8980_v10 }
 0x254   : > { %3108 = vmatpush.msra.mxu1 %v8597_v20  ;;  %3232 = vmatpush.msra.mxu3 %v3231_v13  ;;  %v3249_v20 = vand.u32 4294901760, %v3248_v25  ;;  %v3261_v13 = vand.u32 4294901760, %v3260_v11 }
 0x255   : > { %3079 = vmatpush.msra.mxu0 %v11584_v9  ;;  %3151 = vmatpush.msra.mxu2 %v8867_v19 }
 0x256   : > { %3110 = vmatpush.msra.mxu1 %v8609_v55  ;;  %3238 = vmatpush.msra.mxu3 %v3237_v18  ;;  %v3255_v55 = vand.u32 4294901760, %v3254_v21 }
 0x257   : > { %3083 = vmatpush.msra.mxu0 %v11585_v31  ;;  %3153 = vmatpush.msra.mxu2 %v8885_v26 }
 0x258   : > { %3112 = vmatpush.msra.mxu1 %v8622_v49  ;;  %3244 = vmatpush.msra.mxu3 %v3243_v28  ;;  %v2242_v33 = vpop.f32.mrf.mxu1  ;;  %v2296_v57 = vpop.f32.mrf.mxu2  ;;  %v494_v28 = vld [vmem:[%s6853_s17 + $0x88] sm:$0xff] }
 0x259   : > { %3085 = vmatmul.f32.vlgmr.msra.gmra.mxu0 %v8631_v47  ;;  %3155 = vmatpush.msra.mxu2 %v8899_v15  ;;  %v2243_v48 = vadd.f32 %v2242_v33, %v2142_v30  ;;  %v11588_v30 = vand.u32 4294901760, %v8718_v63  ;;  %v9122_v31 = vand.u32 4294901760, %v494_v28  ;;  %v490_v33 = vld [vmem:[%s6853_s17 + $0x68] sm:$0xff] }
 0x25a   : > { %3270 = vmatpush.msrb.mxu0 %v8718_v63  ;;  %3114 = vmatpush.msra.mxu1 %v8637_v24  ;;  %v11589_v24 = vand.u32 4294901760, %v8740_v43  ;;  %v11590_v63 = vand.u32 4294901760, %v8753_v5 }
 0x25b   : > { %3250 = vmatpush.msra.mxu3 %v3249_v20  ;;  %3157 = vmatpush.msra.mxu2 %v8914_v38  ;;  %v2297_v49 = vadd.f32 %v2296_v57, %v2243_v48  ;;  %v2335_v61 = vpop.f32.mrf.mxu3 }
 0x25c   : > { %3273 = vmatpush.msrb.mxu0 %v8740_v43  ;;  %3116 = vmatpush.msra.mxu1 %v11587_v42 }
 0x25d   : > { %3256 = vmatpush.msra.mxu3 %v3255_v55  ;;  %3163 = vmatmul.f32.vlgmr.msra.gmra.mxu2 %v8980_v10  ;;  %v2336_v18 = vadd.f32 %v2335_v61, %v2297_v49  ;;  %v488_v61 = vld [vmem:[%s6853_s17 + $0x58] sm:$0xff] }
 0x25e   : > { %3276 = vmatpush.msrb.mxu0 %v8753_v5  ;;  %3364 = vmatpush.msrb.mxu2 %v11588_v30 }
 0x25f   : > { %3118 = vmatpush.msra.mxu1 %v8672_v60  ;;  %3262 = vmatpush.msra.mxu3 %v3261_v13  ;;  %v11591_v60 = vand.u32 4294901760, %v8761_v46 }
 0x260   : > { %3264 = vmatmul.f32.vlgmr.msra.gmra.mxu3 %v8901_v45  ;;  %3279 = vmatpush.msrb.mxu0 %v8761_v46  ;;  %v11594_v46 = vand.u32 4294901760, %v8812_v12 }
 0x261   : > { %3368 = vmatpush.msrb.mxu2 %v11589_v24  ;;  %3431 = vmatpush.msrb.mxu3 %v8688_v29  ;;  %v9154_v24 = vsub.f32 %v494_v28, %v9122_v31  ;;  %v540_v28 = vld [vmem:[%s6853_s17 + $0x1f8] sm:$0xff] }
 0x262   : > { %3120 = vmatpush.msra.mxu1 %v8695_v59  ;;  %3282 = vmatpush.msrb.mxu0 %v8774_v16  ;;  %v11592_v59 = vand.u32 4294901760, %v8774_v16  ;;  %v504_v16 = vld [vmem:[%s6853_s17 + $0xd8] sm:$0xff] }
 0x263   : > { %3122 = vmatmul.f32.vlgmr.msra.gmra.mxu1 %v8631_v47  ;;  %3372 = vmatpush.msrb.mxu2 %v11590_v63 }
 0x264   : > { %3323 = vmatpush.msrb.mxu1 %v8688_v29  ;;  %3433 = vmatpush.msrb.mxu3 %v8710_v4  ;;  %v11593_v29 = vand.u32 4294901760, %v8795_v6 }
 0x265   : > { %3285 = vmatpush.msrb.mxu0 %v8795_v6  ;;  %3376 = vmatpush.msrb.mxu2 %v11591_v60  ;;  %v11596_v6 = vand.u32 4294901760, %v8839_v56 }
 0x266   : > { %3325 = vmatpush.msrb.mxu1 %v8710_v4  ;;  %3435 = vmatpush.msrb.mxu3 %v8727_v14  ;;  %v11595_v4 = vand.u32 4294901760, %v8826_v36 }
 0x267   : > { %3288 = vmatpush.msrb.mxu0 %v8812_v12  ;;  %3380 = vmatpush.msrb.mxu2 %v11592_v59 }
 0x268   : > { %3327 = vmatpush.msrb.mxu1 %v8727_v14  ;;  %3437 = vmatpush.msrb.mxu3 %v8733_v44  ;;  %v508_v14 = vld [vmem:[%s6853_s17 + $0xf8] sm:$0xff] }
 0x269   : > { %3291 = vmatpush.msrb.mxu0 %v8826_v36  ;;  %3384 = vmatpush.msrb.mxu2 %v11593_v29  ;;  %v9041_v5 = vand.u32 4294901760, %v508_v14  ;;  %v9057_v36 = vand.u32 4294901760, %v504_v16  ;;  %v9166_v29 = vand.u32 4294901760, %v488_v61 }
 0x26a   : > { %3329 = vmatpush.msrb.mxu1 %v8733_v44  ;;  %3439 = vmatpush.msrb.mxu3 %v8747_v2  ;;  %v11597_v44 = vand.u32 4294901760, %v8852_v58 }
 0x26b   : > { %3294 = vmatpush.msrb.mxu0 %v8839_v56  ;;  %3388 = vmatpush.msrb.mxu2 %v11594_v46  ;;  %v9060_v56 = vsub.f32 %v508_v14, %v9041_v5 }
 0x26c   : > { %3331 = vmatpush.msrb.mxu1 %v8747_v2  ;;  %3441 = vmatpush.msrb.mxu3 %v8766_v27  ;;  %v506_v2 = vld [vmem:[%s6853_s17 + $0xe8] sm:$0xff] }
 0x26d   : > { %3297 = vmatpush.msrb.mxu0 %v8852_v58  ;;  %3392 = vmatpush.msrb.mxu2 %v11595_v4  ;;  %v9049_v12 = vand.u32 4294901760, %v506_v2 }
 0x26e   : > { %3333 = vmatpush.msrb.mxu1 %v8766_v27  ;;  %3443 = vmatpush.msrb.mxu3 %v8783_v62 }
 0x26f   : > { %3300 = vmatpush.msrb.mxu0 %v8865_v17  ;;  %3396 = vmatpush.msrb.mxu2 %v11596_v6  ;;  %v484_v6 = vld [vmem:[%s6853_s17 + $0x38] sm:$0xff] }
 0x270   : > { %3335 = vmatpush.msrb.mxu1 %v8783_v62  ;;  %3445 = vmatpush.msrb.mxu3 %v8797_v52  ;;  %v2404_v43 = vpop.f32.mrf.mxu0  ;;  %v11598_v62 = vand.u32 4294901760, %v8865_v17  ;;  %v498_v17 = vld [vmem:[%s6853_s17 + $0xa8] sm:$0xff] }
 0x271   : > { %3303 = vmatpush.msrb.mxu0 %v8879_v41  ;;  %3400 = vmatpush.msrb.mxu2 %v11597_v44  ;;  %v2405_v27 = vadd.f32 %v2404_v43, %v2336_v18  ;;  %v9083_v41 = vsub.f32 %v504_v16, %v9057_v36 }
 0x272   : > { %3337 = vmatpush.msrb.mxu1 %v8797_v52  ;;  %3447 = vmatpush.msrb.mxu3 %v8814_v53  ;;  %v502_v52 = vld [vmem:[%s6853_s17 + $0xc8] sm:$0xff] }
 0x273   : > { %3306 = vmatpush.msrb.mxu0 %v8893_v1  ;;  %3404 = vmatpush.msrb.mxu2 %v11598_v62  ;;  %v9068_v58 = vand.u32 4294901760, %v502_v52  ;;  %v11334_v21 = vand.u32 4294901760, %v9083_v41  ;;  %v482_v62 = vld [vmem:[%s6853_s17 + $0x28] sm:$0xff] }
 0x274   : > { %3339 = vmatpush.msrb.mxu1 %v8814_v53  ;;  %3449 = vmatpush.msrb.mxu3 %v8828_v54  ;;  %v500_v53 = vld [vmem:[%s6853_s17 + $0xb8] sm:$0xff] }
 0x275   : > { %3309 = vmatpush.msrb.mxu0 %v8912_v40  ;;  %3408 = vmatpush.msrb.mxu2 %v3235_v37  ;;  %v9079_v1 = vand.u32 4294901760, %v500_v53  ;;  %v9095_v25 = vsub.f32 %v502_v52, %v9068_v58  ;;  %v3523_v48 = vsub.f32 %v9083_v41, %v11334_v21 }
 0x276   : > { %3341 = vmatpush.msrb.mxu1 %v8828_v54  ;;  %3451 = vmatpush.msrb.mxu3 %v8841_v0  ;;  %v9071_v54 = vsub.f32 %v506_v2, %v9049_v12 }
 0x277   : > { %3312 = vmatpush.msrb.mxu0 %v8925_v3  ;;  %3412 = vmatpush.msrb.mxu2 %v3241_v22  ;;  %v9110_v7 = vsub.f32 %v500_v53, %v9079_v1  ;;  %v11332_v20 = vand.u32 4294901760, %v9095_v25  ;;  %v3524_v60 = vand.u32 4294901760, %v3523_v48  ;;  %v9190_v53 = vand.u32 4294901760, %v484_v6 }
 0x278   : > { %3343 = vmatpush.msrb.mxu1 %v8841_v0  ;;  %3453 = vmatpush.msrb.mxu3 %v8854_v34  ;;  %v11337_v0 = vand.u32 4294901760, %v9060_v56  ;;  %v11336_v39 = vand.u32 4294901760, %v9071_v54 }
 0x279   : > { %3315 = vmatpush.msrb.mxu0 %v8940_v50  ;;  %3416 = vmatpush.msrb.mxu2 %v3247_v8  ;;  %v496_v8 = vld [vmem:[%s6853_s17 + $0x98] sm:$0xff]  ;;  %v11331_v13 = vand.u32 4294901760, %v9110_v7  ;;  %v3529_v18 = vsub.f32 %v9095_v25, %v11332_v20  ;;  %v9220_v48 = vsub.f32 %v484_v6, %v9190_v53 }
 0x27a   : > { %3345 = vmatpush.msrb.mxu1 %v8854_v34  ;;  %3455 = vmatpush.msrb.mxu3 %v8867_v19  ;;  %v2441_v37 = vpop.f32.mrf.mxu1  ;;  %v2482_v22 = vpop.f32.mrf.mxu2  ;;  %v9091_v34 = vand.u32 4294901760, %v498_v17  ;;  %v9106_v9 = vand.u32 4294901760, %v496_v8  ;;  %v492_v50 = vld [vmem:[%s6853_s17 + $0x78] sm:$0xff] }
 0x27b   : > { %3318 = vmatmul.f32.vlgmr.msrb.gmra.mxu0 %v8928_v35  ;;  %3420 = vmatpush.msrb.mxu2 %v3253_v32  ;;  %v2442_v40 = vadd.f32 %v2441_v37, %v2405_v27  ;;  %v9131_v57 = vand.u32 4294901760, %v492_v50  ;;  %v3535_v59 = vsub.f32 %v9110_v7, %v11331_v13  ;;  %v3530_v14 = vand.u32 4294901760, %v3529_v18  ;;  %v538_v18 = vld [vmem:[%s6853_s17 + $0x1e8] sm:$0xff] }
 0x27c   : > { %3468 = vmatpush.msra.mxu0 %v9041_v5  ;;  %3347 = vmatpush.msrb.mxu1 %v8867_v19  ;;  %v3511_v19 = vsub.f32 %v9060_v56, %v11337_v0  ;;  %v9126_v11 = vsub.f32 %v498_v17, %v9091_v34  ;;  %v9140_v49 = vsub.f32 %v496_v8, %v9106_v9  ;;  %v11326_v27 = vand.u32 4294901760, %v9154_v24 }
 0x27d   : > { %3457 = vmatpush.msrb.mxu3 %v8885_v26  ;;  %3424 = vmatpush.msrb.mxu2 %v3259_v51  ;;  %v2483_v3 = vadd.f32 %v2482_v22, %v2442_v40  ;;  %v2583_v32 = vpop.f32.mrf.mxu3  ;;  %v9159_v63 = vsub.f32 %v492_v50, %v9131_v57  ;;  %v3536_v16 = vand.u32 4294901760, %v3535_v59  ;;  %v9193_v17 = vsub.f32 %v488_v61, %v9166_v29  ;;  %v480_v22 = vld [vmem:[%s6853_s17 + $0x18] sm:$0xff]  ;;  %v478_v50 = vld [vmem:[%s6853_s17 + $0x8] sm:$0xff] }
 0x27e   : > { %3470 = vmatpush.msra.mxu0 %v9049_v12  ;;  %3349 = vmatpush.msrb.mxu1 %v8885_v26  ;;  %v3517_v26 = vsub.f32 %v9071_v54, %v11336_v39  ;;  %v3512_v55 = vand.u32 4294901760, %v3511_v19  ;;  %v11329_v30 = vand.u32 4294901760, %v9126_v11  ;;  %v11327_v46 = vand.u32 4294901760, %v9140_v49 }
 0x27f   : > { %3459 = vmatpush.msrb.mxu3 %v8899_v15  ;;  %3426 = vmatmul.f32.vlgmr.msrb.gmra.mxu2 %v8901_v45  ;;  %v9115_v51 = vadd.f32 %v2583_v32, %v2483_v3  ;;  %v11324_v2 = vand.u32 4294901760, %v9159_v63  ;;  %v3553_v8 = vsub.f32 %v9154_v24, %v11326_v27  ;;  %v9203_v3 = vand.u32 4294901760, %v482_v62 }
 0x280   : > { %3472 = vmatpush.msra.mxu0 %v9057_v36  ;;  %3611 = vmatpush.msra.mxu2 %v9060_v56  ;;  %v3518_v42 = vand.u32 4294901760, %v3517_v26  ;;  %v3541_v43 = vsub.f32 %v9126_v11, %v11329_v30  ;;  %v3547_v52 = vsub.f32 %v9140_v49, %v11327_v46  ;;  %v530_v30 = vld [vmem:[%s6853_s17 + $0x1a8] sm:$0xff] }
 0x281   : > { %3351 = vmatpush.msrb.mxu1 %v8899_v15  ;;  %3461 = vmatpush.msrb.mxu3 %v8914_v38  ;;  %v9144_v15 = vand.u32 4294901760, %v490_v33  ;;  %v3559_v19 = vsub.f32 %v9159_v63, %v11324_v2  ;;  %v9235_v6 = vsub.f32 %v482_v62, %v9203_v3 }
 0x282   : > { %3463 = vmatmul.f32.vlgmr.msrb.gmra.mxu3 %v8901_v45  ;;  %3474 = vmatpush.msra.mxu0 %v9068_v58  ;;  %v3542_v40 = vand.u32 4294901760, %v3541_v43  ;;  %v3548_v26 = vand.u32 4294901760, %v3547_v52  ;;  %v536_v43 = vld [vmem:[%s6853_s17 + $0x1d8] sm:$0xff] }
 0x283   : > { %3614 = vmatpush.msra.mxu2 %v9071_v54  ;;  %3664 = vmatpush.msra.mxu3 %v9041_v5  ;;  %v9172_v4 = vsub.f32 %v490_v33, %v9144_v15  ;;  %v9216_v33 = vand.u32 4294901760, %v480_v22  ;;  %v9265_v46 = vand.u32 4294901760, %v536_v43 }
 0x284   : > { %3353 = vmatpush.msrb.mxu1 %v8914_v38  ;;  %3476 = vmatpush.msra.mxu0 %v9079_v1  ;;  %v486_v38 = vld [vmem:[%s6853_s17 + $0x48] sm:$0xff] }
 0x285   : > { %3357 = vmatmul.f32.vlgmr.msrb.gmra.mxu1 %v8951_v23  ;;  %3617 = vmatpush.msra.mxu2 %v9083_v41  ;;  %v9179_v44 = vand.u32 4294901760, %v486_v38  ;;  %v11323_v37 = vand.u32 4294901760, %v9172_v4  ;;  %v9246_v62 = vsub.f32 %v480_v22, %v9216_v33  ;;  %v9292_v13 = vsub.f32 %v536_v43, %v9265_v46 }
 0x286   : > { %3513 = vmatpush.msra.mxu1 %v3512_v55  ;;  %3666 = vmatpush.msra.mxu3 %v9049_v12  ;;  %v11325_v55 = vand.u32 4294901760, %v9193_v17  ;;  %v9305_v43 = vand.u32 4294901760, %v530_v30 }
 0x287   : > { %3478 = vmatpush.msra.mxu0 %v9091_v34  ;;  %3620 = vmatpush.msra.mxu2 %v9095_v25  ;;  %v9206_v32 = vsub.f32 %v486_v38, %v9179_v44  ;;  %v3565_v61 = vsub.f32 %v9172_v4, %v11323_v37  ;;  %v3554_v38 = vand.u32 4294901760, %v3553_v8  ;;  %v9248_v8 = vand.u32 4294901760, %v538_v18  ;;  %v534_v37 = vld [vmem:[%s6853_s17 + $0x1c8] sm:$0xff] }
 0x288   : > { %3519 = vmatpush.msra.mxu1 %v3518_v42  ;;  %3668 = vmatpush.msra.mxu3 %v9057_v36  ;;  %v9227_v42 = vand.u32 4294901760, %v540_v28  ;;  %v9333_v10 = vsub.f32 %v530_v30, %v9305_v43  ;;  %v11603_v30 = vand.u32 4294901760, %v9292_v13 }
 0x289   : > { %3480 = vmatpush.msra.mxu0 %v9106_v9  ;;  %3623 = vmatpush.msra.mxu2 %v9110_v7  ;;  %v11328_v59 = vand.u32 4294901760, %v9206_v32  ;;  %11599 = vst [vmem:[#allocation43_spill] sm:$0xff] %v9248_v8 }
 0x28a   : > { %3525 = vmatpush.msra.mxu1 %v3524_v60  ;;  %3670 = vmatpush.msra.mxu3 %v9068_v58  ;;  %v9231_v60 = vand.u32 4294901760, %v478_v50  ;;  %v9255_v2 = vsub.f32 %v540_v28, %v9227_v42  ;;  %v3864_v47 = vsub.f32 %v9292_v13, %v11603_v30 }
 0x28b   : > { %3482 = vmatpush.msra.mxu0 %v9122_v31  ;;  %3626 = vmatpush.msra.mxu2 %v9126_v11  ;;  %v3577_v22 = vsub.f32 %v9206_v32, %v11328_v59 }
 0x28c   : > { %3531 = vmatpush.msra.mxu1 %v3530_v14  ;;  %3672 = vmatpush.msra.mxu3 %v9079_v1  ;;  %v3560_v14 = vand.u32 4294901760, %v3559_v19  ;;  %v3566_v19 = vand.u32 4294901760, %v3565_v61  ;;  %v9263_v27 = vsub.f32 %v478_v50, %v9231_v60  ;;  %v532_v61 = vld [vmem:[%s6853_s17 + $0x1b8] sm:$0xff]  ;;  %v11335_v50 = vand.u32 4294901760, %v9246_v62 }
 0x28d   : > { %3484 = vmatpush.msra.mxu0 %v9131_v57  ;;  %3629 = vmatpush.msra.mxu2 %v9140_v49  ;;  %v11340_v59 = vand.u32 4294901760, %v9255_v2 }
 0x28e   : > { %3537 = vmatpush.msra.mxu1 %v3536_v16  ;;  %3674 = vmatpush.msra.mxu3 %v9091_v34  ;;  %v3571_v16 = vsub.f32 %v9193_v17, %v11325_v55  ;;  %v11333_v55 = vand.u32 4294901760, %v9235_v6 }
 0x28f   : > { %3486 = vmatpush.msra.mxu0 %v9144_v15  ;;  %3632 = vmatpush.msra.mxu2 %v9154_v24 }
 0x290   : > { %3543 = vmatpush.msra.mxu1 %v3542_v40  ;;  %3676 = vmatpush.msra.mxu3 %v9106_v9  ;;  %v11330_v40 = vand.u32 4294901760, %v9220_v48  ;;  %v3572_v28 = vand.u32 4294901760, %v3571_v16  ;;  %v3578_v16 = vand.u32 4294901760, %v3577_v22 }
 0x291   : > { %3488 = vmatpush.msra.mxu0 %v9166_v29  ;;  %3635 = vmatpush.msra.mxu2 %v9159_v63 }
 0x292   : > { %3549 = vmatpush.msra.mxu1 %v3548_v26  ;;  %3678 = vmatpush.msra.mxu3 %v9122_v31  ;;  %v2637_v52 = vpop.f32.mrf.mxu0 }
 0x293   : > { %3490 = vmatpush.msra.mxu0 %v9179_v44  ;;  %3638 = vmatpush.msra.mxu2 %v9172_v4  ;;  %v2638_v26 = vadd.f32 %v2637_v52, %v9115_v51  ;;  %v9270_v51 = vand.u32 4294901760, %v534_v37  ;;  %v9278_v52 = vsub.f32 %v538_v18, %v9248_v8  ;;  %v11341_v18 = vand.u32 4294901760, %v9263_v27 }
 0x294   : > { %3555 = vmatpush.msra.mxu1 %v3554_v38  ;;  %3680 = vmatpush.msra.mxu3 %v9131_v57  ;;  %v3583_v38 = vsub.f32 %v9220_v48, %v11330_v40  ;;  %v3589_v40 = vsub.f32 %v9235_v6, %v11333_v55  ;;  %v3595_v55 = vsub.f32 %v9246_v62, %v11335_v50 }
 0x295   : > { %3492 = vmatpush.msra.mxu0 %v9190_v53  ;;  %3641 = vmatpush.msra.mxu2 %v9193_v17  ;;  %v9297_v20 = vsub.f32 %v534_v37, %v9270_v51  ;;  %v3852_v37 = vsub.f32 %v9255_v2, %v11340_v59  ;;  %v3601_v39 = vsub.f32 %v9263_v27, %v11341_v18  ;;  %v11600_v59 = vand.u32 4294901760, %v9060_v56 }
 0x296   : > { %3561 = vmatpush.msra.mxu1 %v3560_v14  ;;  %3682 = vmatpush.msra.mxu3 %v9144_v15  ;;  %v9283_v14 = vand.u32 4294901760, %v532_v61  ;;  %v3584_v22 = vand.u32 4294901760, %v3583_v38  ;;  %v526_v38 = vld [vmem:[%s6853_s17 + $0x188] sm:$0xff]  ;;  %v3590_v50 = vand.u32 4294901760, %v3589_v40  ;;  %v524_v40 = vld [vmem:[%s6853_s17 + $0x178] sm:$0xff]  ;;  %v3596_v18 = vand.u32 4294901760, %v3595_v55 }
 0x297   : > { %3494 = vmatpush.msra.mxu0 %v9203_v3  ;;  %3644 = vmatpush.msra.mxu2 %v9206_v32  ;;  %v11601_v45 = vand.u32 4294901760, %v9278_v52  ;;  %v9335_v56 = vand.u32 4294901760, %v526_v38 }
 0x298   : > { %3567 = vmatpush.msra.mxu1 %v3566_v19  ;;  %3684 = vmatpush.msra.mxu3 %v9166_v29  ;;  %v528_v19 = vld [vmem:[%s6853_s17 + $0x198] sm:$0xff] }
 0x299   : > { %3496 = vmatpush.msra.mxu0 %v9216_v33  ;;  %3647 = vmatpush.msra.mxu2 %v9220_v48  ;;  %v9321_v35 = vand.u32 4294901760, %v528_v19  ;;  %v3858_v0 = vsub.f32 %v9278_v52, %v11601_v45  ;;  %v3602_v45 = vand.u32 4294901760, %v3601_v39  ;;  %v9363_v55 = vsub.f32 %v526_v38, %v9335_v56 }
 0x29a   : > { %3573 = vmatpush.msra.mxu1 %v3572_v28  ;;  %3686 = vmatpush.msra.mxu3 %v9179_v44  ;;  %v9313_v28 = vsub.f32 %v532_v61, %v9283_v14 }
 0x29b   : > { %3498 = vmatpush.msra.mxu0 %v9231_v60  ;;  %3650 = vmatpush.msra.mxu2 %v9235_v6 }
 0x29c   : > { %3579 = vmatpush.msra.mxu1 %v3578_v16  ;;  %3688 = vmatpush.msra.mxu3 %v9190_v53  ;;  %v2676_v21 = vpop.f32.mrf.mxu1  ;;  %v2745_v23 = vpop.f32.mrf.mxu2  ;;  %v522_v16 = vld [vmem:[%s6853_s17 + $0x168] sm:$0xff] }
 0x29d   : > { %3705 = vmatpush.msrb.mxu0 %v11600_v59  ;;  %3653 = vmatpush.msra.mxu2 %v9246_v62  ;;  %v2677_v61 = vadd.f32 %v2676_v21, %v2638_v26  ;;  %v11602_v59 = vand.u32 4294901760, %v9071_v54  ;;  %v3853_v21 = vand.u32 4294901760, %v3852_v37  ;;  %v9347_v54 = vsub.f32 %v528_v19, %v9321_v35 }
 0x29e   : > { %3585 = vmatpush.msra.mxu1 %v3584_v22  ;;  %3690 = vmatpush.msra.mxu3 %v9203_v3  ;;  %v3859_v19 = vand.u32 4294901760, %v3858_v0  ;;  %v3865_v0 = vand.u32 4294901760, %v3864_v47  ;;  %v11609_v47 = vand.u32 4294901760, %v9333_v10 }
 0x29f   : > { %3709 = vmatpush.msrb.mxu0 %v11602_v59  ;;  %3656 = vmatpush.msra.mxu2 %v9263_v27  ;;  %v2746_v26 = vadd.f32 %v2745_v23, %v2677_v61  ;;  %v2782_v22 = vpop.f32.mrf.mxu3  ;;  %v9349_v59 = vand.u32 4294901760, %v524_v40  ;;  %v11604_v23 = vand.u32 4294901760, %v9083_v41  ;;  %v520_v61 = vld [vmem:[%s6853_s17 + $0x158] sm:$0xff]  ;;  %v9365_v41 = vand.u32 4294901760, %v522_v16 }
 0x2a0   : > { %3591 = vmatpush.msra.mxu1 %v3590_v50  ;;  %3692 = vmatpush.msra.mxu3 %v9216_v33  ;;  %v11605_v50 = vand.u32 4294901760, %v9297_v20  ;;  %v9378_v30 = vand.u32 4294901760, %v520_v61 }
 0x2a1   : > { %3713 = vmatpush.msrb.mxu0 %v11604_v23  ;;  %3809 = vmatpush.msrb.mxu2 %v9227_v42  ;;  %v9357_v39 = vadd.f32 %v2782_v22, %v2746_v26  ;;  %v11606_v23 = vand.u32 4294901760, %v9095_v25  ;;  %v11607_v26 = vand.u32 4294901760, %v9313_v28  ;;  %v518_v22 = vld [vmem:[%s6853_s17 + $0x148] sm:$0xff]  ;;  %v9376_v38 = vsub.f32 %v524_v40, %v9349_v59 }
 0x2a2   : > { %v3870_v37 = vsub.f32 %v9297_v20, %v11605_v50  ;;  %3597 = vmatpush.msra.mxu1 %v3596_v18  ;;  %3694 = vmatpush.msra.mxu3 %v9231_v60  ;;  %v3887_v50 = vand.u32 4294901760, %v9347_v54  ;;  %v11608_v25 = vand.u32 4294901760, %v9110_v7  ;;  %v11349_v40 = vand.u32 4294901760, %v9363_v55 }
 0x2a3   : > { %3717 = vmatpush.msrb.mxu0 %v11606_v23  ;;  %3811 = vmatpush.msrb.mxu2 %v9248_v8  ;;  %v3876_v18 = vsub.f32 %v9313_v28, %v11607_v26  ;;  %v516_v8 = vld [vmem:[%s6853_s17 + $0x138] sm:$0xff]  ;;  %v9392_v26 = vand.u32 4294901760, %v518_v22  ;;  %v11610_v7 = vand.u32 4294901760, %v9126_v11  ;;  %v514_v11 = vld [vmem:[%s6853_s17 + $0x128] sm:$0xff] }
 0x2a4   : > { %3854 = vmatpush.msrb.mxu3 %v3853_v21  ;;  %3603 = vmatpush.msra.mxu1 %v3602_v45  ;;  %v3871_v23 = vand.u32 4294901760, %v3870_v37  ;;  %v3882_v21 = vsub.f32 %v9333_v10, %v11609_v47  ;;  %v9390_v45 = vsub.f32 %v522_v16, %v9365_v41  ;;  %v3888_v37 = vsub.f32 %v9347_v54, %v3887_v50 }
 0x2a5   : > { %3721 = vmatpush.msrb.mxu0 %v11608_v25  ;;  %3813 = vmatpush.msrb.mxu2 %v9265_v46  ;;  %v9403_v16 = vsub.f32 %v520_v61, %v9378_v30  ;;  %v9405_v25 = vand.u32 4294901760, %v516_v8  ;;  %v11611_v47 = vand.u32 4294901760, %v9140_v49  ;;  %v11612_v49 = vand.u32 4294901760, %v9154_v24 }
 0x2a6   : > { %3772 = vmatpush.msrb.mxu1 %v9041_v5  ;;  %3860 = vmatpush.msrb.mxu3 %v3859_v19  ;;  %v3877_v5 = vand.u32 4294901760, %v3876_v18  ;;  %v3899_v19 = vand.u32 4294901760, %v9376_v38  ;;  %v3894_v18 = vsub.f32 %v9363_v55, %v11349_v40  ;;  %v3905_v61 = vand.u32 4294901760, %v9390_v45  ;;  %v510_v40 = vld [vmem:[%s6853_s17 + $0x108] sm:$0xff] }
 0x2a7   : > { %3725 = vmatpush.msrb.mxu0 %v11610_v7  ;;  %3815 = vmatpush.msrb.mxu2 %v9270_v51  ;;  %v512_v7 = vld [vmem:[%s6853_s17 + $0x118] sm:$0xff]  ;;  %v11613_v24 = vand.u32 4294901760, %v9159_v63 }
 0x2a8   : > { %3774 = vmatpush.msrb.mxu1 %v9049_v12  ;;  %3866 = vmatpush.msrb.mxu3 %v3865_v0  ;;  %v3883_v12 = vand.u32 4294901760, %v3882_v21  ;;  %v9417_v0 = vsub.f32 %v518_v22, %v9392_v26  ;;  %v3900_v21 = vsub.f32 %v9376_v38, %v3899_v19  ;;  %v9431_v22 = vsub.f32 %v516_v8, %v9405_v25 }
 0x2a9   : > { %3729 = vmatpush.msrb.mxu0 %v11611_v47  ;;  %3817 = vmatpush.msrb.mxu2 %v9283_v14  ;;  %v3911_v47 = vand.u32 4294901760, %v9403_v16  ;;  %v11614_v8 = vand.u32 4294901760, %v9172_v4  ;;  %v11615_v4 = vand.u32 4294901760, %v9193_v17 }
 0x2aa   : > { %3776 = vmatpush.msrb.mxu1 %v9057_v36  ;;  %3872 = vmatpush.msrb.mxu3 %v3871_v23  ;;  %v9423_v36 = vand.u32 4294901760, %v514_v11  ;;  %v3889_v23 = vand.u32 4294901760, %v3888_v37  ;;  %v3906_v37 = vsub.f32 %v9390_v45, %v3905_v61 }
 0x2ab   : > { %3733 = vmatpush.msrb.mxu0 %v11612_v49  ;;  %3819 = vmatpush.msrb.mxu2 %v9305_v43  ;;  %v3917_v49 = vand.u32 4294901760, %v9417_v0 }
 0x2ac   : > { %3778 = vmatpush.msrb.mxu1 %v9068_v58  ;;  %3878 = vmatpush.msrb.mxu3 %v3877_v5  ;;  %v9437_v58 = vand.u32 4294901760, %v512_v7  ;;  %v3895_v5 = vand.u32 4294901760, %v3894_v18  ;;  %v9448_v63 = vsub.f32 %v514_v11, %v9423_v36  ;;  %v3912_v18 = vsub.f32 %v9403_v16, %v3911_v47 }
 0x2ad   : > { %3737 = vmatpush.msrb.mxu0 %v11613_v24  ;;  %3821 = vmatpush.msrb.mxu2 %v9321_v35  ;;  %v3923_v24 = vand.u32 4294901760, %v9431_v22  ;;  %v3907_v11 = vand.u32 4294901760, %v3906_v37 }
 0x2ae   : > { %3780 = vmatpush.msrb.mxu1 %v9079_v1  ;;  %3884 = vmatpush.msrb.mxu3 %v3883_v12  ;;  %v9450_v1 = vand.u32 4294901760, %v510_v40  ;;  %v3901_v12 = vand.u32 4294901760, %v3900_v21  ;;  %v11616_v21 = vand.u32 4294901760, %v9206_v32  ;;  %v3929_v17 = vand.u32 4294901760, %v9448_v63 }
 0x2af   : > { %3741 = vmatpush.msrb.mxu0 %v11614_v8  ;;  %3823 = vmatpush.msrb.mxu2 %v9335_v56  ;;  %v11617_v8 = vand.u32 4294901760, %v9220_v48 }
 0x2b0   : > { %3782 = vmatpush.msrb.mxu1 %v9091_v34  ;;  %3890 = vmatpush.msrb.mxu3 %v3889_v23  ;;  %v9461_v34 = vsub.f32 %v512_v7, %v9437_v58  ;;  %v3918_v23 = vsub.f32 %v9417_v0, %v3917_v49  ;;  %v3913_v7 = vand.u32 4294901760, %v3912_v18  ;;  %v3930_v48 = vsub.f32 %v9448_v63, %v3929_v17 }
 0x2b1   : > { %3745 = vmatpush.msrb.mxu0 %v11615_v4  ;;  %3825 = vmatpush.msrb.mxu2 %v9349_v59 }
 0x2b2   : > { %3784 = vmatpush.msrb.mxu1 %v9106_v9  ;;  %3896 = vmatpush.msrb.mxu3 %v3895_v5  ;;  %v9472_v9 = vsub.f32 %v510_v40, %v9450_v1  ;;  %v3924_v5 = vsub.f32 %v9431_v22, %v3923_v24  ;;  %v3935_v32 = vand.u32 4294901760, %v9461_v34  ;;  %v3919_v40 = vand.u32 4294901760, %v3918_v23 }
 0x2b3   : > { %3749 = vmatpush.msrb.mxu0 %v11616_v21  ;;  %3827 = vmatpush.msrb.mxu2 %v9365_v41  ;;  %v3931_v4 = vand.u32 4294901760, %v3930_v48  ;;  %v558_v48 = vld [vmem:[%s6853_s17 + $0x288] sm:$0xff] }
 0x2b4   : > { %3786 = vmatpush.msrb.mxu1 %v9122_v31  ;;  %3902 = vmatpush.msrb.mxu3 %v3901_v12  ;;  %v2823_v37 = vpop.f32.mrf.mxu0  ;;  %v11618_v12 = vand.u32 4294901760, %v9235_v6  ;;  %v3941_v18 = vand.u32 4294901760, %v9472_v9  ;;  %v3936_v6 = vsub.f32 %v9461_v34, %v3935_v32 }
 0x2b5   : > { %3753 = vmatpush.msrb.mxu0 %v11617_v8  ;;  %v2824_v31 = vadd.f32 %v2823_v37, %v9357_v39  ;;  %3829 = vmatpush.msrb.mxu2 %v9378_v30  ;;  %v11619_v39 = vand.u32 4294901760, %v9246_v62  ;;  %v11623_v37 = vand.u32 4294901760, %v9255_v2  ;;  %v11624_v8 = vld [vmem:[#allocation21_spill] sm:$0xff] }
 0x2b6   : > { %3788 = vmatpush.msrb.mxu1 %v9131_v57  ;;  %3908 = vmatpush.msrb.mxu3 %v3907_v11  ;;  %v3925_v57 = vand.u32 4294901760, %v3924_v5  ;;  %v3942_v62 = vsub.f32 %v9472_v9, %v3941_v18  ;;  %v3937_v11 = vand.u32 4294901760, %v3936_v6  ;;  %v9655_v6 = vand.u32 4294901760, %v558_v48 }
 0x2b7   : > { %3757 = vmatpush.msrb.mxu0 %v11618_v12  ;;  %3831 = vmatpush.msrb.mxu2 %v9392_v26 }
 0x2b8   : > { %3790 = vmatpush.msrb.mxu1 %v9144_v15  ;;  %3914 = vmatpush.msrb.mxu3 %v3913_v7  ;;  %v11620_v15 = vand.u32 4294901760, %v9263_v27  ;;  %v11622_v7 = vld [vmem:[#allocation20_spill] sm:$0xff] }
 0x2b9   : > { %3761 = vmatpush.msrb.mxu0 %v11619_v39  ;;  %3833 = vmatpush.msrb.mxu2 %v9405_v25 }
 0x2ba   : > { %3792 = vmatpush.msrb.mxu1 %v9166_v29  ;;  %3920 = vmatpush.msrb.mxu3 %v3919_v40  ;;  %v11621_v29 = vld [vmem:[#allocation23_spill] sm:$0xff] }
 0x2bb   : > { %3765 = vmatpush.msrb.mxu0 %v11620_v15  ;;  %3835 = vmatpush.msrb.mxu2 %v9423_v36  ;;  %v11626_v40 = vld [vmem:[#allocation19_spill] sm:$0xff] }
 0x2bc   : > { %3794 = vmatpush.msrb.mxu1 %v9179_v44  ;;  %3926 = vmatpush.msrb.mxu3 %v3925_v57  ;;  %v3943_v44 = vand.u32 4294901760, %v3942_v62  ;;  %v554_v62 = vld [vmem:[%s6853_s17 + $0x268] sm:$0xff] }
 0x2bd   : > { %3504 = vmatmul.f32.vlgmr.msra.gmra.mxu0 %v11621_v29  ;;  %3837 = vmatpush.msrb.mxu2 %v9437_v58 }
 0x2be   : > { %3796 = vmatpush.msrb.mxu1 %v9190_v53  ;;  %3952 = vmatpush.msra.mxu0 %v9255_v2  ;;  %v2924_v27 = vpop.f32.mrf.mxu1  ;;  %v2978_v23 = vpop.f32.mrf.mxu2  ;;  %v11627_v2 = vand.u32 4294901760, %v9292_v13 }
 0x2bf   : > { %3932 = vmatpush.msrb.mxu3 %v3931_v4  ;;  %v2925_v21 = vadd.f32 %v2924_v27, %v2824_v31  ;;  %3839 = vmatpush.msrb.mxu2 %v9450_v1  ;;  %v11625_v31 = vand.u32 4294901760, %v9278_v52 }
 0x2c0   : > { %3798 = vmatpush.msrb.mxu1 %v9203_v3  ;;  %3955 = vmatpush.msra.mxu0 %v9278_v52  ;;  %v11629_v52 = vand.u32 4294901760, %v9297_v20 }
 0x2c1   : > { %3938 = vmatpush.msrb.mxu3 %v3937_v11  ;;  %3659 = vmatmul.f32.vlgmr.msra.gmra.mxu2 %v11622_v7  ;;  %v2979_v53 = vadd.f32 %v2978_v23, %v2925_v21  ;;  %v3017_v5 = vpop.f32.mrf.mxu3 }
 0x2c2   : > { %3958 = vmatpush.msra.mxu0 %v9292_v13  ;;  %4046 = vmatpush.msra.mxu2 %v11623_v37  ;;  %v11631_v13 = vand.u32 4294901760, %v9313_v28  ;;  %v11636_v37 = vld [vmem:[#allocation25_spill] sm:$0xff] }
 0x2c3   : > { %3800 = vmatpush.msrb.mxu1 %v9216_v33  ;;  %3944 = vmatpush.msrb.mxu3 %v3943_v44  ;;  %v3018_v3 = vadd.f32 %v3017_v5, %v2979_v53  ;;  %v11628_v33 = vld [vmem:[#allocation43_spill] sm:$0xff]  ;;  %v552_v44 = vld [vmem:[%s6853_s17 + $0x258] sm:$0xff]  ;;  %v9681_v53 = vand.u32 4294901760, %v554_v62  ;;  %v9684_v5 = vsub.f32 %v558_v48, %v9655_v6 }
 0x2c4   : > { %3698 = vmatmul.f32.vlgmr.msra.gmra.mxu3 %v11624_v8  ;;  %3961 = vmatpush.msra.mxu0 %v9297_v20  ;;  %v11633_v20 = vand.u32 4294901760, %v9333_v10  ;;  %v604_v48 = vld [vmem:[%s6853_s17 + $0x3f8] sm:$0xff] }
 0x2c5   : > { %4050 = vmatpush.msra.mxu2 %v11625_v31  ;;  %4113 = vmatpush.msra.mxu3 %v9227_v42  ;;  %v9693_v31 = vand.u32 4294901760, %v552_v44 }
 0x2c6   : > { %3802 = vmatpush.msrb.mxu1 %v9231_v60  ;;  %3964 = vmatpush.msra.mxu0 %v9313_v28  ;;  %v11630_v60 = vld [vmem:[#allocation18_spill] sm:$0xff]  ;;  %v568_v28 = vld [vmem:[%s6853_s17 + $0x2d8] sm:$0xff] }
 0x2c7   : > { %3605 = vmatmul.f32.vlgmr.msra.gmra.mxu1 %v11626_v40  ;;  %4054 = vmatpush.msra.mxu2 %v11627_v2 }
 0x2c8   : > { %4005 = vmatpush.msra.mxu1 %v9227_v42  ;;  %4115 = vmatpush.msra.mxu3 %v11628_v33  ;;  %v11632_v42 = vld [vmem:[#allocation22_spill] sm:$0xff] }
 0x2c9   : > { %3967 = vmatpush.msra.mxu0 %v9333_v10  ;;  %4058 = vmatpush.msra.mxu2 %v11629_v52  ;;  %v11634_v10 = vand.u32 4294901760, %v9363_v55  ;;  %v548_v52 = vld [vmem:[%s6853_s17 + $0x238] sm:$0xff] }
 0x2ca   : > { %4007 = vmatpush.msra.mxu1 %v11628_v33  ;;  %4117 = vmatpush.msra.mxu3 %v9265_v46 }
 0x2cb   : > { %3845 = vmatmul.f32.vlgmr.msrb.gmra.mxu2 %v11630_v60  ;;  %3970 = vmatpush.msra.mxu0 %v9347_v54  ;;  %v9587_v54 = vand.u32 4294901760, %v568_v28 }
 0x2cc   : > { %4009 = vmatpush.msra.mxu1 %v9265_v46  ;;  %4062 = vmatpush.msra.mxu2 %v11631_v13  ;;  %v572_v46 = vld [vmem:[%s6853_s17 + $0x2f8] sm:$0xff] }
 0x2cd   : > { %4119 = vmatpush.msra.mxu3 %v9270_v51  ;;  %3767 = vmatmul.f32.vlgmr.msrb.gmra.mxu0 %v11626_v40 }
 0x2ce   : > { %3946 = vmatmul.f32.vlgmr.msrb.gmra.mxu3 %v11632_v42  ;;  %3973 = vmatpush.msra.mxu0 %v9363_v55  ;;  %v566_v55 = vld [vmem:[%s6853_s17 + $0x2c8] sm:$0xff] }
 0x2cf   : > { %4011 = vmatpush.msra.mxu1 %v9270_v51  ;;  %4066 = vmatpush.msra.mxu2 %v11633_v20  ;;  %v9710_v20 = vsub.f32 %v554_v62, %v9681_v53 }
 0x2d0   : > { %4121 = vmatpush.msra.mxu3 %v9283_v14  ;;  %3804 = vmatmul.f32.vlgmr.msrb.gmra.mxu1 %v11626_v40 }
 0x2d1   : > { %3976 = vmatpush.msra.mxu0 %v9376_v38  ;;  %4013 = vmatpush.msra.mxu1 %v9283_v14 }
 0x2d2   : > { %4070 = vmatpush.msra.mxu2 %v3887_v50  ;;  %4123 = vmatpush.msra.mxu3 %v9305_v43  ;;  %v564_v50 = vld [vmem:[%s6853_s17 + $0x2b8] sm:$0xff] }
 0x2d3   : > { %3979 = vmatpush.msra.mxu0 %v9390_v45  ;;  %4015 = vmatpush.msra.mxu1 %v9305_v43  ;;  %v570_v43 = vld [vmem:[%s6853_s17 + $0x2e8] sm:$0xff] }
 0x2d4   : > { %4074 = vmatpush.msra.mxu2 %v11634_v10  ;;  %4125 = vmatpush.msra.mxu3 %v9321_v35  ;;  %v562_v45 = vld [vmem:[%s6853_s17 + $0x2a8] sm:$0xff] }
 0x2d5   : > { %3982 = vmatpush.msra.mxu0 %v9403_v16  ;;  %4017 = vmatpush.msra.mxu1 %v9321_v35  ;;  %v9571_v35 = vand.u32 4294901760, %v572_v46  ;;  %v9613_v16 = vsub.f32 %v568_v28, %v9587_v54  ;;  %v9723_v28 = vsub.f32 %v552_v44, %v9693_v31  ;;  %v9764_v44 = vand.u32 4294901760, %v604_v48 }
 0x2d6   : > { %4078 = vmatpush.msra.mxu2 %v3899_v19  ;;  %4127 = vmatpush.msra.mxu3 %v9335_v56  ;;  %v3086_v51 = vpop.f32.mrf.mxu0  ;;  %v9606_v19 = vand.u32 4294901760, %v564_v50 }
 0x2d7   : > { %3985 = vmatpush.msra.mxu0 %v9417_v0  ;;  %4019 = vmatpush.msra.mxu1 %v9335_v56  ;;  %v3087_v14 = vadd.f32 %v3086_v51, %v3018_v3  ;;  %v9579_v56 = vand.u32 4294901760, %v570_v43  ;;  %v550_v3 = vld [vmem:[%s6853_s17 + $0x248] sm:$0xff] }
 0x2d8   : > { %4082 = vmatpush.msra.mxu2 %v3905_v61  ;;  %4129 = vmatpush.msra.mxu3 %v9349_v59  ;;  %v9706_v13 = vand.u32 4294901760, %v550_v3 }
 0x2d9   : > { %3988 = vmatpush.msra.mxu0 %v9431_v22  ;;  %4021 = vmatpush.msra.mxu1 %v9349_v59  ;;  %v9590_v59 = vsub.f32 %v572_v46, %v9571_v35  ;;  %v9601_v38 = vsub.f32 %v570_v43, %v9579_v56  ;;  %v9617_v22 = vand.u32 4294901760, %v562_v45  ;;  %v546_v46 = vld [vmem:[%s6853_s17 + $0x228] sm:$0xff] }
 0x2da   : > { %4086 = vmatpush.msra.mxu2 %v3911_v47  ;;  %4131 = vmatpush.msra.mxu3 %v9365_v41  ;;  %v11635_v47 = vld [vmem:[#allocation24_spill] sm:$0xff] }
 0x2db   : > { %3991 = vmatpush.msra.mxu0 %v9448_v63  ;;  %4023 = vmatpush.msra.mxu1 %v9365_v41  ;;  %v9598_v41 = vand.u32 4294901760, %v566_v55  ;;  %v4198_v63 = vand.u32 4294901760, %v9601_v38  ;;  %v9647_v39 = vsub.f32 %v562_v45, %v9617_v22  ;;  %v9731_v45 = vand.u32 4294901760, %v546_v46 }
 0x2dc   : > { %4090 = vmatpush.msra.mxu2 %v3917_v49  ;;  %4133 = vmatpush.msra.mxu3 %v9378_v30  ;;  %v560_v49 = vld [vmem:[%s6853_s17 + $0x298] sm:$0xff] }
 0x2dd   : > { %3994 = vmatpush.msra.mxu0 %v9461_v34  ;;  %4025 = vmatpush.msra.mxu1 %v9378_v30  ;;  %v4192_v30 = vand.u32 4294901760, %v9590_v59 }
 0x2de   : > { %4094 = vmatpush.msra.mxu2 %v3923_v24  ;;  %4135 = vmatpush.msra.mxu3 %v9392_v26  ;;  %v9625_v24 = vsub.f32 %v566_v55, %v9598_v41 }
 0x2df   : > { %3997 = vmatpush.msra.mxu0 %v9472_v9  ;;  %4027 = vmatpush.msra.mxu1 %v9392_v26  ;;  %v4193_v34 = vsub.f32 %v9590_v59, %v4192_v30  ;;  %v556_v9 = vld [vmem:[%s6853_s17 + $0x278] sm:$0xff] }
 0x2e0   : > { %4098 = vmatpush.msra.mxu2 %v3929_v17  ;;  %4137 = vmatpush.msra.mxu3 %v9405_v25  ;;  %v3123_v61 = vpop.f32.mrf.mxu1  ;;  %v3164_v0 = vpop.f32.mrf.mxu2  ;;  %v9630_v17 = vsub.f32 %v564_v50, %v9606_v19  ;;  %v11361_v15 = vand.u32 4294901760, %v9625_v24  ;;  %v9667_v27 = vand.u32 4294901760, %v556_v9 }
 0x2e1   : > { %4000 = vmatmul.f32.vlgmr.msra.gmra.mxu0 %v11635_v47  ;;  %4029 = vmatpush.msra.mxu1 %v9405_v25  ;;  %v3124_v26 = vadd.f32 %v3123_v61, %v3087_v14  ;;  %v4194_v29 = vand.u32 4294901760, %v4193_v34  ;;  %v9719_v14 = vand.u32 4294901760, %v548_v52  ;;  %v11353_v61 = vand.u32 4294901760, %v9710_v20  ;;  %v544_v47 = vld [vmem:[%s6853_s17 + $0x218] sm:$0xff] }
 0x2e2   : > { %4150 = vmatpush.msrb.mxu0 %v9571_v35  ;;  %4102 = vmatpush.msra.mxu2 %v3935_v32  ;;  %v9639_v32 = vand.u32 4294901760, %v560_v49  ;;  %v11359_v4 = vand.u32 4294901760, %v9630_v17  ;;  %v4211_v7 = vsub.f32 %v9625_v24, %v11361_v15  ;;  %v9697_v2 = vsub.f32 %v556_v9, %v9667_v27  ;;  %v542_v9 = vld [vmem:[%s6853_s17 + $0x208] sm:$0xff] }
 0x2e3   : > { %4139 = vmatpush.msra.mxu3 %v9423_v36  ;;  %4031 = vmatpush.msra.mxu1 %v9423_v36  ;;  %v3165_v25 = vadd.f32 %v3164_v0, %v3124_v26  ;;  %v3265_v12 = vpop.f32.mrf.mxu3  ;;  %v4204_v36 = vand.u32 4294901760, %v9613_v16  ;;  %v9735_v0 = vsub.f32 %v550_v3, %v9706_v13  ;;  %v9751_v34 = vand.u32 4294901760, %v544_v47 }
 0x2e4   : > { %4152 = vmatpush.msrb.mxu0 %v9579_v56  ;;  %4106 = vmatpush.msra.mxu2 %v3941_v18  ;;  %v4199_v18 = vsub.f32 %v9601_v38, %v4198_v63  ;;  %v9670_v23 = vsub.f32 %v560_v49, %v9639_v32  ;;  %v4212_v60 = vand.u32 4294901760, %v4211_v7  ;;  %v11355_v43 = vand.u32 4294901760, %v9697_v2 }
 0x2e5   : > { %4141 = vmatpush.msra.mxu3 %v9437_v58  ;;  %4108 = vmatmul.f32.vlgmr.msra.gmra.mxu2 %v11632_v42  ;;  %v9644_v57 = vadd.f32 %v3265_v12, %v3165_v25  ;;  %v4205_v11 = vsub.f32 %v9613_v16, %v4204_v36  ;;  %v11352_v25 = vand.u32 4294901760, %v9723_v28  ;;  %v9746_v12 = vsub.f32 %v548_v52, %v9719_v14 }
 0x2e6   : > { %4154 = vmatpush.msrb.mxu0 %v9587_v54  ;;  %4293 = vmatpush.msrb.mxu2 %v9590_v59  ;;  %v4200_v21 = vand.u32 4294901760, %v4199_v18  ;;  %v11357_v40 = vand.u32 4294901760, %v9670_v23  ;;  %v4241_v49 = vsub.f32 %v9697_v2, %v11355_v43  ;;  %v4247_v62 = vsub.f32 %v9710_v20, %v11353_v61 }
 0x2e7   : > { %4033 = vmatpush.msra.mxu1 %v9437_v58  ;;  %4143 = vmatpush.msra.mxu3 %v9450_v1  ;;  %v11358_v58 = vand.u32 4294901760, %v9647_v39  ;;  %v4206_v8 = vand.u32 4294901760, %v4205_v11  ;;  %v9760_v11 = vsub.f32 %v546_v46, %v9731_v45  ;;  %v11350_v3 = vand.u32 4294901760, %v9746_v12 }
 0x2e8   : > { %4145 = vmatmul.f32.vlgmr.msra.gmra.mxu3 %v11632_v42  ;;  %4156 = vmatpush.msrb.mxu0 %v9598_v41  ;;  %v11356_v42 = vand.u32 4294901760, %v9684_v5  ;;  %v4229_v51 = vsub.f32 %v9670_v23, %v11357_v40  ;;  %v4242_v7 = vand.u32 4294901760, %v4241_v49  ;;  %v4248_v52 = vand.u32 4294901760, %v4247_v62 }
 0x2e9   : > { %4296 = vmatpush.msrb.mxu2 %v9601_v38  ;;  %4346 = vmatpush.msrb.mxu3 %v9571_v35  ;;  %v4223_v33 = vsub.f32 %v9647_v39, %v11358_v58 }
 0x2ea   : > { %4035 = vmatpush.msra.mxu1 %v9450_v1  ;;  %4158 = vmatpush.msrb.mxu0 %v9606_v19  ;;  %v4217_v1 = vsub.f32 %v9630_v17, %v11359_v4  ;;  %v4235_v50 = vsub.f32 %v9684_v5, %v11356_v42  ;;  %v4230_v26 = vand.u32 4294901760, %v4229_v51  ;;  %v598_v51 = vld [vmem:[%s6853_s17 + $0x3c8] sm:$0xff] }
 0x2eb   : > { %4039 = vmatmul.f32.vlgmr.msra.gmra.mxu1 %v11636_v37  ;;  %4299 = vmatpush.msrb.mxu2 %v9613_v16  ;;  %v4224_v55 = vand.u32 4294901760, %v4223_v33  ;;  %v4253_v37 = vsub.f32 %v9723_v28, %v11352_v25  ;;  %v600_v33 = vld [vmem:[%s6853_s17 + $0x3d8] sm:$0xff]  ;;  %v9806_v62 = vand.u32 4294901760, %v598_v51 }
 0x2ec   : > { %4195 = vmatpush.msrb.mxu1 %v4194_v29  ;;  %4348 = vmatpush.msrb.mxu3 %v9579_v56  ;;  %v4218_v10 = vand.u32 4294901760, %v4217_v1  ;;  %v4236_v18 = vand.u32 4294901760, %v4235_v50  ;;  %v11351_v29 = vand.u32 4294901760, %v9735_v0  ;;  %v9771_v1 = vand.u32 4294901760, %v542_v9 }
 0x2ed   : > { %4160 = vmatpush.msrb.mxu0 %v9617_v22  ;;  %4302 = vmatpush.msrb.mxu2 %v9625_v24  ;;  %v4254_v50 = vand.u32 4294901760, %v4253_v37  ;;  %v9800_v49 = vand.u32 4294901760, %v600_v33 }
 0x2ee   : > { %4201 = vmatpush.msrb.mxu1 %v4200_v21  ;;  %4350 = vmatpush.msrb.mxu3 %v9587_v54  ;;  %v602_v21 = vld [vmem:[%s6853_s17 + $0x3e8] sm:$0xff] }
 0x2ef   : > { %4162 = vmatpush.msrb.mxu0 %v9639_v32  ;;  %4305 = vmatpush.msrb.mxu2 %v9630_v17  ;;  %v9785_v46 = vand.u32 4294901760, %v602_v21 }
 0x2f0   : > { %4207 = vmatpush.msrb.mxu1 %v4206_v8  ;;  %4352 = vmatpush.msrb.mxu3 %v9598_v41  ;;  %v9777_v8 = vsub.f32 %v544_v47, %v9751_v34  ;;  %v4265_v47 = vsub.f32 %v9746_v12, %v11350_v3 }
 0x2f1   : > { %4164 = vmatpush.msrb.mxu0 %v9655_v6  ;;  %4308 = vmatpush.msrb.mxu2 %v9647_v39  ;;  %v9813_v3 = vsub.f32 %v602_v21, %v9785_v46 }
 0x2f2   : > { %4213 = vmatpush.msrb.mxu1 %v4212_v60  ;;  %4354 = vmatpush.msrb.mxu3 %v9606_v19  ;;  %v4259_v60 = vsub.f32 %v9735_v0, %v11351_v29 }
 0x2f3   : > { %4166 = vmatpush.msrb.mxu0 %v9667_v27  ;;  %4311 = vmatpush.msrb.mxu2 %v9670_v23  ;;  %v11364_v42 = vand.u32 4294901760, %v9813_v3 }
 0x2f4   : > { %4219 = vmatpush.msrb.mxu1 %v4218_v10  ;;  %4356 = vmatpush.msrb.mxu3 %v9617_v22  ;;  %v11354_v10 = vand.u32 4294901760, %v9760_v11 }
 0x2f5   : > { %4168 = vmatpush.msrb.mxu0 %v9681_v53  ;;  %4314 = vmatpush.msrb.mxu2 %v9684_v5 }
 0x2f6   : > { %4225 = vmatpush.msrb.mxu1 %v4224_v55  ;;  %4358 = vmatpush.msrb.mxu3 %v9639_v32  ;;  %v9791_v55 = vsub.f32 %v604_v48, %v9764_v44  ;;  %v11360_v48 = vand.u32 4294901760, %v9777_v8 }
 0x2f7   : > { %4170 = vmatpush.msrb.mxu0 %v9693_v31  ;;  %4317 = vmatpush.msrb.mxu2 %v9697_v2 }
 0x2f8   : > { %4231 = vmatpush.msrb.mxu1 %v4230_v26  ;;  %4360 = vmatpush.msrb.mxu3 %v9655_v6  ;;  %v9798_v26 = vsub.f32 %v542_v9, %v9771_v1  ;;  %v3319_v37 = vpop.f32.mrf.mxu0  ;;  %v4271_v9 = vsub.f32 %v9760_v11, %v11354_v10  ;;  %v11362_v29 = vand.u32 4294901760, %v9791_v55  ;;  %v9824_v10 = vsub.f32 %v600_v33, %v9800_v49 }
 0x2f9   : > { %4172 = vmatpush.msrb.mxu0 %v9706_v13  ;;  %4320 = vmatpush.msrb.mxu2 %v9710_v20  ;;  %v3320_v21 = vadd.f32 %v3319_v37, %v9644_v57  ;;  %v4277_v43 = vsub.f32 %v9777_v8, %v11360_v48  ;;  %v11637_v57 = vld [vmem:[#allocation29_spill] sm:$0xff] }
 0x2fa   : > { %4237 = vmatpush.msrb.mxu1 %v4236_v18  ;;  %4362 = vmatpush.msrb.mxu3 %v9667_v27  ;;  %v596_v18 = vld [vmem:[%s6853_s17 + $0x3b8] sm:$0xff]  ;;  %v11363_v61 = vand.u32 4294901760, %v9798_v26  ;;  %v4272_v33 = vand.u32 4294901760, %v4271_v9  ;;  %v590_v9 = vld [vmem:[%s6853_s17 + $0x388] sm:$0xff]  ;;  %v11366_v48 = vand.u32 4294901760, %v9824_v10 }
 0x2fb   : > { %4174 = vmatpush.msrb.mxu0 %v9719_v14  ;;  %4323 = vmatpush.msrb.mxu2 %v9723_v28  ;;  %v9818_v25 = vand.u32 4294901760, %v596_v18 }
 0x2fc   : > { %4243 = vmatpush.msrb.mxu1 %v4242_v7  ;;  %4364 = vmatpush.msrb.mxu3 %v9681_v53  ;;  %v4260_v7 = vand.u32 4294901760, %v4259_v60  ;;  %v4266_v60 = vand.u32 4294901760, %v4265_v47  ;;  %v592_v47 = vld [vmem:[%s6853_s17 + $0x398] sm:$0xff] }
 0x2fd   : > { %4176 = vmatpush.msrb.mxu0 %v9731_v45  ;;  %4326 = vmatpush.msrb.mxu2 %v9735_v0  ;;  %v9855_v15 = vand.u32 4294901760, %v592_v47 }
 0x2fe   : > { %4249 = vmatpush.msrb.mxu1 %v4248_v52  ;;  %4366 = vmatpush.msrb.mxu3 %v9693_v31  ;;  %v594_v52 = vld [vmem:[%s6853_s17 + $0x3a8] sm:$0xff] }
 0x2ff   : > { %4178 = vmatpush.msrb.mxu0 %v9751_v34  ;;  %4329 = vmatpush.msrb.mxu2 %v9746_v12  ;;  %v9838_v4 = vand.u32 4294901760, %v594_v52 }
 0x300   : > { %4255 = vmatpush.msrb.mxu1 %v4254_v50  ;;  %4368 = vmatpush.msrb.mxu3 %v9706_v13  ;;  %v9833_v50 = vsub.f32 %v598_v51, %v9806_v62  ;;  %v4534_v51 = vsub.f32 %v9791_v55, %v11362_v29 }
 0x301   : > { %4180 = vmatpush.msrb.mxu0 %v9771_v1  ;;  %4332 = vmatpush.msrb.mxu2 %v9760_v11  ;;  %v9867_v29 = vsub.f32 %v594_v52, %v9838_v4 }
 0x302   : > { %4261 = vmatpush.msrb.mxu1 %v4260_v7  ;;  %4370 = vmatpush.msrb.mxu3 %v9719_v14  ;;  %v3358_v40 = vpop.f32.mrf.mxu1  ;;  %v3427_v58 = vpop.f32.mrf.mxu2  ;;  %v9846_v7 = vsub.f32 %v596_v18, %v9818_v25 }
 0x303   : > { %4186 = vmatmul.f32.vlgmr.msrb.gmra.mxu0 %v11637_v57  ;;  %4335 = vmatpush.msrb.mxu2 %v9777_v8  ;;  %v3359_v37 = vadd.f32 %v3358_v40, %v3320_v21  ;;  %v4283_v57 = vsub.f32 %v9798_v26, %v11363_v61  ;;  %v4278_v40 = vand.u32 4294901760, %v4277_v43  ;;  %v11365_v21 = vand.u32 4294901760, %v9833_v50 }
 0x304   : > { %4387 = vmatpush.msra.mxu0 %v4192_v30  ;;  %4267 = vmatpush.msrb.mxu1 %v4266_v60  ;;  %v588_v30 = vld [vmem:[%s6853_s17 + $0x378] sm:$0xff]  ;;  %v4540_v60 = vsub.f32 %v9813_v3, %v11364_v42  ;;  %v9869_v61 = vand.u32 4294901760, %v590_v9  ;;  %v4535_v43 = vand.u32 4294901760, %v4534_v51  ;;  %v11367_v38 = vand.u32 4294901760, %v9846_v7 }
 0x305   : > { %4372 = vmatpush.msrb.mxu3 %v9731_v45  ;;  %4338 = vmatpush.msrb.mxu2 %v9798_v26  ;;  %v3428_v18 = vadd.f32 %v3427_v58, %v3359_v37  ;;  %v3464_v59 = vpop.f32.mrf.mxu3  ;;  %v11638_v58 = vld [vmem:[#allocation27_spill] sm:$0xff]  ;;  %v4284_v52 = vand.u32 4294901760, %v4283_v57  ;;  %v9884_v42 = vsub.f32 %v592_v47, %v9855_v15  ;;  %v9886_v51 = vand.u32 4294901760, %v588_v30 }
 0x306   : > { %4391 = vmatpush.msra.mxu0 %v4198_v63  ;;  %4273 = vmatpush.msrb.mxu1 %v4272_v33  ;;  %v586_v63 = vld [vmem:[%s6853_s17 + $0x368] sm:$0xff]  ;;  %v4546_v33 = vsub.f32 %v9824_v10, %v11366_v48  ;;  %v4552_v16 = vsub.f32 %v9833_v50, %v11365_v21  ;;  %v11641_v57 = vand.u32 4294901760, %v9625_v24  ;;  %v9898_v47 = vsub.f32 %v590_v9, %v9869_v61 }
 0x307   : > { %4374 = vmatpush.msrb.mxu3 %v9751_v34  ;;  %4341 = vmatmul.f32.vlgmr.msrb.gmra.mxu2 %v11638_v58  ;;  %v9873_v37 = vadd.f32 %v3464_v59, %v3428_v18  ;;  %v11640_v18 = vld [vmem:[#allocation28_spill] sm:$0xff]  ;;  %v4541_v59 = vand.u32 4294901760, %v4540_v60  ;;  %v4558_v21 = vsub.f32 %v9846_v7, %v11367_v38  ;;  %v11642_v24 = vand.u32 4294901760, %v9630_v17  ;;  %v11643_v58 = vld [vmem:[#allocation26_spill] sm:$0xff] }
 0x308   : > { %4395 = vmatpush.msra.mxu0 %v4204_v36  ;;  %4491 = vmatpush.msra.mxu2 %v9764_v44  ;;  %v584_v36 = vld [vmem:[%s6853_s17 + $0x358] sm:$0xff]  ;;  %v4547_v60 = vand.u32 4294901760, %v4546_v33  ;;  %v9911_v9 = vsub.f32 %v588_v30, %v9886_v51  ;;  %v11644_v17 = vand.u32 4294901760, %v9867_v29  ;;  %v11369_v33 = vand.u32 4294901760, %v9898_v47 }
 0x309   : > { %11639 = vst [vmem:[#allocation23_spill] sm:$0xff] %v9873_v37  ;;  %4279 = vmatpush.msrb.mxu1 %v4278_v40  ;;  %4376 = vmatpush.msrb.mxu3 %v9771_v1  ;;  %v9900_v40 = vand.u32 4294901760, %v586_v63  ;;  %v9913_v48 = vand.u32 4294901760, %v584_v36  ;;  %v580_v37 = vld [vmem:[%s6853_s17 + $0x338] sm:$0xff]  ;;  %v11645_v38 = vand.u32 4294901760, %v9647_v39  ;;  %v578_v39 = vld [vmem:[%s6853_s17 + $0x328] sm:$0xff] }
 0x30a   : > { %4380 = vmatmul.f32.vlgmr.msrb.gmra.mxu3 %v11640_v18  ;;  %4399 = vmatpush.msra.mxu0 %v11641_v57  ;;  %v582_v18 = vld [vmem:[%s6853_s17 + $0x348] sm:$0xff]  ;;  %v11368_v57 = vand.u32 4294901760, %v9884_v42 }
 0x30b   : > { %4493 = vmatpush.msra.mxu2 %v9785_v46  ;;  %4536 = vmatpush.msra.mxu3 %v4535_v43  ;;  %v4553_v43 = vand.u32 4294901760, %v4552_v16  ;;  %v9924_v30 = vsub.f32 %v586_v63, %v9900_v40  ;;  %v4559_v16 = vand.u32 4294901760, %v4558_v21  ;;  %v9937_v63 = vsub.f32 %v584_v36, %v9913_v48 }
 0x30c   : > { %4285 = vmatpush.msrb.mxu1 %v4284_v52  ;;  %4403 = vmatpush.msra.mxu0 %v11642_v24  ;;  %v4564_v52 = vsub.f32 %v9867_v29, %v11644_v17  ;;  %v9926_v24 = vand.u32 4294901760, %v582_v18  ;;  %v9939_v17 = vand.u32 4294901760, %v580_v37  ;;  %v4576_v21 = vsub.f32 %v9898_v47, %v11369_v33  ;;  %v574_v33 = vld [vmem:[%s6853_s17 + $0x308] sm:$0xff] }
 0x30d   : > { %4287 = vmatmul.f32.vlgmr.msrb.gmra.mxu1 %v11643_v58  ;;  %4495 = vmatpush.msra.mxu2 %v9800_v49  ;;  %v4587_v36 = vand.u32 4294901760, %v9924_v30 }
 0x30e   : > { %4454 = vmatpush.msra.mxu1 %v9571_v35  ;;  %4542 = vmatpush.msra.mxu3 %v4541_v59  ;;  %v4570_v35 = vsub.f32 %v9884_v42, %v11368_v57  ;;  %v4581_v59 = vand.u32 4294901760, %v9911_v9  ;;  %v576_v57 = vld [vmem:[%s6853_s17 + $0x318] sm:$0xff] }
 0x30f   : > { %4407 = vmatpush.msra.mxu0 %v11645_v38  ;;  %4497 = vmatpush.msra.mxu2 %v9806_v62  ;;  %v11646_v38 = vand.u32 4294901760, %v9670_v23  ;;  %v11647_v23 = vand.u32 4294901760, %v9684_v5  ;;  %v11648_v5 = vand.u32 4294901760, %v9697_v2 }
 0x310   : > { %4456 = vmatpush.msra.mxu1 %v9579_v56  ;;  %4548 = vmatpush.msra.mxu3 %v4547_v60  ;;  %v4565_v56 = vand.u32 4294901760, %v4564_v52  ;;  %v9951_v60 = vsub.f32 %v582_v18, %v9926_v24  ;;  %v4593_v52 = vand.u32 4294901760, %v9937_v63  ;;  %v9965_v18 = vsub.f32 %v580_v37, %v9939_v17 }
 0x311   : > { %4411 = vmatpush.msra.mxu0 %v11646_v38  ;;  %4499 = vmatpush.msra.mxu2 %v9818_v25  ;;  %v9957_v38 = vand.u32 4294901760, %v578_v39  ;;  %v11649_v37 = vand.u32 4294901760, %v9710_v20  ;;  %v11650_v20 = vand.u32 4294901760, %v9723_v28 }
 0x312   : > { %4458 = vmatpush.msra.mxu1 %v9587_v54  ;;  %4554 = vmatpush.msra.mxu3 %v4553_v43  ;;  %v4571_v54 = vand.u32 4294901760, %v4570_v35  ;;  %v4582_v43 = vsub.f32 %v9911_v9, %v4581_v59  ;;  %v4599_v35 = vand.u32 4294901760, %v9951_v60 }
 0x313   : > { %4415 = vmatpush.msra.mxu0 %v11647_v23  ;;  %4501 = vmatpush.msra.mxu2 %v9838_v4  ;;  %v9971_v23 = vand.u32 4294901760, %v576_v57  ;;  %v9982_v2 = vsub.f32 %v578_v39, %v9957_v38 }
 0x314   : > { %4460 = vmatpush.msra.mxu1 %v9598_v41  ;;  %4560 = vmatpush.msra.mxu3 %v4559_v16  ;;  %v4577_v41 = vand.u32 4294901760, %v4576_v21  ;;  %v4588_v16 = vsub.f32 %v9924_v30, %v4587_v36  ;;  %v4605_v21 = vand.u32 4294901760, %v9965_v18 }
 0x315   : > { %4419 = vmatpush.msra.mxu0 %v11648_v5  ;;  %4503 = vmatpush.msra.mxu2 %v9855_v15  ;;  %v9984_v5 = vand.u32 4294901760, %v574_v33  ;;  %v9995_v39 = vsub.f32 %v576_v57, %v9971_v23  ;;  %v4611_v28 = vand.u32 4294901760, %v9982_v2 }
 0x316   : > { %4462 = vmatpush.msra.mxu1 %v9606_v19  ;;  %4566 = vmatpush.msra.mxu3 %v4565_v56  ;;  %v4583_v19 = vand.u32 4294901760, %v4582_v43  ;;  %v4594_v56 = vsub.f32 %v9937_v63, %v4593_v52  ;;  %v11651_v43 = vand.u32 4294901760, %v9735_v0  ;;  %v4606_v57 = vsub.f32 %v9965_v18, %v4605_v21 }
 0x317   : > { %4423 = vmatpush.msra.mxu0 %v11649_v37  ;;  %4505 = vmatpush.msra.mxu2 %v9869_v61  ;;  %v10006_v37 = vsub.f32 %v574_v33, %v9984_v5  ;;  %v4617_v0 = vand.u32 4294901760, %v9995_v39 }
 0x318   : > { %4464 = vmatpush.msra.mxu1 %v9617_v22  ;;  %4572 = vmatpush.msra.mxu3 %v4571_v54  ;;  %v4589_v22 = vand.u32 4294901760, %v4588_v16  ;;  %v4600_v54 = vsub.f32 %v9951_v60, %v4599_v35  ;;  %v11653_v16 = vand.u32 4294901760, %v9760_v11  ;;  %v11655_v11 = vand.u32 4294901760, %v9798_v26 }
 0x319   : > { %4427 = vmatpush.msra.mxu0 %v11650_v20  ;;  %4507 = vmatpush.msra.mxu2 %v9886_v51  ;;  %v11657_v26 = vand.u32 4294901760, %v9791_v55 }
 0x31a   : > { %4466 = vmatpush.msra.mxu1 %v9639_v32  ;;  %4578 = vmatpush.msra.mxu3 %v4577_v41  ;;  %v4595_v32 = vand.u32 4294901760, %v4594_v56  ;;  %v11652_v41 = vand.u32 4294901760, %v9746_v12  ;;  %v4601_v33 = vand.u32 4294901760, %v4600_v54  ;;  %v4623_v12 = vand.u32 4294901760, %v10006_v37 }
 0x31b   : > { %4431 = vmatpush.msra.mxu0 %v11651_v43  ;;  %4509 = vmatpush.msra.mxu2 %v9900_v40  ;;  %v11654_v56 = vand.u32 4294901760, %v9777_v8 }
 0x31c   : > { %4468 = vmatpush.msra.mxu1 %v9655_v6  ;;  %4584 = vmatpush.msra.mxu3 %v4583_v19  ;;  %v4612_v6 = vsub.f32 %v9982_v2, %v4611_v28  ;;  %v4607_v19 = vand.u32 4294901760, %v4606_v57  ;;  %v4624_v8 = vsub.f32 %v10006_v37, %v4623_v12 }
 0x31d   : > { %4435 = vmatpush.msra.mxu0 %v11652_v41  ;;  %4511 = vmatpush.msra.mxu2 %v9913_v48 }
 0x31e   : > { %4470 = vmatpush.msra.mxu1 %v9667_v27  ;;  %4590 = vmatpush.msra.mxu3 %v4589_v22  ;;  %v4618_v27 = vsub.f32 %v9995_v39, %v4617_v0  ;;  %v11659_v22 = vand.u32 4294901760, %v9813_v3 }
 0x31f   : > { %4439 = vmatpush.msra.mxu0 %v11653_v16  ;;  %4513 = vmatpush.msra.mxu2 %v9926_v24  ;;  %v11667_v16 = vld [vmem:[#allocation32_spill] sm:$0xff] }
 0x320   : > { %4472 = vmatpush.msra.mxu1 %v9681_v53  ;;  %4596 = vmatpush.msra.mxu3 %v4595_v32  ;;  %v4613_v53 = vand.u32 4294901760, %v4612_v6  ;;  %v4619_v20 = vand.u32 4294901760, %v4618_v27  ;;  %v616_v32 = vld [vmem:[%s6853_s17 + $0x458] sm:$0xff]  ;;  %v614_v6 = vld [vmem:[%s6853_s17 + $0x448] sm:$0xff] }
 0x321   : > { %4443 = vmatpush.msra.mxu0 %v11654_v56  ;;  %4515 = vmatpush.msra.mxu2 %v9939_v17 }
 0x322   : > { %4474 = vmatpush.msra.mxu1 %v9693_v31  ;;  %4602 = vmatpush.msra.mxu3 %v4601_v33  ;;  %v4625_v31 = vand.u32 4294901760, %v4624_v8 }
 0x323   : > { %4447 = vmatpush.msra.mxu0 %v11655_v11  ;;  %4517 = vmatpush.msra.mxu2 %v9957_v38 }
 0x324   : > { %4476 = vmatpush.msra.mxu1 %v9706_v13  ;;  %4608 = vmatpush.msra.mxu3 %v4607_v19  ;;  %v11656_v13 = vld [vmem:[#allocation33_spill] sm:$0xff]  ;;  %v10220_v19 = vand.u32 4294901760, %v616_v32 }
 0x325   : > { %4449 = vmatmul.f32.vlgmr.msra.gmra.mxu0 %v11643_v58  ;;  %4519 = vmatpush.msra.mxu2 %v9971_v23 }
 0x326   : > { %4634 = vmatpush.msrb.mxu0 %v9791_v55  ;;  %4478 = vmatpush.msra.mxu1 %v9719_v14  ;;  %v11658_v14 = vld [vmem:[#allocation30_spill] sm:$0xff] }
 0x327   : > { %4614 = vmatpush.msra.mxu3 %v4613_v53  ;;  %4521 = vmatpush.msra.mxu2 %v9984_v5  ;;  %v612_v53 = vld [vmem:[%s6853_s17 + $0x438] sm:$0xff] }
 0x328   : > { %4637 = vmatpush.msrb.mxu0 %v9813_v3  ;;  %4480 = vmatpush.msra.mxu1 %v9731_v45  ;;  %v11660_v45 = vand.u32 4294901760, %v9824_v10  ;;  %v11664_v3 = vand.u32 4294901760, %v9884_v42 }
 0x329   : > { %4620 = vmatpush.msra.mxu3 %v4619_v20  ;;  %4527 = vmatmul.f32.vlgmr.msra.gmra.mxu2 %v11656_v13  ;;  %v10233_v20 = vand.u32 4294901760, %v614_v6 }
 0x32a   : > { %4640 = vmatpush.msrb.mxu0 %v9824_v10  ;;  %4728 = vmatpush.msrb.mxu2 %v11657_v26  ;;  %v11665_v10 = vand.u32 4294901760, %v9898_v47 }
 0x32b   : > { %4482 = vmatpush.msra.mxu1 %v9751_v34  ;;  %4626 = vmatpush.msra.mxu3 %v4625_v31  ;;  %v11661_v34 = vand.u32 4294901760, %v9833_v50 }
 0x32c   : > { %4628 = vmatmul.f32.vlgmr.msra.gmra.mxu3 %v11658_v14  ;;  %4643 = vmatpush.msrb.mxu0 %v9833_v50 }
 0x32d   : > { %4732 = vmatpush.msrb.mxu2 %v11659_v22  ;;  %4795 = vmatpush.msrb.mxu3 %v9764_v44 }
 0x32e   : > { %4484 = vmatpush.msra.mxu1 %v9771_v1  ;;  %4646 = vmatpush.msrb.mxu0 %v9846_v7  ;;  %v11662_v1 = vand.u32 4294901760, %v9846_v7  ;;  %v626_v7 = vld [vmem:[%s6853_s17 + $0x4a8] sm:$0xff] }
 0x32f   : > { %4486 = vmatmul.f32.vlgmr.msra.gmra.mxu1 %v11643_v58  ;;  %4736 = vmatpush.msrb.mxu2 %v11660_v45  ;;  %v10246_v45 = vand.u32 4294901760, %v612_v53 }
 0x330   : > { %4687 = vmatpush.msrb.mxu1 %v9764_v44  ;;  %4797 = vmatpush.msrb.mxu3 %v9785_v46  ;;  %v11663_v44 = vand.u32 4294901760, %v9867_v29 }
 0x331   : > { %4649 = vmatpush.msrb.mxu0 %v9867_v29  ;;  %4740 = vmatpush.msrb.mxu2 %v11661_v34 }
 0x332   : > { %4689 = vmatpush.msrb.mxu1 %v9785_v46  ;;  %4799 = vmatpush.msrb.mxu3 %v9800_v49 }
 0x333   : > { %4652 = vmatpush.msrb.mxu0 %v9884_v42  ;;  %4744 = vmatpush.msrb.mxu2 %v11662_v1  ;;  %v636_v42 = vld [vmem:[%s6853_s17 + $0x4f8] sm:$0xff]  ;;  %v10250_v1 = vsub.f32 %v616_v32, %v10220_v19  ;;  %v666_v32 = vld [vmem:[%s6853_s17 + $0x5e8] sm:$0xff] }
 0x334   : > { %4691 = vmatpush.msrb.mxu1 %v9800_v49  ;;  %4801 = vmatpush.msrb.mxu3 %v9806_v62  ;;  %v628_v49 = vld [vmem:[%s6853_s17 + $0x4b8] sm:$0xff] }
 0x335   : > { %4655 = vmatpush.msrb.mxu0 %v9898_v47  ;;  %4748 = vmatpush.msrb.mxu2 %v11663_v44  ;;  %v11666_v47 = vld [vmem:[#allocation31_spill] sm:$0xff] }
 0x336   : > { %4693 = vmatpush.msrb.mxu1 %v9806_v62  ;;  %4803 = vmatpush.msrb.mxu3 %v9818_v25 }
 0x337   : > { %4658 = vmatpush.msrb.mxu0 %v9911_v9  ;;  %4752 = vmatpush.msrb.mxu2 %v11664_v3  ;;  %v624_v9 = vld [vmem:[%s6853_s17 + $0x498] sm:$0xff] }
 0x338   : > { %4695 = vmatpush.msrb.mxu1 %v9818_v25  ;;  %4805 = vmatpush.msrb.mxu3 %v9838_v4  ;;  %v634_v25 = vld [vmem:[%s6853_s17 + $0x4e8] sm:$0xff] }
 0x339   : > { %4661 = vmatpush.msrb.mxu0 %v9924_v30  ;;  %4756 = vmatpush.msrb.mxu2 %v11665_v10  ;;  %v10108_v29 = vand.u32 4294901760, %v634_v25 }
 0x33a   : > { %4697 = vmatpush.msrb.mxu1 %v9838_v4  ;;  %4807 = vmatpush.msrb.mxu3 %v9855_v15  ;;  %v10100_v4 = vand.u32 4294901760, %v636_v42 }
 0x33b   : > { %4664 = vmatpush.msrb.mxu0 %v9937_v63  ;;  %4760 = vmatpush.msrb.mxu2 %v4581_v59  ;;  %v10130_v50 = vsub.f32 %v634_v25, %v10108_v29  ;;  %v622_v63 = vld [vmem:[%s6853_s17 + $0x488] sm:$0xff]  ;;  %v10262_v25 = vsub.f32 %v614_v6, %v10233_v20 }
 0x33c   : > { %4699 = vmatpush.msrb.mxu1 %v9855_v15  ;;  %4809 = vmatpush.msrb.mxu3 %v9869_v61  ;;  %v632_v15 = vld [vmem:[%s6853_s17 + $0x4d8] sm:$0xff]  ;;  %v10119_v55 = vsub.f32 %v636_v42, %v10100_v4 }
 0x33d   : > { %4667 = vmatpush.msrb.mxu0 %v9951_v60  ;;  %4764 = vmatpush.msrb.mxu2 %v4587_v36  ;;  %v10116_v46 = vand.u32 4294901760, %v632_v15  ;;  %v4880_v30 = vand.u32 4294901760, %v10130_v50  ;;  %v10168_v36 = vand.u32 4294901760, %v624_v9 }
 0x33e   : > { %4701 = vmatpush.msrb.mxu1 %v9869_v61  ;;  %4811 = vmatpush.msrb.mxu3 %v9886_v51  ;;  %v630_v61 = vld [vmem:[%s6853_s17 + $0x4c8] sm:$0xff] }
 0x33f   : > { %4670 = vmatpush.msrb.mxu0 %v9965_v18  ;;  %4768 = vmatpush.msrb.mxu2 %v4593_v52  ;;  %v10127_v62 = vand.u32 4294901760, %v630_v61  ;;  %v10142_v58 = vsub.f32 %v632_v15, %v10116_v46  ;;  %v620_v18 = vld [vmem:[%s6853_s17 + $0x478] sm:$0xff] }
 0x340   : > { %4703 = vmatpush.msrb.mxu1 %v9886_v51  ;;  %4813 = vmatpush.msrb.mxu3 %v9900_v40  ;;  %v10136_v51 = vand.u32 4294901760, %v628_v49  ;;  %v608_v15 = vld [vmem:[%s6853_s17 + $0x418] sm:$0xff] }
 0x341   : > { %4673 = vmatpush.msrb.mxu0 %v9982_v2  ;;  %4772 = vmatpush.msrb.mxu2 %v4599_v35  ;;  %v4886_v60 = vand.u32 4294901760, %v10142_v58  ;;  %v10182_v35 = vand.u32 4294901760, %v622_v63 }
 0x342   : > { %4705 = vmatpush.msrb.mxu1 %v9900_v40  ;;  %4815 = vmatpush.msrb.mxu3 %v9913_v48  ;;  %v10147_v40 = vand.u32 4294901760, %v626_v7  ;;  %v10160_v59 = vsub.f32 %v628_v49, %v10136_v51 }
 0x343   : > { %4676 = vmatpush.msrb.mxu0 %v9995_v39  ;;  %4776 = vmatpush.msrb.mxu2 %v4605_v21  ;;  %v618_v39 = vld [vmem:[%s6853_s17 + $0x468] sm:$0xff]  ;;  %v4887_v43 = vsub.f32 %v10142_v58, %v4886_v60  ;;  %v10211_v33 = vsub.f32 %v622_v63, %v10182_v35  ;;  %v10278_v63 = vand.u32 4294901760, %v608_v15 }
 0x344   : > { %4707 = vmatpush.msrb.mxu1 %v9913_v48  ;;  %4817 = vmatpush.msrb.mxu3 %v9926_v24  ;;  %v4874_v48 = vand.u32 4294901760, %v10119_v55  ;;  %v10174_v52 = vsub.f32 %v626_v7, %v10147_v40  ;;  %v4898_v21 = vand.u32 4294901760, %v10160_v59  ;;  %v11373_v7 = vand.u32 4294901760, %v10250_v1 }
 0x345   : > { %4679 = vmatpush.msrb.mxu0 %v10006_v37  ;;  %4780 = vmatpush.msrb.mxu2 %v4611_v28  ;;  %v10194_v28 = vand.u32 4294901760, %v620_v18  ;;  %v10197_v37 = vsub.f32 %v624_v9, %v10168_v36  ;;  %v11377_v31 = vand.u32 4294901760, %v10211_v33  ;;  %v668_v9 = vld [vmem:[%s6853_s17 + $0x5f8] sm:$0xff]  ;;  %v10304_v6 = vsub.f32 %v608_v15, %v10278_v63 }
 0x346   : > { %4709 = vmatpush.msrb.mxu1 %v9926_v24  ;;  %4819 = vmatpush.msrb.mxu3 %v9939_v17  ;;  %v10154_v24 = vsub.f32 %v630_v61, %v10127_v62 }
 0x347   : > { %4682 = vmatmul.f32.vlgmr.msrb.gmra.mxu0 %v11666_v47  ;;  %4784 = vmatpush.msrb.mxu2 %v4617_v0  ;;  %v10208_v0 = vand.u32 4294901760, %v618_v39  ;;  %v11379_v56 = vand.u32 4294901760, %v10197_v37  ;;  %v10224_v27 = vsub.f32 %v620_v18, %v10194_v28  ;;  %v4917_v3 = vsub.f32 %v10211_v33, %v11377_v31 }
 0x348   : > { %4832 = vmatpush.msra.mxu0 %v10100_v4  ;;  %4711 = vmatpush.msrb.mxu1 %v9939_v17  ;;  %v4875_v17 = vsub.f32 %v10119_v55, %v4874_v48  ;;  %v4892_v2 = vand.u32 4294901760, %v10154_v24  ;;  %v10273_v47 = vsub.f32 %v612_v53, %v10246_v45 }
 0x349   : > { %4821 = vmatpush.msrb.mxu3 %v9957_v38  ;;  %4788 = vmatpush.msrb.mxu2 %v4623_v12  ;;  %v4888_v12 = vand.u32 4294901760, %v4887_v43  ;;  %v10237_v13 = vsub.f32 %v618_v39, %v10208_v0  ;;  %v4911_v22 = vsub.f32 %v10197_v37, %v11379_v56  ;;  %v11375_v34 = vand.u32 4294901760, %v10224_v27  ;;  %v652_v56 = vld [vmem:[%s6853_s17 + $0x578] sm:$0xff] }
 0x34a   : > { %4834 = vmatpush.msra.mxu0 %v10108_v29  ;;  %4713 = vmatpush.msrb.mxu1 %v9957_v38  ;;  %v4881_v38 = vsub.f32 %v10130_v50, %v4880_v30  ;;  %v4876_v54 = vand.u32 4294901760, %v4875_v17  ;;  %v4893_v41 = vsub.f32 %v10154_v24, %v4892_v2  ;;  %v606_v17 = vld [vmem:[%s6853_s17 + $0x408] sm:$0xff]  ;;  %v4918_v18 = vand.u32 4294901760, %v4917_v3 }
 0x34b   : > { %4823 = vmatpush.msrb.mxu3 %v9971_v23  ;;  %4790 = vmatmul.f32.vlgmr.msrb.gmra.mxu2 %v11658_v14  ;;  %v11374_v42 = vand.u32 4294901760, %v10237_v13  ;;  %v4912_v61 = vand.u32 4294901760, %v4911_v22  ;;  %v4923_v49 = vsub.f32 %v10224_v27, %v11375_v34  ;;  %v11371_v39 = vand.u32 4294901760, %v10262_v25  ;;  %v11668_v34 = vld [vmem:[#allocation38_spill] sm:$0xff] }
 0x34c   : > { %4836 = vmatpush.msra.mxu0 %v10116_v46  ;;  %4975 = vmatpush.msra.mxu2 %v10119_v55  ;;  %v4882_v57 = vand.u32 4294901760, %v4881_v38  ;;  %v4894_v8 = vand.u32 4294901760, %v4893_v41  ;;  %v10291_v43 = vand.u32 4294901760, %v668_v9  ;;  %v4935_v41 = vsub.f32 %v10250_v1, %v11373_v7 }
 0x34d   : > { %4715 = vmatpush.msrb.mxu1 %v9971_v23  ;;  %4825 = vmatpush.msrb.mxu3 %v9984_v5  ;;  %v11381_v23 = vand.u32 4294901760, %v10174_v52  ;;  %v4929_v38 = vsub.f32 %v10237_v13, %v11374_v42  ;;  %v4941_v53 = vsub.f32 %v10262_v25, %v11371_v39 }
 0x34e   : > { %4827 = vmatmul.f32.vlgmr.msrb.gmra.mxu3 %v11658_v14  ;;  %4838 = vmatpush.msra.mxu0 %v10127_v62  ;;  %v610_v14 = vld [vmem:[%s6853_s17 + $0x428] sm:$0xff]  ;;  %v10318_v22 = vsub.f32 %v668_v9, %v10291_v43  ;;  %v11376_v9 = vand.u32 4294901760, %v10304_v6 }
 0x34f   : > { %4978 = vmatpush.msra.mxu2 %v10130_v50  ;;  %5028 = vmatpush.msra.mxu3 %v10100_v4  ;;  %v4905_v11 = vsub.f32 %v10174_v52, %v11381_v23  ;;  %v10258_v10 = vand.u32 4294901760, %v610_v14  ;;  %v650_v50 = vld [vmem:[%s6853_s17 + $0x568] sm:$0xff] }
 0x350   : > { %4717 = vmatpush.msrb.mxu1 %v9984_v5  ;;  %4840 = vmatpush.msra.mxu0 %v10136_v51  ;;  %v4899_v5 = vsub.f32 %v10160_v59, %v4898_v21 }
 0x351   : > { %4721 = vmatmul.f32.vlgmr.msrb.gmra.mxu1 %v11667_v16  ;;  %4981 = vmatpush.msra.mxu2 %v10142_v58  ;;  %v4906_v44 = vand.u32 4294901760, %v4905_v11  ;;  %v10298_v16 = vand.u32 4294901760, %v606_v17  ;;  %v4930_v11 = vand.u32 4294901760, %v4929_v38  ;;  %v4942_v38 = vand.u32 4294901760, %v4941_v53 }
 0x352   : > { %4877 = vmatpush.msra.mxu1 %v4876_v54  ;;  %5030 = vmatpush.msra.mxu3 %v10108_v29  ;;  %v4900_v26 = vand.u32 4294901760, %v4899_v5  ;;  %v10287_v54 = vsub.f32 %v610_v14, %v10258_v10  ;;  %v11370_v5 = vand.u32 4294901760, %v10273_v47  ;;  %v662_v14 = vld [vmem:[%s6853_s17 + $0x5c8] sm:$0xff] }
 0x353   : > { %4842 = vmatpush.msra.mxu0 %v10147_v40  ;;  %4984 = vmatpush.msra.mxu2 %v10154_v24  ;;  %v10325_v15 = vsub.f32 %v606_v17, %v10298_v16 }
 0x354   : > { %4883 = vmatpush.msra.mxu1 %v4882_v57  ;;  %5032 = vmatpush.msra.mxu3 %v10116_v46  ;;  %v4924_v57 = vand.u32 4294901760, %v4923_v49  ;;  %v4947_v3 = vsub.f32 %v10273_v47, %v11370_v5  ;;  %v660_v49 = vld [vmem:[%s6853_s17 + $0x5b8] sm:$0xff] }
 0x355   : > { %4844 = vmatpush.msra.mxu0 %v10168_v36  ;;  %4987 = vmatpush.msra.mxu2 %v10160_v59  ;;  %v10345_v5 = vand.u32 4294901760, %v660_v49  ;;  %v11380_v39 = vand.u32 4294901760, %v10325_v15 }
 0x356   : > { %4889 = vmatpush.msra.mxu1 %v4888_v12  ;;  %5034 = vmatpush.msra.mxu3 %v10127_v62  ;;  %v664_v12 = vld [vmem:[%s6853_s17 + $0x5d8] sm:$0xff]  ;;  %v4948_v53 = vand.u32 4294901760, %v4947_v3 }
 0x357   : > { %4846 = vmatpush.msra.mxu0 %v10182_v35  ;;  %4990 = vmatpush.msra.mxu2 %v10174_v52 }
 0x358   : > { %4895 = vmatpush.msra.mxu1 %v4894_v8  ;;  %5036 = vmatpush.msra.mxu3 %v10136_v51  ;;  %v11372_v8 = vand.u32 4294901760, %v10287_v54 }
 0x359   : > { %4848 = vmatpush.msra.mxu0 %v10194_v28  ;;  %4993 = vmatpush.msra.mxu2 %v10197_v37 }
 0x35a   : > { %4901 = vmatpush.msra.mxu1 %v4900_v26  ;;  %5038 = vmatpush.msra.mxu3 %v10147_v40  ;;  %v10312_v26 = vand.u32 4294901760, %v666_v32  ;;  %v4953_v17 = vsub.f32 %v10287_v54, %v11372_v8 }
 0x35b   : > { %4850 = vmatpush.msra.mxu0 %v10208_v0  ;;  %4996 = vmatpush.msra.mxu2 %v10211_v33 }
 0x35c   : > { %4907 = vmatpush.msra.mxu1 %v4906_v44  ;;  %5040 = vmatpush.msra.mxu3 %v10168_v36  ;;  %v4936_v44 = vand.u32 4294901760, %v4935_v41  ;;  %v11378_v41 = vand.u32 4294901760, %v10318_v22  ;;  %v4954_v3 = vand.u32 4294901760, %v4953_v17  ;;  %v4965_v17 = vsub.f32 %v10325_v15, %v11380_v39 }
 0x35d   : > { %4852 = vmatpush.msra.mxu0 %v10220_v19  ;;  %4999 = vmatpush.msra.mxu2 %v10224_v27 }
 0x35e   : > { %4913 = vmatpush.msra.mxu1 %v4912_v61  ;;  %5042 = vmatpush.msra.mxu3 %v10182_v35  ;;  %v10327_v61 = vand.u32 4294901760, %v664_v12 }
 0x35f   : > { %4854 = vmatpush.msra.mxu0 %v10233_v20  ;;  %5002 = vmatpush.msra.mxu2 %v10237_v13 }
 0x360   : > { %4919 = vmatpush.msra.mxu1 %v4918_v18  ;;  %5044 = vmatpush.msra.mxu3 %v10194_v28  ;;  %v10333_v18 = vand.u32 4294901760, %v662_v14  ;;  %v10351_v8 = vsub.f32 %v664_v12, %v10327_v61 }
 0x361   : > { %4856 = vmatpush.msra.mxu0 %v10246_v45  ;;  %5005 = vmatpush.msra.mxu2 %v10250_v1 }
 0x362   : > { %4925 = vmatpush.msra.mxu1 %v4924_v57  ;;  %5046 = vmatpush.msra.mxu3 %v10208_v0  ;;  %v10340_v57 = vsub.f32 %v666_v32, %v10312_v26  ;;  %v4959_v32 = vsub.f32 %v10304_v6, %v11376_v9  ;;  %v10359_v7 = vsub.f32 %v662_v14, %v10333_v18 }
 0x363   : > { %4858 = vmatpush.msra.mxu0 %v10258_v10  ;;  %5008 = vmatpush.msra.mxu2 %v10262_v25  ;;  %v5216_v9 = vsub.f32 %v10318_v22, %v11378_v41  ;;  %v10372_v14 = vsub.f32 %v660_v49, %v10345_v5 }
 0x364   : > { %4931 = vmatpush.msra.mxu1 %v4930_v11  ;;  %5048 = vmatpush.msra.mxu3 %v10220_v19  ;;  %v658_v11 = vld [vmem:[%s6853_s17 + $0x5a8] sm:$0xff]  ;;  %v11382_v42 = vand.u32 4294901760, %v10340_v57  ;;  %v4960_v49 = vand.u32 4294901760, %v4959_v32  ;;  %v11383_v41 = vand.u32 4294901760, %v10359_v7  ;;  %v11669_v32 = vld [vmem:[#allocation36_spill] sm:$0xff] }
 0x365   : > { %4860 = vmatpush.msra.mxu0 %v10278_v63  ;;  %5011 = vmatpush.msra.mxu2 %v10273_v47  ;;  %v10364_v12 = vand.u32 4294901760, %v658_v11  ;;  %v5217_v39 = vand.u32 4294901760, %v5216_v9  ;;  %v11385_v23 = vand.u32 4294901760, %v10372_v14  ;;  %v11670_v9 = vld [vmem:[#allocation37_spill] sm:$0xff] }
 0x366   : > { %4937 = vmatpush.msra.mxu1 %v4936_v44  ;;  %5050 = vmatpush.msra.mxu3 %v10233_v20  ;;  %v656_v44 = vld [vmem:[%s6853_s17 + $0x598] sm:$0xff]  ;;  %v5222_v55 = vsub.f32 %v10340_v57, %v11382_v42  ;;  %v10410_v42 = vand.u32 4294901760, %v652_v56  ;;  %v5234_v58 = vsub.f32 %v10359_v7, %v11383_v41 }
 0x367   : > { %4862 = vmatpush.msra.mxu0 %v10298_v16  ;;  %5014 = vmatpush.msra.mxu2 %v10287_v54  ;;  %v10381_v31 = vand.u32 4294901760, %v656_v44  ;;  %v5240_v41 = vsub.f32 %v10372_v14, %v11385_v23  ;;  %v11673_v23 = vand.u32 4294901760, %v10174_v52  ;;  %v642_v52 = vld [vmem:[%s6853_s17 + $0x528] sm:$0xff] }
 0x368   : > { %4943 = vmatpush.msra.mxu1 %v4942_v38  ;;  %5052 = vmatpush.msra.mxu3 %v10246_v45  ;;  %v654_v38 = vld [vmem:[%s6853_s17 + $0x588] sm:$0xff] }
 0x369   : > { %4868 = vmatmul.f32.vlgmr.msra.gmra.mxu0 %v11668_v34  ;;  %5017 = vmatpush.msra.mxu2 %v10304_v6  ;;  %v11384_v34 = vand.u32 4294901760, %v10351_v8 }
 0x36a   : > { %5069 = vmatpush.msrb.mxu0 %v4874_v48  ;;  %4949 = vmatpush.msra.mxu1 %v4948_v53  ;;  %v10393_v48 = vsub.f32 %v658_v11, %v10364_v12  ;;  %v10395_v53 = vand.u32 4294901760, %v654_v38 }
 0x36b   : > { %5054 = vmatpush.msra.mxu3 %v10258_v10  ;;  %5020 = vmatpush.msra.mxu2 %v10325_v15  ;;  %v5228_v11 = vsub.f32 %v10351_v8, %v11384_v34  ;;  %v11671_v34 = vld [vmem:[#allocation34_spill] sm:$0xff] }
 0x36c   : > { %5073 = vmatpush.msrb.mxu0 %v4880_v30  ;;  %4955 = vmatpush.msra.mxu1 %v4954_v3  ;;  %v4966_v30 = vand.u32 4294901760, %v4965_v17  ;;  %v10408_v3 = vsub.f32 %v656_v44, %v10381_v31  ;;  %v5223_v17 = vand.u32 4294901760, %v5222_v55  ;;  %v10422_v44 = vsub.f32 %v654_v38, %v10395_v53 }
 0x36d   : > { %5056 = vmatpush.msra.mxu3 %v10278_v63  ;;  %5023 = vmatmul.f32.vlgmr.msra.gmra.mxu2 %v11669_v32  ;;  %v5229_v24 = vand.u32 4294901760, %v5228_v11  ;;  %v10435_v38 = vsub.f32 %v652_v56, %v10410_v42  ;;  %v644_v32 = vld [vmem:[%s6853_s17 + $0x538] sm:$0xff]  ;;  %v11672_v59 = vand.u32 4294901760, %v10393_v48 }
 0x36e   : > { %5077 = vmatpush.msrb.mxu0 %v4886_v60  ;;  %5173 = vmatpush.msrb.mxu2 %v10291_v43  ;;  %v648_v60 = vld [vmem:[%s6853_s17 + $0x558] sm:$0xff] }
 0x36f   : > { %4961 = vmatpush.msra.mxu1 %v4960_v49  ;;  %5058 = vmatpush.msra.mxu3 %v10298_v16  ;;  %v10424_v49 = vand.u32 4294901760, %v650_v50  ;;  %v10437_v55 = vand.u32 4294901760, %v648_v60 }
 0x370   : > { %5062 = vmatmul.f32.vlgmr.msra.gmra.mxu3 %v11670_v9  ;;  %5081 = vmatpush.msrb.mxu0 %v4892_v2  ;;  %v646_v9 = vld [vmem:[%s6853_s17 + $0x548] sm:$0xff]  ;;  %v11386_v2 = vand.u32 4294901760, %v10408_v3 }
 0x371   : > { %5175 = vmatpush.msrb.mxu2 %v10312_v26  ;;  %5218 = vmatpush.msrb.mxu3 %v5217_v39  ;;  %v5235_v39 = vand.u32 4294901760, %v5234_v58  ;;  %v10448_v56 = vsub.f32 %v650_v50, %v10424_v49  ;;  %v10450_v11 = vand.u32 4294901760, %v646_v9  ;;  %v5241_v58 = vand.u32 4294901760, %v5240_v41 }
 0x372   : > { %4967 = vmatpush.msra.mxu1 %v4966_v30  ;;  %5085 = vmatpush.msrb.mxu0 %v4898_v21  ;;  %v5246_v21 = vsub.f32 %v10393_v48, %v11672_v59  ;;  %v11387_v30 = vand.u32 4294901760, %v10422_v44  ;;  %v10461_v50 = vsub.f32 %v648_v60, %v10437_v55  ;;  %v10463_v59 = vand.u32 4294901760, %v644_v32 }
 0x373   : > { %4969 = vmatmul.f32.vlgmr.msra.gmra.mxu1 %v11671_v34  ;;  %5177 = vmatpush.msrb.mxu2 %v10327_v61  ;;  %v5269_v60 = vand.u32 4294901760, %v10448_v56 }
 0x374   : > { %5136 = vmatpush.msrb.mxu1 %v10100_v4  ;;  %5224 = vmatpush.msrb.mxu3 %v5223_v17  ;;  %v5252_v4 = vsub.f32 %v10408_v3, %v11386_v2  ;;  %v5263_v17 = vand.u32 4294901760, %v10435_v38  ;;  %v5258_v41 = vsub.f32 %v10422_v44, %v11387_v30  ;;  %v640_v2 = vld [vmem:[%s6853_s17 + $0x518] sm:$0xff]  ;;  %v638_v30 = vld [vmem:[%s6853_s17 + $0x508] sm:$0xff] }
 0x375   : > { %5089 = vmatpush.msrb.mxu0 %v11673_v23  ;;  %5179 = vmatpush.msrb.mxu2 %v10333_v18  ;;  %v11674_v23 = vand.u32 4294901760, %v10197_v37  ;;  %v11675_v37 = vand.u32 4294901760, %v10211_v33  ;;  %v11676_v33 = vand.u32 4294901760, %v10224_v27 }
 0x376   : > { %5138 = vmatpush.msrb.mxu1 %v10108_v29  ;;  %5230 = vmatpush.msrb.mxu3 %v5229_v24  ;;  %v5247_v29 = vand.u32 4294901760, %v5246_v21  ;;  %v10475_v24 = vsub.f32 %v646_v9, %v10450_v11  ;;  %v5275_v21 = vand.u32 4294901760, %v10461_v50  ;;  %v10489_v9 = vsub.f32 %v644_v32, %v10463_v59 }
 0x377   : > { %5093 = vmatpush.msrb.mxu0 %v11674_v23  ;;  %5181 = vmatpush.msrb.mxu2 %v10345_v5  ;;  %v10481_v23 = vand.u32 4294901760, %v642_v52  ;;  %v11677_v32 = vand.u32 4294901760, %v10237_v13  ;;  %v11678_v13 = vand.u32 4294901760, %v10250_v1 }
 0x378   : > { %5140 = vmatpush.msrb.mxu1 %v10116_v46  ;;  %5236 = vmatpush.msrb.mxu3 %v5235_v39  ;;  %v5253_v46 = vand.u32 4294901760, %v5252_v4  ;;  %v5264_v39 = vsub.f32 %v10435_v38, %v5263_v17  ;;  %v5281_v4 = vand.u32 4294901760, %v10475_v24 }
 0x379   : > { %5097 = vmatpush.msrb.mxu0 %v11675_v37  ;;  %5183 = vmatpush.msrb.mxu2 %v10364_v12  ;;  %v10495_v37 = vand.u32 4294901760, %v640_v2  ;;  %v10506_v27 = vsub.f32 %v642_v52, %v10481_v23 }
 0x37a   : > { %5142 = vmatpush.msrb.mxu1 %v10127_v62  ;;  %5242 = vmatpush.msrb.mxu3 %v5241_v58  ;;  %v5259_v62 = vand.u32 4294901760, %v5258_v41  ;;  %v5270_v58 = vsub.f32 %v10448_v56, %v5269_v60  ;;  %v5287_v41 = vand.u32 4294901760, %v10489_v9 }
 0x37b   : > { %5101 = vmatpush.msrb.mxu0 %v11676_v33  ;;  %5185 = vmatpush.msrb.mxu2 %v10381_v31  ;;  %v10508_v33 = vand.u32 4294901760, %v638_v30  ;;  %v10519_v52 = vsub.f32 %v640_v2, %v10495_v37  ;;  %v5293_v1 = vand.u32 4294901760, %v10506_v27 }
 0x37c   : > { %5144 = vmatpush.msrb.mxu1 %v10136_v51  ;;  %5248 = vmatpush.msrb.mxu3 %v5247_v29  ;;  %v5265_v51 = vand.u32 4294901760, %v5264_v39  ;;  %v5276_v29 = vsub.f32 %v10461_v50, %v5275_v21  ;;  %v11679_v39 = vand.u32 4294901760, %v10262_v25  ;;  %v5288_v2 = vsub.f32 %v10489_v9, %v5287_v41 }
 0x37d   : > { %5105 = vmatpush.msrb.mxu0 %v11677_v32  ;;  %5187 = vmatpush.msrb.mxu2 %v10395_v53  ;;  %v10530_v32 = vsub.f32 %v638_v30, %v10508_v33  ;;  %v5299_v25 = vand.u32 4294901760, %v10519_v52 }
 0x37e   : > { %5146 = vmatpush.msrb.mxu1 %v10147_v40  ;;  %5254 = vmatpush.msrb.mxu3 %v5253_v46  ;;  %v5271_v40 = vand.u32 4294901760, %v5270_v58  ;;  %v5282_v46 = vsub.f32 %v10475_v24, %v5281_v4  ;;  %v11681_v58 = vand.u32 4294901760, %v10287_v54  ;;  %v11683_v54 = vand.u32 4294901760, %v10325_v15 }
 0x37f   : > { %5109 = vmatpush.msrb.mxu0 %v11678_v13  ;;  %5189 = vmatpush.msrb.mxu2 %v10410_v42  ;;  %v11685_v15 = vand.u32 4294901760, %v10318_v22 }
 0x380   : > { %5148 = vmatpush.msrb.mxu1 %v10168_v36  ;;  %5260 = vmatpush.msrb.mxu3 %v5259_v62  ;;  %v5277_v36 = vand.u32 4294901760, %v5276_v29  ;;  %v11680_v62 = vand.u32 4294901760, %v10273_v47  ;;  %v5283_v30 = vand.u32 4294901760, %v5282_v46  ;;  %v5305_v47 = vand.u32 4294901760, %v10530_v32 }
 0x381   : > { %5113 = vmatpush.msrb.mxu0 %v11679_v39  ;;  %5191 = vmatpush.msrb.mxu2 %v10424_v49  ;;  %v11682_v29 = vand.u32 4294901760, %v10304_v6 }
 0x382   : > { %5150 = vmatpush.msrb.mxu1 %v10182_v35  ;;  %5266 = vmatpush.msrb.mxu3 %v5265_v51  ;;  %v5294_v35 = vsub.f32 %v10506_v27, %v5293_v1  ;;  %v5289_v51 = vand.u32 4294901760, %v5288_v2  ;;  %v5306_v6 = vsub.f32 %v10530_v32, %v5305_v47 }
 0x383   : > { %5117 = vmatpush.msrb.mxu0 %v11680_v62  ;;  %5193 = vmatpush.msrb.mxu2 %v10437_v55 }
 0x384   : > { %5152 = vmatpush.msrb.mxu1 %v10194_v28  ;;  %5272 = vmatpush.msrb.mxu3 %v5271_v40  ;;  %v5300_v28 = vsub.f32 %v10519_v52, %v5299_v25  ;;  %v11687_v40 = vand.u32 4294901760, %v10340_v57 }
 0x385   : > { %5121 = vmatpush.msrb.mxu0 %v11681_v58  ;;  %5195 = vmatpush.msrb.mxu2 %v10450_v11  ;;  %v11695_v58 = vld [vmem:[#allocation41_spill] sm:$0xff] }
 0x386   : > { %5154 = vmatpush.msrb.mxu1 %v10208_v0  ;;  %5278 = vmatpush.msrb.mxu3 %v5277_v36  ;;  %v5295_v0 = vand.u32 4294901760, %v5294_v35  ;;  %v5301_v13 = vand.u32 4294901760, %v5300_v28  ;;  %v680_v36 = vld [vmem:[%s6853_s17 + $0x658] sm:$0xff]  ;;  %v678_v35 = vld [vmem:[%s6853_s17 + $0x648] sm:$0xff] }
 0x387   : > { %5125 = vmatpush.msrb.mxu0 %v11682_v29  ;;  %5197 = vmatpush.msrb.mxu2 %v10463_v59 }
 0x388   : > { %5156 = vmatpush.msrb.mxu1 %v10220_v19  ;;  %5284 = vmatpush.msrb.mxu3 %v5283_v30  ;;  %v5307_v19 = vand.u32 4294901760, %v5306_v6 }
 0x389   : > { %5129 = vmatpush.msrb.mxu0 %v11683_v54  ;;  %5199 = vmatpush.msrb.mxu2 %v10481_v23 }
 0x38a   : > { %5158 = vmatpush.msrb.mxu1 %v10233_v20  ;;  %5290 = vmatpush.msrb.mxu3 %v5289_v51  ;;  %v11684_v20 = vld [vmem:[#allocation42_spill] sm:$0xff]  ;;  %v10744_v51 = vand.u32 4294901760, %v680_v36 }
 0x38b   : > { %5131 = vmatmul.f32.vlgmr.msrb.gmra.mxu0 %v11671_v34  ;;  %5201 = vmatpush.msrb.mxu2 %v10495_v37 }
 0x38c   : > { %5316 = vmatpush.msra.mxu0 %v10318_v22  ;;  %5160 = vmatpush.msrb.mxu1 %v10246_v45  ;;  %v11686_v45 = vld [vmem:[#allocation39_spill] sm:$0xff] }
 0x38d   : > { %5296 = vmatpush.msrb.mxu3 %v5295_v0  ;;  %5203 = vmatpush.msrb.mxu2 %v10508_v33  ;;  %v676_v0 = vld [vmem:[%s6853_s17 + $0x638] sm:$0xff] }
 0x38e   : > { %5319 = vmatpush.msra.mxu0 %v10340_v57  ;;  %5162 = vmatpush.msrb.mxu1 %v10258_v10  ;;  %v11688_v10 = vand.u32 4294901760, %v10351_v8 }
 0x38f   : > { %5302 = vmatpush.msrb.mxu3 %v5301_v13  ;;  %5209 = vmatmul.f32.vlgmr.msrb.gmra.mxu2 %v11684_v20  ;;  %v10757_v13 = vand.u32 4294901760, %v678_v35 }
 0x390   : > { %5322 = vmatpush.msra.mxu0 %v10351_v8  ;;  %5410 = vmatpush.msra.mxu2 %v11685_v15  ;;  %v11693_v8 = vand.u32 4294901760, %v10422_v44 }
 0x391   : > { %5164 = vmatpush.msrb.mxu1 %v10278_v63  ;;  %5308 = vmatpush.msrb.mxu3 %v5307_v19  ;;  %v11689_v63 = vand.u32 4294901760, %v10359_v7 }
 0x392   : > { %5310 = vmatmul.f32.vlgmr.msrb.gmra.mxu3 %v11686_v45  ;;  %5325 = vmatpush.msra.mxu0 %v10359_v7  ;;  %v11692_v7 = vand.u32 4294901760, %v10408_v3 }
 0x393   : > { %5414 = vmatpush.msra.mxu2 %v11687_v40  ;;  %5477 = vmatpush.msra.mxu3 %v10291_v43 }
 0x394   : > { %5166 = vmatpush.msrb.mxu1 %v10298_v16  ;;  %5328 = vmatpush.msra.mxu0 %v10372_v14  ;;  %v11690_v16 = vand.u32 4294901760, %v10372_v14 }
 0x395   : > { %5168 = vmatmul.f32.vlgmr.msrb.gmra.mxu1 %v11671_v34  ;;  %5418 = vmatpush.msra.mxu2 %v11688_v10  ;;  %v10770_v10 = vand.u32 4294901760, %v676_v0 }
 0x396   : > { %5369 = vmatpush.msra.mxu1 %v10291_v43  ;;  %5479 = vmatpush.msra.mxu3 %v10312_v26  ;;  %v11691_v43 = vand.u32 4294901760, %v10393_v48 }
 0x397   : > { %5331 = vmatpush.msra.mxu0 %v10393_v48  ;;  %5422 = vmatpush.msra.mxu2 %v11689_v63  ;;  %v690_v48 = vld [vmem:[%s6853_s17 + $0x6a8] sm:$0xff] }
 0x398   : > { %5371 = vmatpush.msra.mxu1 %v10312_v26  ;;  %5481 = vmatpush.msra.mxu3 %v10327_v61  ;;  %v700_v26 = vld [vmem:[%s6853_s17 + $0x6f8] sm:$0xff] }
 0x399   : > { %5334 = vmatpush.msra.mxu0 %v10408_v3  ;;  %5426 = vmatpush.msra.mxu2 %v11690_v16  ;;  %v10624_v22 = vand.u32 4294901760, %v700_v26  ;;  %v10774_v16 = vsub.f32 %v680_v36, %v10744_v51  ;;  %v730_v36 = vld [vmem:[%s6853_s17 + $0x7e8] sm:$0xff] }
 0x39a   : > { %5373 = vmatpush.msra.mxu1 %v10327_v61  ;;  %5483 = vmatpush.msra.mxu3 %v10333_v18 }
 0x39b   : > { %5337 = vmatpush.msra.mxu0 %v10422_v44  ;;  %5430 = vmatpush.msra.mxu2 %v11691_v43 }
 0x39c   : > { %5375 = vmatpush.msra.mxu1 %v10333_v18  ;;  %5485 = vmatpush.msra.mxu3 %v10345_v5  ;;  %v694_v18 = vld [vmem:[%s6853_s17 + $0x6c8] sm:$0xff] }
 0x39d   : > { %5340 = vmatpush.msra.mxu0 %v10435_v38  ;;  %5434 = vmatpush.msra.mxu2 %v11692_v7  ;;  %v10651_v14 = vand.u32 4294901760, %v694_v18  ;;  %v10671_v38 = vand.u32 4294901760, %v690_v48 }
 0x39e   : > { %5377 = vmatpush.msra.mxu1 %v10345_v5  ;;  %5487 = vmatpush.msra.mxu3 %v10364_v12  ;;  %v698_v5 = vld [vmem:[%s6853_s17 + $0x6e8] sm:$0xff] }
 0x39f   : > { %5343 = vmatpush.msra.mxu0 %v10448_v56  ;;  %5438 = vmatpush.msra.mxu2 %v11693_v8  ;;  %v10632_v61 = vand.u32 4294901760, %v698_v5 }
 0x3a0   : > { %5379 = vmatpush.msra.mxu1 %v10364_v12  ;;  %5489 = vmatpush.msra.mxu3 %v10381_v31  ;;  %v10643_v12 = vsub.f32 %v700_v26, %v10624_v22 }
 0x3a1   : > { %5346 = vmatpush.msra.mxu0 %v10461_v50  ;;  %5442 = vmatpush.msra.mxu2 %v5263_v17  ;;  %v10654_v34 = vsub.f32 %v698_v5, %v10632_v61  ;;  %v686_v50 = vld [vmem:[%s6853_s17 + $0x688] sm:$0xff]  ;;  %v10786_v5 = vsub.f32 %v678_v35, %v10757_v13 }
 0x3a2   : > { %5381 = vmatpush.msra.mxu1 %v10381_v31  ;;  %5491 = vmatpush.msra.mxu3 %v10395_v53  ;;  %v696_v31 = vld [vmem:[%s6853_s17 + $0x6d8] sm:$0xff]  ;;  %v5556_v3 = vand.u32 4294901760, %v10643_v12 }
 0x3a3   : > { %5349 = vmatpush.msra.mxu0 %v10475_v24  ;;  %5446 = vmatpush.msra.mxu2 %v5269_v60  ;;  %v10640_v57 = vand.u32 4294901760, %v696_v31  ;;  %v5562_v56 = vand.u32 4294901760, %v10654_v34 }
 0x3a4   : > { %5383 = vmatpush.msra.mxu1 %v10395_v53  ;;  %5493 = vmatpush.msra.mxu3 %v10410_v42 }
 0x3a5   : > { %5352 = vmatpush.msra.mxu0 %v10489_v9  ;;  %5450 = vmatpush.msra.mxu2 %v5275_v21  ;;  %v10666_v44 = vsub.f32 %v696_v31, %v10640_v57  ;;  %v10698_v21 = vsub.f32 %v690_v48, %v10671_v38  ;;  %v684_v9 = vld [vmem:[%s6853_s17 + $0x678] sm:$0xff]  ;;  %v11391_v48 = vand.u32 4294901760, %v10774_v16 }
 0x3a6   : > { %5385 = vmatpush.msra.mxu1 %v10410_v42  ;;  %5495 = vmatpush.msra.mxu3 %v10424_v49  ;;  %v692_v42 = vld [vmem:[%s6853_s17 + $0x6b8] sm:$0xff] }
 0x3a7   : > { %5355 = vmatpush.msra.mxu0 %v10506_v27  ;;  %5454 = vmatpush.msra.mxu2 %v5281_v4  ;;  %v10660_v53 = vand.u32 4294901760, %v692_v42  ;;  %v5568_v24 = vand.u32 4294901760, %v10666_v44  ;;  %v10706_v4 = vand.u32 4294901760, %v686_v50  ;;  %v672_v31 = vld [vmem:[%s6853_s17 + $0x618] sm:$0xff] }
 0x3a8   : > { %5387 = vmatpush.msra.mxu1 %v10424_v49  ;;  %5497 = vmatpush.msra.mxu3 %v10437_v55  ;;  %v11694_v49 = vld [vmem:[#allocation40_spill] sm:$0xff] }
 0x3a9   : > { %5358 = vmatpush.msra.mxu0 %v10519_v52  ;;  %5458 = vmatpush.msra.mxu2 %v5287_v41  ;;  %v10684_v17 = vsub.f32 %v692_v42, %v10660_v53  ;;  %v682_v52 = vld [vmem:[%s6853_s17 + $0x668] sm:$0xff]  ;;  %v5569_v39 = vsub.f32 %v10666_v44, %v5568_v24  ;;  %v10735_v30 = vsub.f32 %v686_v50, %v10706_v4  ;;  %v10802_v50 = vand.u32 4294901760, %v672_v31 }
 0x3aa   : > { %5389 = vmatpush.msra.mxu1 %v10437_v55  ;;  %5499 = vmatpush.msra.mxu3 %v10450_v11  ;;  %v688_v55 = vld [vmem:[%s6853_s17 + $0x698] sm:$0xff] }
 0x3ab   : > { %5361 = vmatpush.msra.mxu0 %v10530_v32  ;;  %5462 = vmatpush.msra.mxu2 %v5293_v1  ;;  %v10692_v60 = vand.u32 4294901760, %v688_v55  ;;  %v5580_v41 = vand.u32 4294901760, %v10684_v17  ;;  %v10718_v1 = vand.u32 4294901760, %v684_v9  ;;  %v11395_v19 = vand.u32 4294901760, %v10735_v30 }
 0x3ac   : > { %5391 = vmatpush.msra.mxu1 %v10450_v11  ;;  %5501 = vmatpush.msra.mxu3 %v10463_v59  ;;  %v10678_v11 = vsub.f32 %v694_v18, %v10651_v14  ;;  %v10828_v35 = vsub.f32 %v672_v31, %v10802_v50 }
 0x3ad   : > { %5364 = vmatmul.f32.vlgmr.msra.gmra.mxu0 %v11694_v49  ;;  %5466 = vmatpush.msra.mxu2 %v5299_v25  ;;  %v10721_v32 = vsub.f32 %v688_v55, %v10692_v60  ;;  %v10732_v25 = vand.u32 4294901760, %v682_v52  ;;  %v10748_v28 = vsub.f32 %v684_v9, %v10718_v1  ;;  %v5599_v7 = vsub.f32 %v10735_v30, %v11395_v19  ;;  %v732_v55 = vld [vmem:[%s6853_s17 + $0x7f8] sm:$0xff] }
 0x3ae   : > { %5514 = vmatpush.msrb.mxu0 %v10624_v22  ;;  %5393 = vmatpush.msra.mxu1 %v10463_v59  ;;  %v5557_v59 = vsub.f32 %v10643_v12, %v5556_v3  ;;  %v5574_v27 = vand.u32 4294901760, %v10678_v11  ;;  %v10797_v49 = vsub.f32 %v676_v0, %v10770_v10 }
 0x3af   : > { %5503 = vmatpush.msra.mxu3 %v10481_v23  ;;  %5470 = vmatpush.msra.mxu2 %v5305_v47  ;;  %v5570_v47 = vand.u32 4294901760, %v5569_v39  ;;  %v11397_v29 = vand.u32 4294901760, %v10721_v32  ;;  %v10761_v20 = vsub.f32 %v682_v52, %v10732_v25  ;;  %v11393_v63 = vand.u32 4294901760, %v10748_v28 }
 0x3b0   : > { %5516 = vmatpush.msrb.mxu0 %v10632_v61  ;;  %5395 = vmatpush.msra.mxu1 %v10481_v23  ;;  %v5563_v23 = vsub.f32 %v10654_v34, %v5562_v56  ;;  %v5558_v46 = vand.u32 4294901760, %v5557_v59  ;;  %v5575_v62 = vsub.f32 %v10678_v11, %v5574_v27  ;;  %v670_v59 = vld [vmem:[%s6853_s17 + $0x608] sm:$0xff]  ;;  %v5600_v9 = vand.u32 4294901760, %v5599_v7 }
 0x3b1   : > { %5505 = vmatpush.msra.mxu3 %v10495_v37  ;;  %5472 = vmatmul.f32.vlgmr.msra.gmra.mxu2 %v11686_v45  ;;  %v5593_v40 = vsub.f32 %v10721_v32, %v11397_v29  ;;  %v11392_v26 = vand.u32 4294901760, %v10761_v20  ;;  %v5605_v42 = vsub.f32 %v10748_v28, %v11393_v63  ;;  %v11389_v52 = vand.u32 4294901760, %v10786_v5  ;;  %v11696_v63 = vld [vmem:[#allocation46_spill] sm:$0xff]  ;;  %v716_v29 = vld [vmem:[%s6853_s17 + $0x778] sm:$0xff] }
 0x3b2   : > { %5518 = vmatpush.msrb.mxu0 %v10640_v57  ;;  %5657 = vmatpush.msrb.mxu2 %v10643_v12  ;;  %v5564_v2 = vand.u32 4294901760, %v5563_v23  ;;  %v5576_v6 = vand.u32 4294901760, %v5575_v62  ;;  %v10815_v39 = vand.u32 4294901760, %v732_v55  ;;  %v5617_v62 = vsub.f32 %v10774_v16, %v11391_v48 }
 0x3b3   : > { %5397 = vmatpush.msra.mxu1 %v10495_v37  ;;  %5507 = vmatpush.msra.mxu3 %v10508_v33  ;;  %v11399_v37 = vand.u32 4294901760, %v10698_v21  ;;  %v5594_v18 = vand.u32 4294901760, %v5593_v40  ;;  %v5611_v23 = vsub.f32 %v10761_v20, %v11392_v26  ;;  %v5623_v0 = vsub.f32 %v10786_v5, %v11389_v52 }
 0x3b4   : > { %5509 = vmatmul.f32.vlgmr.msra.gmra.mxu3 %v11686_v45  ;;  %5520 = vmatpush.msrb.mxu0 %v10651_v14  ;;  %v674_v45 = vld [vmem:[%s6853_s17 + $0x628] sm:$0xff]  ;;  %v10842_v40 = vsub.f32 %v732_v55, %v10815_v39  ;;  %v11394_v55 = vand.u32 4294901760, %v10828_v35 }
 0x3b5   : > { %5660 = vmatpush.msrb.mxu2 %v10654_v34  ;;  %5710 = vmatpush.msrb.mxu3 %v10624_v22  ;;  %v5587_v54 = vsub.f32 %v10698_v21, %v11399_v37  ;;  %v10782_v8 = vand.u32 4294901760, %v674_v45  ;;  %v714_v34 = vld [vmem:[%s6853_s17 + $0x768] sm:$0xff] }
 0x3b6   : > { %5399 = vmatpush.msra.mxu1 %v10508_v33  ;;  %5522 = vmatpush.msrb.mxu0 %v10660_v53  ;;  %v5581_v33 = vsub.f32 %v10684_v17, %v5580_v41 }
 0x3b7   : > { %5403 = vmatmul.f32.vlgmr.msra.gmra.mxu1 %v11695_v58  ;;  %5663 = vmatpush.msrb.mxu2 %v10666_v44  ;;  %v5588_v43 = vand.u32 4294901760, %v5587_v54  ;;  %v10822_v58 = vand.u32 4294901760, %v670_v59  ;;  %v5612_v54 = vand.u32 4294901760, %v5611_v23  ;;  %v5624_v23 = vand.u32 4294901760, %v5623_v0 }
 0x3b8   : > { %5559 = vmatpush.msrb.mxu1 %v5558_v46  ;;  %5712 = vmatpush.msrb.mxu3 %v10632_v61  ;;  %v5582_v15 = vand.u32 4294901760, %v5581_v33  ;;  %v10811_v46 = vsub.f32 %v674_v45, %v10782_v8  ;;  %v11388_v33 = vand.u32 4294901760, %v10797_v49  ;;  %v726_v45 = vld [vmem:[%s6853_s17 + $0x7c8] sm:$0xff] }
 0x3b9   : > { %5524 = vmatpush.msrb.mxu0 %v10671_v38  ;;  %5666 = vmatpush.msrb.mxu2 %v10678_v11  ;;  %v10849_v31 = vsub.f32 %v670_v59, %v10822_v58 }
 0x3ba   : > { %5565 = vmatpush.msrb.mxu1 %v5564_v2  ;;  %5714 = vmatpush.msrb.mxu3 %v10640_v57  ;;  %v5606_v2 = vand.u32 4294901760, %v5605_v42  ;;  %v5629_v7 = vsub.f32 %v10797_v49, %v11388_v33  ;;  %v724_v42 = vld [vmem:[%s6853_s17 + $0x7b8] sm:$0xff] }
 0x3bb   : > { %5526 = vmatpush.msrb.mxu0 %v10692_v60  ;;  %5669 = vmatpush.msrb.mxu2 %v10684_v17  ;;  %v10869_v33 = vand.u32 4294901760, %v724_v42  ;;  %v11398_v52 = vand.u32 4294901760, %v10849_v31 }
 0x3bc   : > { %5571 = vmatpush.msrb.mxu1 %v5570_v47  ;;  %5716 = vmatpush.msrb.mxu3 %v10651_v14  ;;  %v728_v47 = vld [vmem:[%s6853_s17 + $0x7d8] sm:$0xff]  ;;  %v5630_v0 = vand.u32 4294901760, %v5629_v7 }
 0x3bd   : > { %5528 = vmatpush.msrb.mxu0 %v10706_v4  ;;  %5672 = vmatpush.msrb.mxu2 %v10698_v21 }
 0x3be   : > { %5577 = vmatpush.msrb.mxu1 %v5576_v6  ;;  %5718 = vmatpush.msrb.mxu3 %v10660_v53  ;;  %v11390_v6 = vand.u32 4294901760, %v10811_v46 }
 0x3bf   : > { %5530 = vmatpush.msrb.mxu0 %v10718_v1  ;;  %5675 = vmatpush.msrb.mxu2 %v10721_v32 }
 0x3c0   : > { %5583 = vmatpush.msrb.mxu1 %v5582_v15  ;;  %5720 = vmatpush.msrb.mxu3 %v10671_v38  ;;  %v10836_v15 = vand.u32 4294901760, %v730_v36  ;;  %v5635_v59 = vsub.f32 %v10811_v46, %v11390_v6 }
 0x3c1   : > { %5532 = vmatpush.msrb.mxu0 %v10732_v25  ;;  %5678 = vmatpush.msrb.mxu2 %v10735_v30 }
 0x3c2   : > { %5589 = vmatpush.msrb.mxu1 %v5588_v43  ;;  %5722 = vmatpush.msrb.mxu3 %v10692_v60  ;;  %v5618_v43 = vand.u32 4294901760, %v5617_v62  ;;  %v11396_v62 = vand.u32 4294901760, %v10842_v40  ;;  %v5636_v7 = vand.u32 4294901760, %v5635_v59  ;;  %v5647_v59 = vsub.f32 %v10849_v31, %v11398_v52 }
 0x3c3   : > { %5534 = vmatpush.msrb.mxu0 %v10744_v51  ;;  %5681 = vmatpush.msrb.mxu2 %v10748_v28 }
 0x3c4   : > { %5595 = vmatpush.msrb.mxu1 %v5594_v18  ;;  %5724 = vmatpush.msrb.mxu3 %v10706_v4  ;;  %v10851_v18 = vand.u32 4294901760, %v728_v47 }
 0x3c5   : > { %5536 = vmatpush.msrb.mxu0 %v10757_v13  ;;  %5684 = vmatpush.msrb.mxu2 %v10761_v20 }
 0x3c6   : > { %5601 = vmatpush.msrb.mxu1 %v5600_v9  ;;  %5726 = vmatpush.msrb.mxu3 %v10718_v1  ;;  %v10857_v9 = vand.u32 4294901760, %v726_v45  ;;  %v10875_v6 = vsub.f32 %v728_v47, %v10851_v18 }
 0x3c7   : > { %5538 = vmatpush.msrb.mxu0 %v10770_v10  ;;  %5687 = vmatpush.msrb.mxu2 %v10774_v16 }
 0x3c8   : > { %5607 = vmatpush.msrb.mxu1 %v5606_v2  ;;  %5728 = vmatpush.msrb.mxu3 %v10732_v25  ;;  %v10864_v2 = vsub.f32 %v730_v36, %v10836_v15  ;;  %v5641_v36 = vsub.f32 %v10828_v35, %v11394_v55  ;;  %v10883_v48 = vsub.f32 %v726_v45, %v10857_v9 }
 0x3c9   : > { %5540 = vmatpush.msrb.mxu0 %v10782_v8  ;;  %5690 = vmatpush.msrb.mxu2 %v10786_v5  ;;  %v5898_v55 = vsub.f32 %v10842_v40, %v11396_v62  ;;  %v10896_v45 = vsub.f32 %v724_v42, %v10869_v33 }
 0x3ca   : > { %5613 = vmatpush.msrb.mxu1 %v5612_v54  ;;  %5730 = vmatpush.msrb.mxu3 %v10744_v51  ;;  %v722_v54 = vld [vmem:[%s6853_s17 + $0x7a8] sm:$0xff]  ;;  %v11400_v26 = vand.u32 4294901760, %v10864_v2  ;;  %v5642_v42 = vand.u32 4294901760, %v5641_v36  ;;  %v11401_v62 = vand.u32 4294901760, %v10883_v48  ;;  %v11697_v36 = vld [vmem:[#allocation44_spill] sm:$0xff] }
 0x3cb   : > { %5542 = vmatpush.msrb.mxu0 %v10802_v50  ;;  %5693 = vmatpush.msrb.mxu2 %v10797_v49  ;;  %v10888_v47 = vand.u32 4294901760, %v722_v54  ;;  %v5899_v52 = vand.u32 4294901760, %v5898_v55  ;;  %v11403_v37 = vand.u32 4294901760, %v10896_v45  ;;  %v11698_v55 = vld [vmem:[#allocation45_spill] sm:$0xff] }
 0x3cc   : > { %5619 = vmatpush.msrb.mxu1 %v5618_v43  ;;  %5732 = vmatpush.msrb.mxu3 %v10757_v13  ;;  %v720_v43 = vld [vmem:[%s6853_s17 + $0x798] sm:$0xff]  ;;  %v5904_v12 = vsub.f32 %v10864_v2, %v11400_v26  ;;  %v10934_v26 = vand.u32 4294901760, %v716_v29  ;;  %v5916_v44 = vsub.f32 %v10883_v48, %v11401_v62 }
 0x3cd   : > { %5544 = vmatpush.msrb.mxu0 %v10822_v58  ;;  %5696 = vmatpush.msrb.mxu2 %v10811_v46  ;;  %v10905_v19 = vand.u32 4294901760, %v720_v43  ;;  %v5922_v62 = vsub.f32 %v10896_v45, %v11403_v37  ;;  %v11701_v37 = vand.u32 4294901760, %v10698_v21  ;;  %v706_v21 = vld [vmem:[%s6853_s17 + $0x728] sm:$0xff] }
 0x3ce   : > { %5625 = vmatpush.msrb.mxu1 %v5624_v23  ;;  %5734 = vmatpush.msrb.mxu3 %v10770_v10  ;;  %v718_v23 = vld [vmem:[%s6853_s17 + $0x788] sm:$0xff] }
 0x3cf   : > { %5550 = vmatmul.f32.vlgmr.msrb.gmra.mxu0 %v11696_v63  ;;  %5699 = vmatpush.msrb.mxu2 %v10828_v35  ;;  %v11402_v63 = vand.u32 4294901760, %v10875_v6 }
 0x3d0   : > { %5751 = vmatpush.msra.mxu0 %v5556_v3  ;;  %5631 = vmatpush.msrb.mxu1 %v5630_v0  ;;  %v10917_v3 = vsub.f32 %v722_v54, %v10888_v47  ;;  %v10919_v0 = vand.u32 4294901760, %v718_v23 }
 0x3d1   : > { %5736 = vmatpush.msrb.mxu3 %v10782_v8  ;;  %5702 = vmatpush.msrb.mxu2 %v10849_v31  ;;  %v5910_v54 = vsub.f32 %v10875_v6, %v11402_v63  ;;  %v11699_v63 = vld [vmem:[#allocation35_spill] sm:$0xff] }
 0x3d2   : > { %5755 = vmatpush.msra.mxu0 %v5562_v56  ;;  %5637 = vmatpush.msrb.mxu1 %v5636_v7  ;;  %v5648_v56 = vand.u32 4294901760, %v5647_v59  ;;  %v10932_v7 = vsub.f32 %v720_v43, %v10905_v19  ;;  %v5905_v59 = vand.u32 4294901760, %v5904_v12  ;;  %v10946_v43 = vsub.f32 %v718_v23, %v10919_v0 }
 0x3d3   : > { %5738 = vmatpush.msrb.mxu3 %v10802_v50  ;;  %5705 = vmatmul.f32.vlgmr.msrb.gmra.mxu2 %v11697_v36  ;;  %v5911_v11 = vand.u32 4294901760, %v5910_v54  ;;  %v10959_v23 = vsub.f32 %v716_v29, %v10934_v26  ;;  %v708_v36 = vld [vmem:[%s6853_s17 + $0x738] sm:$0xff]  ;;  %v11700_v17 = vand.u32 4294901760, %v10917_v3 }
 0x3d4   : > { %5759 = vmatpush.msra.mxu0 %v5568_v24  ;;  %5855 = vmatpush.msra.mxu2 %v10815_v39  ;;  %v712_v24 = vld [vmem:[%s6853_s17 + $0x758] sm:$0xff] }
 0x3d5   : > { %5643 = vmatpush.msrb.mxu1 %v5642_v42  ;;  %5740 = vmatpush.msrb.mxu3 %v10822_v58  ;;  %v10948_v42 = vand.u32 4294901760, %v714_v34  ;;  %v10961_v12 = vand.u32 4294901760, %v712_v24 }
 0x3d6   : > { %5744 = vmatmul.f32.vlgmr.msrb.gmra.mxu3 %v11698_v55  ;;  %5763 = vmatpush.msra.mxu0 %v5574_v27  ;;  %v710_v55 = vld [vmem:[%s6853_s17 + $0x748] sm:$0xff]  ;;  %v11404_v27 = vand.u32 4294901760, %v10932_v7 }
 0x3d7   : > { %5857 = vmatpush.msra.mxu2 %v10836_v15  ;;  %5900 = vmatpush.msra.mxu3 %v5899_v52  ;;  %v5917_v52 = vand.u32 4294901760, %v5916_v44  ;;  %v10972_v29 = vsub.f32 %v714_v34, %v10948_v42  ;;  %v10974_v54 = vand.u32 4294901760, %v710_v55  ;;  %v5923_v44 = vand.u32 4294901760, %v5922_v62 }
 0x3d8   : > { %5649 = vmatpush.msrb.mxu1 %v5648_v56  ;;  %5767 = vmatpush.msra.mxu0 %v5580_v41  ;;  %v5928_v41 = vsub.f32 %v10917_v3, %v11700_v17  ;;  %v11405_v56 = vand.u32 4294901760, %v10946_v43  ;;  %v10985_v34 = vsub.f32 %v712_v24, %v10961_v12  ;;  %v10987_v17 = vand.u32 4294901760, %v708_v36 }
 0x3d9   : > { %5651 = vmatmul.f32.vlgmr.msrb.gmra.mxu1 %v11699_v63  ;;  %5859 = vmatpush.msra.mxu2 %v10851_v18  ;;  %v5951_v24 = vand.u32 4294901760, %v10972_v29 }
 0x3da   : > { %5818 = vmatpush.msra.mxu1 %v10624_v22  ;;  %5906 = vmatpush.msra.mxu3 %v5905_v59  ;;  %v5934_v22 = vsub.f32 %v10932_v7, %v11404_v27  ;;  %v5945_v59 = vand.u32 4294901760, %v10959_v23  ;;  %v5940_v62 = vsub.f32 %v10946_v43, %v11405_v56  ;;  %v704_v27 = vld [vmem:[%s6853_s17 + $0x718] sm:$0xff]  ;;  %v702_v56 = vld [vmem:[%s6853_s17 + $0x708] sm:$0xff] }
 0x3db   : > { %5771 = vmatpush.msra.mxu0 %v11701_v37  ;;  %5861 = vmatpush.msra.mxu2 %v10857_v9  ;;  %v11702_v37 = vand.u32 4294901760, %v10721_v32  ;;  %v11703_v32 = vand.u32 4294901760, %v10735_v30  ;;  %v11704_v30 = vand.u32 4294901760, %v10748_v28 }
 0x3dc   : > { %5820 = vmatpush.msra.mxu1 %v10632_v61  ;;  %5912 = vmatpush.msra.mxu3 %v5911_v11  ;;  %v5929_v61 = vand.u32 4294901760, %v5928_v41  ;;  %v10999_v11 = vsub.f32 %v710_v55, %v10974_v54  ;;  %v5957_v41 = vand.u32 4294901760, %v10985_v34  ;;  %v11013_v55 = vsub.f32 %v708_v36, %v10987_v17 }
 0x3dd   : > { %5775 = vmatpush.msra.mxu0 %v11702_v37  ;;  %5863 = vmatpush.msra.mxu2 %v10869_v33  ;;  %v11005_v37 = vand.u32 4294901760, %v706_v21  ;;  %v11705_v36 = vand.u32 4294901760, %v10761_v20  ;;  %v11706_v20 = vand.u32 4294901760, %v10774_v16 }
 0x3de   : > { %5822 = vmatpush.msra.mxu1 %v10640_v57  ;;  %5918 = vmatpush.msra.mxu3 %v5917_v52  ;;  %v5935_v57 = vand.u32 4294901760, %v5934_v22  ;;  %v5946_v52 = vsub.f32 %v10959_v23, %v5945_v59  ;;  %v5963_v22 = vand.u32 4294901760, %v10999_v11 }
 0x3df   : > { %5779 = vmatpush.msra.mxu0 %v11703_v32  ;;  %5865 = vmatpush.msra.mxu2 %v10888_v47  ;;  %v11019_v32 = vand.u32 4294901760, %v704_v27  ;;  %v11030_v28 = vsub.f32 %v706_v21, %v11005_v37 }
 0x3e0   : > { %5824 = vmatpush.msra.mxu1 %v10651_v14  ;;  %5924 = vmatpush.msra.mxu3 %v5923_v44  ;;  %v5941_v14 = vand.u32 4294901760, %v5940_v62  ;;  %v5952_v44 = vsub.f32 %v10972_v29, %v5951_v24  ;;  %v5969_v62 = vand.u32 4294901760, %v11013_v55 }
 0x3e1   : > { %5783 = vmatpush.msra.mxu0 %v11704_v30  ;;  %5867 = vmatpush.msra.mxu2 %v10905_v19  ;;  %v11032_v30 = vand.u32 4294901760, %v702_v56  ;;  %v11043_v21 = vsub.f32 %v704_v27, %v11019_v32  ;;  %v5975_v16 = vand.u32 4294901760, %v11030_v28 }
 0x3e2   : > { %5826 = vmatpush.msra.mxu1 %v10660_v53  ;;  %5930 = vmatpush.msra.mxu3 %v5929_v61  ;;  %v5947_v53 = vand.u32 4294901760, %v5946_v52  ;;  %v5958_v61 = vsub.f32 %v10985_v34, %v5957_v41  ;;  %v11707_v52 = vand.u32 4294901760, %v10786_v5  ;;  %v5970_v27 = vsub.f32 %v11013_v55, %v5969_v62 }
 0x3e3   : > { %5787 = vmatpush.msra.mxu0 %v11705_v36  ;;  %5869 = vmatpush.msra.mxu2 %v10919_v0  ;;  %v11054_v36 = vsub.f32 %v702_v56, %v11032_v30  ;;  %v5981_v5 = vand.u32 4294901760, %v11043_v21 }
 0x3e4   : > { %5828 = vmatpush.msra.mxu1 %v10671_v38  ;;  %5936 = vmatpush.msra.mxu3 %v5935_v57  ;;  %v5953_v38 = vand.u32 4294901760, %v5952_v44  ;;  %v5964_v57 = vsub.f32 %v10999_v11, %v5963_v22  ;;  %v11709_v44 = vand.u32 4294901760, %v10811_v46  ;;  %v11711_v46 = vand.u32 4294901760, %v10849_v31 }
 0x3e5   : > { %5791 = vmatpush.msra.mxu0 %v11706_v20  ;;  %5871 = vmatpush.msra.mxu2 %v10934_v26  ;;  %v11713_v31 = vand.u32 4294901760, %v10842_v40 }
 0x3e6   : > { %5830 = vmatpush.msra.mxu1 %v10692_v60  ;;  %5942 = vmatpush.msra.mxu3 %v5941_v14  ;;  %v5959_v60 = vand.u32 4294901760, %v5958_v61  ;;  %v11708_v14 = vand.u32 4294901760, %v10797_v49  ;;  %v5965_v56 = vand.u32 4294901760, %v5964_v57  ;;  %v5987_v49 = vand.u32 4294901760, %v11054_v36 }
 0x3e7   : > { %5795 = vmatpush.msra.mxu0 %v11707_v52  ;;  %5873 = vmatpush.msra.mxu2 %v10948_v42  ;;  %v11710_v61 = vand.u32 4294901760, %v10828_v35 }
 0x3e8   : > { %5832 = vmatpush.msra.mxu1 %v10706_v4  ;;  %5948 = vmatpush.msra.mxu3 %v5947_v53  ;;  %v5976_v4 = vsub.f32 %v11030_v28, %v5975_v16  ;;  %v5971_v53 = vand.u32 4294901760, %v5970_v27  ;;  %v5988_v35 = vsub.f32 %v11054_v36, %v5987_v49 }
 0x3e9   : > { %5799 = vmatpush.msra.mxu0 %v11708_v14  ;;  %5875 = vmatpush.msra.mxu2 %v10961_v12 }
 0x3ea   : > { %5834 = vmatpush.msra.mxu1 %v10718_v1  ;;  %5954 = vmatpush.msra.mxu3 %v5953_v38  ;;  %v5982_v1 = vsub.f32 %v11043_v21, %v5981_v5  ;;  %v11715_v38 = vand.u32 4294901760, %v10864_v2 }
 0x3eb   : > { %5803 = vmatpush.msra.mxu0 %v11709_v44  ;;  %5877 = vmatpush.msra.mxu2 %v10974_v54 }
 0x3ec   : > { %5836 = vmatpush.msra.mxu1 %v10732_v25  ;;  %5960 = vmatpush.msra.mxu3 %v5959_v60  ;;  %v5977_v25 = vand.u32 4294901760, %v5976_v4  ;;  %v5983_v20 = vand.u32 4294901760, %v5982_v1 }
 0x3ed   : > { %5807 = vmatpush.msra.mxu0 %v11710_v61  ;;  %5879 = vmatpush.msra.mxu2 %v10987_v17 }
 0x3ee   : > { %5838 = vmatpush.msra.mxu1 %v10744_v51  ;;  %5966 = vmatpush.msra.mxu3 %v5965_v56  ;;  %v5989_v51 = vand.u32 4294901760, %v5988_v35 }
 0x3ef   : > { %5811 = vmatpush.msra.mxu0 %v11711_v46  ;;  %5881 = vmatpush.msra.mxu2 %v11005_v37 }
 0x3f0   : > { %5840 = vmatpush.msra.mxu1 %v10757_v13  ;;  %5972 = vmatpush.msra.mxu3 %v5971_v53  ;;  %v11712_v13 = vld [vmem:[#allocation50_spill] sm:$0xff] }
 0x3f1   : > { %5813 = vmatmul.f32.vlgmr.msra.gmra.mxu0 %v11699_v63  ;;  %5883 = vmatpush.msra.mxu2 %v11019_v32 }
 0x3f2   : > { %5998 = vmatpush.msrb.mxu0 %v10842_v40  ;;  %5842 = vmatpush.msra.mxu1 %v10770_v10  ;;  %v11714_v10 = vld [vmem:[#allocation47_spill] sm:$0xff]  ;;  %v3505_v40 = vpop.f32.mrf.mxu0 }
 0x3f3   : > { %5978 = vmatpush.msra.mxu3 %v5977_v25  ;;  %5885 = vmatpush.msra.mxu2 %v11032_v30 }
 0x3f4   : > { %6001 = vmatpush.msrb.mxu0 %v10864_v2  ;;  %5844 = vmatpush.msra.mxu1 %v10782_v8  ;;  %v11716_v8 = vand.u32 4294901760, %v10875_v6  ;;  %v11722_v2 = vld [vmem:[#allocation48_spill] sm:$0xff] }
 0x3f5   : > { %5984 = vmatpush.msra.mxu3 %v5983_v20  ;;  %5891 = vmatmul.f32.vlgmr.msra.gmra.mxu2 %v11712_v13 }
 0x3f6   : > { %6004 = vmatpush.msrb.mxu0 %v10875_v6  ;;  %6092 = vmatpush.msrb.mxu2 %v11713_v31  ;;  %v11721_v6 = vand.u32 4294901760, %v10946_v43 }
 0x3f7   : > { %5846 = vmatpush.msra.mxu1 %v10802_v50  ;;  %5990 = vmatpush.msra.mxu3 %v5989_v51  ;;  %v11717_v50 = vand.u32 4294901760, %v10883_v48 }
 0x3f8   : > { %5992 = vmatmul.f32.vlgmr.msra.gmra.mxu3 %v11714_v10  ;;  %6007 = vmatpush.msrb.mxu0 %v10883_v48  ;;  %v11720_v48 = vand.u32 4294901760, %v10932_v7 }
 0x3f9   : > { %6096 = vmatpush.msrb.mxu2 %v11715_v38  ;;  %6159 = vmatpush.msrb.mxu3 %v10815_v39 }
 0x3fa   : > { %5848 = vmatpush.msra.mxu1 %v10822_v58  ;;  %6010 = vmatpush.msrb.mxu0 %v10896_v45  ;;  %v11718_v58 = vand.u32 4294901760, %v10896_v45  ;;  %v3699_v45 = vpop.f32.mrf.mxu3 }
 0x3fb   : > { %5850 = vmatmul.f32.vlgmr.msra.gmra.mxu1 %v11699_v63  ;;  %6100 = vmatpush.msrb.mxu2 %v11716_v8 }
 0x3fc   : > { %6051 = vmatpush.msrb.mxu1 %v10815_v39  ;;  %6161 = vmatpush.msrb.mxu3 %v10836_v15  ;;  %v11719_v39 = vand.u32 4294901760, %v10917_v3 }
 0x3fd   : > { %6013 = vmatpush.msrb.mxu0 %v10917_v3  ;;  %6104 = vmatpush.msrb.mxu2 %v11717_v50  ;;  %v3768_v3 = vpop.f32.mrf.mxu0 }
 0x3fe   : > { %6053 = vmatpush.msrb.mxu1 %v10836_v15  ;;  %6163 = vmatpush.msrb.mxu3 %v10851_v18 }
 0x3ff   : > { %6016 = vmatpush.msrb.mxu0 %v10932_v7  ;;  %6108 = vmatpush.msrb.mxu2 %v11718_v58 }
 0x400   : > { %6055 = vmatpush.msrb.mxu1 %v10851_v18  ;;  %6165 = vmatpush.msrb.mxu3 %v10857_v9  ;;  %v3606_v18 = vpop.f32.mrf.mxu1 }
 0x401   : > { %6019 = vmatpush.msrb.mxu0 %v10946_v43  ;;  %6112 = vmatpush.msrb.mxu2 %v11719_v39 }
 0x402   : > { %6057 = vmatpush.msrb.mxu1 %v10857_v9  ;;  %6167 = vmatpush.msrb.mxu3 %v10869_v33  ;;  %v3660_v9 = vpop.f32.mrf.mxu2 }
 0x403   : > { %6022 = vmatpush.msrb.mxu0 %v10959_v23  ;;  %6116 = vmatpush.msrb.mxu2 %v11720_v48 }
 0x404   : > { %6059 = vmatpush.msrb.mxu1 %v10869_v33  ;;  %6169 = vmatpush.msrb.mxu3 %v10888_v47  ;;  %v6458_v33 = vld [vmem:[%s339_s20] sm:$0x3] }
 0x405   : > { %6025 = vmatpush.msrb.mxu0 %v10972_v29  ;;  %6120 = vmatpush.msrb.mxu2 %v11721_v6  ;;  %v736_v15 = vperm.slane %v6458_v33, 1  ;;  %v3947_v29 = vpop.f32.mrf.mxu3 }
 0x406   : > { %6061 = vmatpush.msrb.mxu1 %v10888_v47  ;;  %6171 = vmatpush.msrb.mxu3 %v10905_v19 }
 0x407   : > { %6028 = vmatpush.msrb.mxu0 %v10985_v34  ;;  %6124 = vmatpush.msrb.mxu2 %v5945_v59 }
 0x408   : > { %6063 = vmatpush.msrb.mxu1 %v10905_v19  ;;  %6173 = vmatpush.msrb.mxu3 %v10919_v0  ;;  %v3506_v19 = vadd.f32 %v3505_v40, %v736_v15  ;;  %v3805_v43 = vpop.f32.mrf.mxu1 }
 0x409   : > { %6031 = vmatpush.msrb.mxu0 %v10999_v11  ;;  %6128 = vmatpush.msrb.mxu2 %v5951_v24 }
 0x40a   : > { %6065 = vmatpush.msrb.mxu1 %v10919_v0  ;;  %6175 = vmatpush.msrb.mxu3 %v10934_v26  ;;  %v11723_v0 = vld [vmem:[#allocation49_spill] sm:$0xff]  ;;  %v3846_v23 = vpop.f32.mrf.mxu2 }
 0x40b   : > { %6034 = vmatpush.msrb.mxu0 %v11013_v55  ;;  %6132 = vmatpush.msrb.mxu2 %v5957_v41 }
 0x40c   : > { %6067 = vmatpush.msrb.mxu1 %v10934_v26  ;;  %6177 = vmatpush.msrb.mxu3 %v10948_v42  ;;  %v3607_v26 = vadd.f32 %v3606_v18, %v3506_v19 }
 0x40d   : > { %6037 = vmatpush.msrb.mxu0 %v11030_v28  ;;  %6136 = vmatpush.msrb.mxu2 %v5963_v22  ;;  %v4146_v41 = vpop.f32.mrf.mxu3 }
 0x40e   : > { %6069 = vmatpush.msrb.mxu1 %v10948_v42  ;;  %6179 = vmatpush.msrb.mxu3 %v10961_v12  ;;  %v3661_v47 = vadd.f32 %v3660_v9, %v3607_v26 }
 0x40f   : > { %6040 = vmatpush.msrb.mxu0 %v11043_v21  ;;  %6140 = vmatpush.msrb.mxu2 %v5969_v62 }
 0x410   : > { %6071 = vmatpush.msrb.mxu1 %v10961_v12  ;;  %6181 = vmatpush.msrb.mxu3 %v10974_v54  ;;  %v3700_v63 = vadd.f32 %v3699_v45, %v3661_v47  ;;  %v4040_v34 = vpop.f32.mrf.mxu1 }
 0x411   : > { %6043 = vmatpush.msrb.mxu0 %v11054_v36  ;;  %6144 = vmatpush.msrb.mxu2 %v5975_v16 }
 0x412   : > { %6073 = vmatpush.msrb.mxu1 %v10974_v54  ;;  %6183 = vmatpush.msrb.mxu3 %v10987_v17  ;;  %v3769_v7 = vadd.f32 %v3768_v3, %v3700_v63  ;;  %v4001_v54 = vpop.f32.mrf.mxu0  ;;  %v4109_v11 = vpop.f32.mrf.mxu2 }
 0x413   : > { %6046 = vmatmul.f32.vlgmr.msrb.gmra.mxu0 %v11722_v2  ;;  %6148 = vmatpush.msrb.mxu2 %v5981_v5 }
 0x414   : > { %6075 = vmatpush.msrb.mxu1 %v10987_v17  ;;  %6185 = vmatpush.msrb.mxu3 %v11005_v37  ;;  %v3806_v42 = vadd.f32 %v3805_v43, %v3769_v7 }
 0x415   : > { %6152 = vmatpush.msrb.mxu2 %v5987_v49  ;;  %v4381_v57 = vpop.f32.mrf.mxu3 }
 0x416   : > { %6077 = vmatpush.msrb.mxu1 %v11005_v37  ;;  %6187 = vmatpush.msrb.mxu3 %v11019_v32  ;;  %v3847_v12 = vadd.f32 %v3846_v23, %v3806_v42 }
 0x417   : > { %6154 = vmatmul.f32.vlgmr.msrb.gmra.mxu2 %v11714_v10 }
 0x418   : > { %6079 = vmatpush.msrb.mxu1 %v11019_v32  ;;  %6189 = vmatpush.msrb.mxu3 %v11032_v30  ;;  %v3948_v59 = vadd.f32 %v3947_v29, %v3847_v12  ;;  %v4288_v22 = vpop.f32.mrf.mxu1 }
 0x419   : > { %6191 = vmatmul.f32.vlgmr.msrb.gmra.mxu3 %v11714_v10 }
 0x41a   : > { %6081 = vmatpush.msrb.mxu1 %v11032_v30  ;;  %v4002_v17 = vadd.f32 %v4001_v54, %v3948_v59  ;;  %v4187_v55 = vpop.f32.mrf.mxu0  ;;  %v4342_v62 = vpop.f32.mrf.mxu2 }
 0x41b   : > { %6085 = vmatmul.f32.vlgmr.msrb.gmra.mxu1 %v11723_v0 }
 0x41c   : > { %v4041_v24 = vadd.f32 %v4040_v34, %v4002_v17 }
 0x41d   : > { %v4629_v56 = vpop.f32.mrf.mxu3 }
 0x41e   : > { %v4110_v37 = vadd.f32 %v4109_v11, %v4041_v24 }
 0x420   : > { %v4147_v32 = vadd.f32 %v4146_v41, %v4110_v37  ;;  %v4487_v36 = vpop.f32.mrf.mxu1 }
 0x422   : > { %v4188_v28 = vadd.f32 %v4187_v55, %v4147_v32  ;;  %v4450_v52 = vpop.f32.mrf.mxu0  ;;  %v4528_v14 = vpop.f32.mrf.mxu2 }
 0x424   : > { %v4289_v30 = vadd.f32 %v4288_v22, %v4188_v28 }
 0x425   : > { %v4828_v25 = vpop.f32.mrf.mxu3 }
 0x426   : > { %v4343_v21 = vadd.f32 %v4342_v62, %v4289_v30 }
 0x428   : > { %v4382_v16 = vadd.f32 %v4381_v57, %v4343_v21  ;;  %v4722_v49 = vpop.f32.mrf.mxu1 }
 0x42a   : > { %v4451_v60 = vadd.f32 %v4450_v52, %v4382_v16  ;;  %v4683_v44 = vpop.f32.mrf.mxu0  ;;  %v4791_v1 = vpop.f32.mrf.mxu2  ;;  %v11724_v52 = vld [vmem:[#allocation23_spill] sm:$0xff] }
 0x42b   : > { %6454 = vtanh.f32 %v11724_v52 }
 0x42c   : > { %v4488_v27 = vadd.f32 %v4487_v36, %v4451_v60  ;;  %v6198_v36 = vld [vmem:[%s349_s21] sm:$0x3] }
 0x42d   : > { %v5063_v8 = vpop.f32.mrf.mxu3  ;;  %v6200_v60 = vperm.slane %v6198_v36, 0 }
 0x42e   : > { %v4529_v5 = vadd.f32 %v4528_v14, %v4488_v27  ;;  %v6201_v27 = vperm.slane %v6198_v36, 1 }
 0x430   : > { %v4630_v4 = vadd.f32 %v4629_v56, %v4529_v5  ;;  %v4970_v51 = vpop.f32.mrf.mxu1 }
 0x431   : > { %v6455_v14 = vpop.eup %6454 }
 0x432   : > { %v4684_v53 = vadd.f32 %v4683_v44, %v4630_v4  ;;  %v4869_v35 = vpop.f32.mrf.mxu0  ;;  %v5024_v10 = vpop.f32.mrf.mxu2  ;;  %v6204_v56 = vmul.f32 %v6455_v14, %v6200_v60 }
 0x434   : > { %v4723_v61 = vadd.f32 %v4722_v49, %v4684_v53  ;;  %v6197_v49 = vld [vmem:[#allocation3] sm:$0xff] }
 0x435   : > { %v5311_v40 = vpop.f32.mrf.mxu3 }
 0x436   : > { %v4792_v46 = vadd.f32 %v4791_v1, %v4723_v61 }
 0x438   : > { %v4829_v20 = vadd.f32 %v4828_v25, %v4792_v46  ;;  %v5169_v39 = vpop.f32.mrf.mxu1 }
 0x43a   : > { %v4870_v13 = vadd.f32 %v4869_v35, %v4829_v20  ;;  %v5132_v50 = vpop.f32.mrf.mxu0  ;;  %v5210_v33 = vpop.f32.mrf.mxu2 }
 0x43c   : > { %v4971_v31 = vadd.f32 %v4970_v51, %v4870_v13 }
 0x43d   : > { %v5510_v63 = vpop.f32.mrf.mxu3 }
 0x43e   : > { %v5025_v38 = vadd.f32 %v5024_v10, %v4971_v31 }
 0x440   : > { %v5064_v58 = vadd.f32 %v5063_v8, %v5025_v38  ;;  %v5404_v26 = vpop.f32.mrf.mxu1 }
 0x442   : > { %v5133_v48 = vadd.f32 %v5132_v50, %v5064_v58  ;;  %v5365_v19 = vpop.f32.mrf.mxu0  ;;  %v5473_v47 = vpop.f32.mrf.mxu2 }
 0x444   : > { %v5170_v6 = vadd.f32 %v5169_v39, %v5133_v48 }
 0x446   : > { %v5211_v15 = vadd.f32 %v5210_v33, %v5170_v6 }
 0x448   : > { %v5312_v18 = vadd.f32 %v5311_v40, %v5211_v15 }
 0x44a   : > { %v5366_v9 = vadd.f32 %v5365_v19, %v5312_v18 }
 0x44c   : > { %v5405_v2 = vadd.f32 %v5404_v26, %v5366_v9  ;;  %v5551_v3 = vpop.f32.mrf.mxu0 }
 0x44e   : > { %v5474_v45 = vadd.f32 %v5473_v47, %v5405_v2 }
 0x450   : > { %v5511_v0 = vadd.f32 %v5510_v63, %v5474_v45 }
 0x452   : > { %v5552_v43 = vadd.f32 %v5551_v3, %v5511_v0 }
 0x456   : > { %v5652_v7 = vpop.f32.mrf.mxu1  ;;  %v5706_v23 = vpop.f32.mrf.mxu2 }
 0x457   : > { %v5653_v42 = vadd.f32 %v5652_v7, %v5552_v43 }
 0x459   : > { %v5707_v12 = vadd.f32 %v5706_v23, %v5653_v42  ;;  %v5745_v29 = vpop.f32.mrf.mxu3 }
 0x45b   : > { %v5746_v59 = vadd.f32 %v5745_v29, %v5707_v12 }
 0x46e   : > { %v5814_v54 = vpop.f32.mrf.mxu0 }
 0x46f   : > { %v5815_v17 = vadd.f32 %v5814_v54, %v5746_v59 }
 0x478   : > { %v5851_v34 = vpop.f32.mrf.mxu1  ;;  %v5892_v11 = vpop.f32.mrf.mxu2 }
 0x479   : > { %v5852_v24 = vadd.f32 %v5851_v34, %v5815_v17 }
 0x47b   : > { %v5893_v37 = vadd.f32 %v5892_v11, %v5852_v24  ;;  %v5993_v41 = vpop.f32.mrf.mxu3 }
 0x47d   : > { %v5994_v32 = vadd.f32 %v5993_v41, %v5893_v37 }
 0x490   : > { %v6047_v55 = vpop.f32.mrf.mxu0 }
 0x491   : > { %v6048_v22 = vadd.f32 %v6047_v55, %v5994_v32 }
 0x498   : > { %v6086_v28 = vpop.f32.mrf.mxu1 }
 0x499   : > { %v6087_v30 = vadd.f32 %v6086_v28, %v6048_v22 }
 0x49a   : > { %v6155_v62 = vpop.f32.mrf.mxu2 }
 0x49b   : > { %v6156_v21 = vadd.f32 %v6155_v62, %v6087_v30 }
 0x49c   : > { %v6192_v57 = vpop.f32.mrf.mxu3 }
 0x49d   : > { %v6193_v16 = vadd.f32 %v6192_v57, %v6156_v21 }
 0x49f   : > { %6456 = vtanh.f32 %v6193_v16 }
 0x4a5   : > { %v6457_v5 = vpop.eup %6456 }
 0x4a6   : > { %v6205_v44 = vmul.f32 %v6457_v5, %v6201_v27 }
 0x4a8   : > { %v6206_v4 = vadd.f32 %v6205_v44, %v6204_v56 }
 0x4aa   : > { %6207 = vadd.xlane.f32.xlu0 %v6206_v4 }
 0x51c   : > { %6215 = sbr.rel (%p6357_p5) target bundleno = 1351 (0x547), region = 76 }
 0x51d   : > { %v6208_v53 = vpop.xlane.xlu0 %6207 }
 0x51e   : > { %v6209_v61 = vadd.f32 %v6208_v53, %v6197_v49 }
 0x520   : > { %6211 = vst.msk [vmem:[#allocation3] sm:$0xff] %vm6210_vm1, %v6209_v61 }
 0x521   : > { %v6218_v46 = vstv %s6216_s12 }
 0x527   : > { %v6217_v1 = vld [vmem:[#allocation3] sm:$0xff] }
 0x528   : > { %v6219_v25 = vadd.f32 %v6218_v46, %v6217_v1 }
 0x52a   : > { %v6358_v35 = vmul.f32 -1.442695, %v6219_v25 }
 0x52c   : > { %6459 = vpow2.f32 %v6358_v35 }
 0x532   : > { %v6460_v20 = vpop.eup %6459 }
 0x533   : > { %v6223_v51 = vadd.f32 1.0, %v6460_v20 }
 0x535   : > { %6461 = vrcp.f32 %v6223_v51  ;;  %v6235_v10 = vand.u32 2147483648, %v6223_v51  ;;  %vm6229_vm2 = vweird.f32 %v6223_v51  ;;  %v6233_v8 = vand.u32 2147483647, %v6223_v51 }
 0x537   : > { %v6236_v58 = vor.u32 1.1754944e-38, %v6235_v10  ;;  %vm6234_vm5 = vcmp.eq.f32.partialorder %v6233_v8, 8.507059e+37 }
 0x53b   : > { %v6462_v13 = vpop.eup %6461 }
 0x53c   : > { %v6225_v31 = vmul.f32 %v6462_v13, %v6223_v51  ;;  %vm6230_vm3 = vweird.f32 %v6462_v13 }
 0x53d   : > { %vm6231_vm4 = vmor %vm6229_vm2, %vm6230_vm3 }
 0x53e   : > { %v6226_v38 = vsub.f32 1.0, %v6225_v31 }
 0x540   : > { %v6227_v50 = vmul.f32 %v6462_v13, %v6226_v38 }
 0x542   : > { %v6228_v39 = vadd.f32 %v6462_v13, %v6227_v50 }
 0x544   : > { %v6232_v48 = vsel %vm6231_vm4, %v6462_v13, %v6228_v39 }
 0x545   : > { %v6237_v6 = vsel %vm6234_vm5, %v6236_v58, %v6232_v48 }
 0x546   : > { %6239 = vst.msk [vmem:[%s11212_s7] sm:$0xff] %vm6210_vm1, %v6237_v6 }
 0x547 PF: > { %s11725_s29 = sld [smem:[#allocation16_spill]]  ;;  %s11728_s26 = smov %s6647_s27 }
 0x548   : > { %s11726_s18 = sld [smem:[#allocation15_spill]] }
 0x549   : > { %s11727_s28 = sld [smem:[#allocation17_spill]] }
 0x54d   : > { %p17_p8 = scmp.ge.s32.totalorder %s11725_s29, 6  }
 0x54e   : > { %s11729_s27 = smov %s11726_s18 }
 0x54f   :  { %19 = sbr.rel (!%p17_p8) target bundleno = 7 (0x7), region = 121 }
 0x554   :  { %6251 = vsyncpa [#allocation6], 1 }
 0x555   :  { %6253 = vsyncpa [#allocation6 + $0x1], 1 }
 0x556   :  { %6254 = vsyncpa [#allocation8], 1 }

</bundles_post_ra>
